<compile_context>
chip_gen: v7x
topology: tpu7x:2x2x1
jax: 0.10.0
libtpu: 0.0.40
codegen_flags: <defaults>
</compile_context>

<pallas_src>
import functools
import math

import jax
import jax.numpy as jnp
from jax import lax
from jax.experimental import pallas as pl
from jax.experimental.pallas import tpu as pltpu

# ----------------------------- model sizes ----------------------------------
HIDDEN = 32          # config.hidden_size
N_HEADS = 2          # config.num_attention_heads
HEAD_DIM = HIDDEN // N_HEADS
INTER = 4 * HIDDEN   # FFN intermediate size
SEQ_HALF = 16        # padding_length (each sentence half)
SEQ = 2 * SEQ_HALF   # total sequence length
SLIDER = 8           # SequenceDiff(slider_size=8) in XSSBert
LSTM_H = HIDDEN // 2
VOCAB = 130
MAX_POS = 64


# ============================ Pallas kernels =================================
def _layernorm(v, g, b, eps=1e-12):
    mu = jnp.mean(v, axis=-1, keepdims=True)
    var = jnp.mean((v - mu) ** 2, axis=-1, keepdims=True)
    return (v - mu) * lax.rsqrt(var + eps) * g + b


def _encoder_kernel(x_ref, bias_ref, sep_ref, ln_ref, wqkv_ref, bqkv_ref,
                    wo_ref, bo_ref, w1_ref, b1_ref, w2_ref, b2_ref,
                    logits_ref, hs_ref):
    """Fused 1-layer BERT encoder for one batch element (grid=(B,))."""
    x = x_ref[0]                      # (S, H) raw embedding sum
    ln = ln_ref[...]                  # (6, H): emb_g, emb_b, attn_g, attn_b, out_g, out_b
    x = _layernorm(x, ln[0:1], ln[1:2])

    # fused QKV projection: (S, H) @ (H, 3H)
    qkv = jnp.dot(x, wqkv_ref[...], preferred_element_type=jnp.float32) + bqkv_ref[...]

    bias = bias_ref[0]                # (1, S) additive attention bias
    sep = sep_ref[0]                  # (1, S) 1.0 where input_ids == 102
    scale = 1.0 / math.sqrt(HEAD_DIM)

    ctx_parts = []
    for h in range(N_HEADS):
        qh = qkv[:, h * HEAD_DIM:(h + 1) * HEAD_DIM]
        kh = qkv[:, HIDDEN + h * HEAD_DIM:HIDDEN + (h + 1) * HEAD_DIM]
        vh = qkv[:, 2 * HIDDEN + h * HEAD_DIM:2 * HIDDEN + (h + 1) * HEAD_DIM]
        s = lax.dot_general(qh, kh, (((1,), (1,)), ((), ())),
                            preferred_element_type=jnp.float32) * scale + bias
        s = s - jnp.max(s, axis=-1, keepdims=True)
        e = jnp.exp(s)
        p = e * pl.reciprocal(jnp.sum(e, axis=-1, keepdims=True), approx=True)
        ctx_parts.append(jnp.dot(p, vh, preferred_element_type=jnp.float32))

        # SequenceDiff statistics: mask attention along the key axis where the
        # token is [SEP] (==102), then sum over keys per query for each half.
        pm = jnp.where(sep > 0.0, 1e-9, p)
        s_a = jnp.sum(pm[:SEQ_HALF, :SEQ_HALF], axis=-1, keepdims=True)   # (16,1)
        s_b = jnp.sum(pm[SEQ_HALF:, SEQ_HALF:], axis=-1, keepdims=True)   # (16,1)
        hs_ref[0, h] = jnp.concatenate([s_a, s_b], axis=-1)               # (16,2)

    ctx = jnp.concatenate(ctx_parts, axis=-1)                             # (S, H)
    attn_out = jnp.dot(ctx, wo_ref[...], preferred_element_type=jnp.float32) + bo_ref[...]
    x = _layernorm(x + attn_out, ln[2:3], ln[3:4])

    h1 = jnp.dot(x, w1_ref[...], preferred_element_type=jnp.float32) + b1_ref[...]
    # TODO(synk): tanh-approx GELU; HuggingFace BERT default 'gelu' is erf-based.
    h1 = 0.5 * h1 * (1.0 + jnp.tanh(0.7978845608028654 * (h1 + 0.044715 * h1 * h1 * h1)))
    h2 = jnp.dot(h1, w2_ref[...], preferred_element_type=jnp.float32) + b2_ref[...]
    logits_ref[0] = _layernorm(x + h2, ln[4:5], ln[5:6])


def encoder_pallas(x_emb, bias, sep, ln_stack, w_qkv, b_qkv, wo, bo, w1, b1, w2, b2):
    B = x_emb.shape[0]
    return pl.pallas_call(
        _encoder_kernel,
        grid=(B,),
        out_shape=(jax.ShapeDtypeStruct((B, SEQ, HIDDEN), jnp.float32),
                   jax.ShapeDtypeStruct((B, N_HEADS, SEQ_HALF, 2), jnp.float32)),
        in_specs=[
            pl.BlockSpec((1, SEQ, HIDDEN), lambda b: (b, 0, 0)),
            pl.BlockSpec((1, 1, SEQ), lambda b: (b, 0, 0)),
            pl.BlockSpec((1, 1, SEQ), lambda b: (b, 0, 0)),
            pl.BlockSpec((6, HIDDEN), lambda b: (0, 0)),
            pl.BlockSpec((HIDDEN, 3 * HIDDEN), lambda b: (0, 0)),
            pl.BlockSpec((1, 3 * HIDDEN), lambda b: (0, 0)),
            pl.BlockSpec((HIDDEN, HIDDEN), lambda b: (0, 0)),
            pl.BlockSpec((1, HIDDEN), lambda b: (0, 0)),
            pl.BlockSpec((HIDDEN, INTER), lambda b: (0, 0)),
            pl.BlockSpec((1, INTER), lambda b: (0, 0)),
            pl.BlockSpec((INTER, HIDDEN), lambda b: (0, 0)),
            pl.BlockSpec((1, HIDDEN), lambda b: (0, 0)),
        ],
        out_specs=(pl.BlockSpec((1, SEQ, HIDDEN), lambda b: (b, 0, 0)),
                   pl.BlockSpec((1, N_HEADS, SEQ_HALF, 2), lambda b: (b, 0, 0, 0))),
        compiler_params=pltpu.CompilerParams(dimension_semantics=("parallel",)),
    )(x_emb, bias, sep, ln_stack, w_qkv, b_qkv, wo, bo, w1, b1, w2, b2)


def _seqdiff_kernel(sa_ref, sb_ref, logits_ref, mrow_ref,
                    wih_f_ref, whh_f_ref, bf_ref, wih_b_ref, whh_b_ref, bb_ref,
                    fcw_ref, fcb_ref, sim_ref, lmod_ref):
    """Fused SequenceDiff for one batch element: window gather + masked writes +
    unrolled bidirectional LSTM + pooling + fc + softmax."""
    b = pl.program_id(0)
    logits = logits_ref[0]            # (S, H)
    mrow = mrow_ref[0]                # (S, 1) attention mask per row
    rows = lax.broadcasted_iota(jnp.int32, (SEQ, 1), 0)
    touched = rows < 0                # all-False (S,1)

    slides = []
    for h in range(N_HEADS):
        sa = sa_ref[b, h]
        sb = sb_ref[b, h]
        touched = touched | ((rows >= sa) & (rows < sa + SLIDER))
        touched = touched | ((rows >= SEQ_HALF + sb) & (rows < SEQ_HALF + sb + SLIDER))

        s_a = logits_ref[0, pl.ds(sa, SLIDER), :]                 # (8, H)
        wm_a = mrow_ref[0, pl.ds(sa, SLIDER), :]                  # (8, 1)
        s_a = jnp.where(wm_a == 0.0, 1e-9, s_a)
        s_b = logits_ref[0, pl.ds(SEQ_HALF + sb, SLIDER), :]
        wm_b = mrow_ref[0, pl.ds(SEQ_HALF + sb, SLIDER), :]
        s_b = jnp.where(wm_b == 0.0, 1e-9, s_b)
        slides.append(jnp.concatenate([s_a, s_b], axis=-1))       # (8, 2H)

    slide = jnp.concatenate(slides, axis=0)                       # (nH*8, 2H)

    # emulate PyTorch's in-place masked view writes into `logits`
    lmod = jnp.where(touched & (mrow == 0.0), 1e-9, logits)
    lmod_ref[0] = lmod
    logits_rep = jnp.mean(lmod, axis=0, keepdims=True)            # (1, H)

    # bidirectional LSTM (gate order i,f,g,o), 8 timesteps unrolled
    xp_f = (jnp.dot(slide, wih_f_ref[...], preferred_element_type=jnp.float32)
            + bf_ref[...]).reshape(N_HEADS, SLIDER, 4 * LSTM_H)
    xp_b = (jnp.dot(slide, wih_b_ref[...], preferred_element_type=jnp.float32)
            + bb_ref[...]).reshape(N_HEADS, SLIDER, 4 * LSTM_H)
    whh_f = whh_f_ref[...]
    whh_b = whh_b_ref[...]

    def run_dir(xp3, whh, reverse):
        hcur = jnp.zeros((N_HEADS, LSTM_H), jnp.float32)
        ccur = jnp.zeros((N_HEADS, LSTM_H), jnp.float32)
        hsum = jnp.zeros((N_HEADS, LSTM_H), jnp.float32)
        steps = range(SLIDER - 1, -1, -1) if reverse else range(SLIDER)
        for t in steps:
            gates = xp3[:, t, :] + jnp.dot(hcur, whh, preferred_element_type=jnp.float32)
            ig = jax.nn.sigmoid(gates[:, 0 * LSTM_H:1 * LSTM_H])
            fg = jax.nn.sigmoid(gates[:, 1 * LSTM_H:2 * LSTM_H])
            gg = jnp.tanh(gates[:, 2 * LSTM_H:3 * LSTM_H])
            og = jax.nn.sigmoid(gates[:, 3 * LSTM_H:4 * LSTM_H])
            ccur = fg * ccur + ig * gg
            hcur = og * jnp.tanh(ccur)
            hsum = hsum + hcur
        return hsum * (1.0 / SLIDER)          # avg_pool1d over time

    mean_f = run_dir(xp_f, whh_f, reverse=False)                  # (nH, LSTM_H)
    mean_b = run_dir(xp_b, whh_b, reverse=True)                   # (nH, LSTM_H)
    rep = jnp.concatenate([mean_f, mean_b], axis=-1)              # (nH, 2*LSTM_H)

    xcat = jnp.concatenate([rep[h:h + 1, :] for h in range(N_HEADS)] + [logits_rep],
                           axis=-1)                               # (1, (nH+1)*H)
    lg = jnp.dot(xcat, fcw_ref[...], preferred_element_type=jnp.float32) + fcb_ref[...]
    lg = lg - jnp.max(lg, axis=-1, keepdims=True)
    e = jnp.exp(lg)
    sim_ref[0] = e * pl.reciprocal(jnp.sum(e, axis=-1, keepdims=True), approx=True)


def seqdiff_pallas(startA, startB, logits, mask_rows,
                   wih_f, whh_f, bias_f, wih_b, whh_b, bias_b, fc_w, fc_b):
    B = logits.shape[0]
    grid_spec = pltpu.PrefetchScalarGridSpec(
        num_scalar_prefetch=2,
        grid=(B,),
        in_specs=[
            pl.BlockSpec((1, SEQ, HIDDEN), lambda b, sa, sb: (b, 0, 0)),
            pl.BlockSpec((1, SEQ, 1), lambda b, sa, sb: (b, 0, 0)),
            pl.BlockSpec((2 * HIDDEN, 4 * LSTM_H), lambda b, sa, sb: (0, 0)),
            pl.BlockSpec((LSTM_H, 4 * LSTM_H), lambda b, sa, sb: (0, 0)),
            pl.BlockSpec((1, 4 * LSTM_H), lambda b, sa, sb: (0, 0)),
            pl.BlockSpec((2 * HIDDEN, 4 * LSTM_H), lambda b, sa, sb: (0, 0)),
            pl.BlockSpec((LSTM_H, 4 * LSTM_H), lambda b, sa, sb: (0, 0)),
            pl.BlockSpec((1, 4 * LSTM_H), lambda b, sa, sb: (0, 0)),
            pl.BlockSpec(((N_HEADS + 1) * HIDDEN, 2), lambda b, sa, sb: (0, 0)),
            pl.BlockSpec((1, 2), lambda b, sa, sb: (0, 0)),
        ],
        out_specs=(pl.BlockSpec((1, 1, 2), lambda b, sa, sb: (b, 0, 0)),
                   pl.BlockSpec((1, SEQ, HIDDEN), lambda b, sa, sb: (b, 0, 0))),
    )
    return pl.pallas_call(
        _seqdiff_kernel,
        grid_spec=grid_spec,
        out_shape=(jax.ShapeDtypeStruct((B, 1, 2), jnp.float32),
                   jax.ShapeDtypeStruct((B, SEQ, HIDDEN), jnp.float32)),
        compiler_params=pltpu.CompilerParams(dimension_semantics=("parallel",)),
    )(startA, startB, logits, mask_rows,
      wih_f, whh_f, bias_f, wih_b, whh_b, bias_b, fc_w, fc_b)


def _cossim_kernel(e1_ref, m1_ref, e2_ref, m2_ref,
                   w1_ref, b1_ref, w2_ref, b2_ref, o_ref):
    """Fused CosineSim: SelfAttention on both halves + masked mean pooling + cosine."""
    w1 = w1_ref[...]
    b1 = b1_ref[...]
    w2 = w2_ref[...]
    b2 = b2_ref[...]

    def attend(e):
        B_, S1, H_ = e.shape
        x2 = e.reshape(B_ * S1, H_)
        hdn = jnp.maximum(jnp.dot(x2, w1, preferred_element_type=jnp.float32) + b1, 0.0)
        en = (jnp.dot(hdn, w2, preferred_element_type=jnp.float32) + b2).reshape(B_, S1, H_)
        en = en - jnp.max(en, axis=1, keepdims=True)          # softmax over seq dim
        p = jnp.exp(en)
        wgt = p * pl.reciprocal(jnp.sum(p, axis=1, keepdims=True), approx=True)
        return e * wgt

    e1 = e1_ref[...]
    e2 = e2_ref[...]
    m1 = m1_ref[...]
    m2 = m2_ref[...]
    a1 = attend(e1)
    a2 = attend(e2)
    u = jnp.sum(a1 * m1, axis=1) / jnp.maximum(jnp.sum(m1, axis=1), 1e-9)   # (B,H)
    v = jnp.sum(a2 * m2, axis=1) / jnp.maximum(jnp.sum(m2, axis=1), 1e-9)
    num = jnp.sum(u * v, axis=-1)
    un = jnp.sqrt(jnp.sum(u * u, axis=-1))
    vn = jnp.sqrt(jnp.sum(v * v, axis=-1))
    o_ref[...] = (num / jnp.maximum(un * vn, 1e-8))[:, None]


def cossim_pallas(e1, m1, e2, m2, w1, b1, w2, b2):
    B, S1, H = e1.shape
    return pl.pallas_call(
        _cossim_kernel,
        grid=(1,),
        out_shape=jax.ShapeDtypeStruct((B, 1), jnp.float32),
        in_specs=[pl.BlockSpec((B, S1, H), lambda i: (0, 0, 0)),
                  pl.BlockSpec((B, S1, 1), lambda i: (0, 0, 0)),
                  pl.BlockSpec((B, S1, H), lambda i: (0, 0, 0)),
                  pl.BlockSpec((B, S1, 1), lambda i: (0, 0, 0)),
                  pl.BlockSpec((H, H), lambda i: (0, 0)),
                  pl.BlockSpec((1, H), lambda i: (0, 0)),
                  pl.BlockSpec((H, H), lambda i: (0, 0)),
                  pl.BlockSpec((1, H), lambda i: (0, 0))],
        out_specs=pl.BlockSpec((B, 1), lambda i: (0, 0)),
    )(e1, m1, e2, m2, w1, b1, w2, b2)


# ============================= JAX glue ======================================
def range_index(pos, seq_len, slider):
    """Vectorized SequenceDiff.get_range_index (l + r == slider always)."""
    pos = jnp.where(pos == 0, 1, pos)
    pos = jnp.where(pos == seq_len - 1, seq_len - 2, pos)
    l = jnp.full_like(pos, slider // 2)
    l = jnp.where(pos - l <= 0, pos - 1, l)
    r = slider - l
    over = pos + r >= seq_len - 1
    r = jnp.where(over, seq_len - pos - 2, r)
    l = jnp.where(over, slider - r, l)
    return pos, l, r


@functools.partial(jax.jit, static_argnums=(4,))
def xss_bert_forward(P, input_ids, attention_mask, token_type_ids, padding_length):
    Bsz, S = input_ids.shape
    mask_f = attention_mask.astype(jnp.float32)

    # embeddings (table gather stays in JAX), rest of the encoder is one kernel
    x_emb = (P["word_emb"][input_ids]
             + P["pos_emb"][:S][None, :, :]
             + P["type_emb"][token_type_ids])
    bias = ((1.0 - mask_f) * -10000.0)[:, None, :]                 # (B,1,S)
    sep = (input_ids == 102).astype(jnp.float32)[:, None, :]       # (B,1,S)

    logits, head_sums = encoder_pallas(
        x_emb, bias, sep, P["ln_stack"], P["w_qkv"], P["b_qkv"], P["wo"], P["bo"],
        P["ffn_w1"], P["ffn_b1"], P["ffn_w2"], P["ffn_b2"])

    # master token per head/half (tiny argmax + scalar index math in JAX)
    masterA = jnp.argmax(head_sums[..., 0], axis=-1)               # (B, nH)
    masterB = jnp.argmax(head_sums[..., 1], axis=-1)
    posA, lA, _ = range_index(masterA, SEQ_HALF, SLIDER)
    posB, lB, _ = range_index(masterB, SEQ_HALF, SLIDER)
    startA = (posA - lA).astype(jnp.int32)
    startB = (posB - lB).astype(jnp.int32)

    mask_rows = mask_f[:, :, None]                                 # (B,S,1)

    sim, logits_mod = seqdiff_pallas(
        startA, startB, logits, mask_rows,
        P["wih_f"], P["whh_f"], P["bias_f"],
        P["wih_b"], P["whh_b"], P["bias_b"], P["fc_w"], P["fc_b"])

    predA = sim[:, 0, 1]
    predB = cossim_pallas(logits_mod[:, :padding_length, :],
                          mask_rows[:, :padding_length, :],
                          logits_mod[:, padding_length:, :],
                          mask_rows[:, padding_length:, :],
                          P["sa_w1"], P["sa_b1"], P["sa_w2"], P["sa_b2"])[:, 0]
    return predA + predB          # mode == 'default', labels is None


# ========================== deterministic init ===============================
def init_params(key):
    ks = iter(jax.random.split(key, 48))

    def w(shape):
        return jax.random.normal(next(ks), shape, jnp.float32) * 0.02

    p = {
        "word_emb": w((VOCAB, HIDDEN)),
        "pos_emb": w((MAX_POS, HIDDEN)),
        "type_emb": w((2, HIDDEN)),
        "emb_ln_g": jnp.ones((HIDDEN,), jnp.float32),
        "emb_ln_b": jnp.zeros((HIDDEN,), jnp.float32),
        "attn_ln_g": jnp.ones((HIDDEN,), jnp.float32),
        "attn_ln_b": jnp.zeros((HIDDEN,), jnp.float32),
        "out_ln_g": jnp.ones((HIDDEN,), jnp.float32),
        "out_ln_b": jnp.zeros((HIDDEN,), jnp.float32),
    }
    for name in ("q", "k", "v", "o"):
        p[f"w{name}"] = w((HIDDEN, HIDDEN))
        p[f"b{name}"] = jnp.zeros((HIDDEN,), jnp.float32)
    p["ffn_w1"] = w((HIDDEN, INTER))
    p["ffn_b1"] = jnp.zeros((INTER,), jnp.float32)
    p["ffn_w2"] = w((INTER, HIDDEN))
    p["ffn_b2"] = jnp.zeros((HIDDEN,), jnp.float32)
    # CosineSim.SelfAttention projection MLP
    p["sa_w1"] = w((HIDDEN, HIDDEN))
    p["sa_b1"] = w((HIDDEN,))
    p["sa_w2"] = w((HIDDEN, HIDDEN))
    p["sa_b2"] = w((HIDDEN,))
    # SequenceDiff bidirectional LSTM (PyTorch param shapes)
    for d in ("f", "b"):
        p[f"lstm_wih_{d}"] = w((4 * LSTM_H, 2 * HIDDEN))
        p[f"lstm_whh_{d}"] = w((4 * LSTM_H, LSTM_H))
        p[f"lstm_bih_{d}"] = jnp.zeros((4 * LSTM_H,), jnp.float32)
        p[f"lstm_bhh_{d}"] = jnp.zeros((4 * LSTM_H,), jnp.float32)
    # SequenceDiff fc: Linear((nH+1)*H, 2) + Softmax
    p["fc_w"] = w(((N_HEADS + 1) * HIDDEN, 2))
    p["fc_b"] = jnp.zeros((2,), jnp.float32)
    return p


def prepare_params(p):
    """One-time reshape/transpose/concat so the jit-hot path has no layout ops."""
    P = {
        "word_emb": p["word_emb"],
        "pos_emb": p["pos_emb"],
        "type_emb": p["type_emb"],
        "ln_stack": jnp.stack([p["emb_ln_g"], p["emb_ln_b"],
                               p["attn_ln_g"], p["attn_ln_b"],
                               p["out_ln_g"], p["out_ln_b"]], axis=0),      # (6,H)
        "w_qkv": jnp.concatenate([p["wq"], p["wk"], p["wv"]], axis=1),      # (H,3H)
        "b_qkv": jnp.concatenate([p["bq"], p["bk"], p["bv"]]).reshape(1, 3 * HIDDEN),
        "wo": p["wo"],
        "bo": p["bo"].reshape(1, HIDDEN),
        "ffn_w1": p["ffn_w1"],
        "ffn_b1": p["ffn_b1"].reshape(1, INTER),
        "ffn_w2": p["ffn_w2"],
        "ffn_b2": p["ffn_b2"].reshape(1, HIDDEN),
        "sa_w1": p["sa_w1"],
        "sa_b1": p["sa_b1"].reshape(1, HIDDEN),
        "sa_w2": p["sa_w2"],
        "sa_b2": p["sa_b2"].reshape(1, HIDDEN),
        "fc_w": p["fc_w"],
        "fc_b": p["fc_b"].reshape(1, 2),
    }
    for d in ("f", "b"):
        P[f"wih_{d}"] = p[f"lstm_wih_{d}"].T                                 # (2H, 4*LSTM_H)
        P[f"whh_{d}"] = p[f"lstm_whh_{d}"].T                                 # (LSTM_H, 4*LSTM_H)
        P[f"bias_{d}"] = (p[f"lstm_bih_{d}"] + p[f"lstm_bhh_{d}"]).reshape(1, 4 * LSTM_H)
    return P


# ================================ main =======================================
if __name__ == "__main__":
    key = jax.random.PRNGKey(0)
    pkey, ikey = jax.random.split(key)
    params = prepare_params(init_params(pkey))

    B = 2
    input_ids = jax.random.randint(ikey, (B, SEQ), 0, VOCAB, dtype=jnp.int32)
    # place [SEP] (=102) at the end of each half to exercise the attention masking
    input_ids = input_ids.at[:, SEQ_HALF - 1].set(102).at[:, SEQ - 1].set(102)
    attention_mask = jnp.ones((B, SEQ), jnp.int32)
    attention_mask = attention_mask.at[1, SEQ_HALF - 3:SEQ_HALF].set(0)
    attention_mask = attention_mask.at[1, SEQ - 3:SEQ].set(0)
    token_type_ids = jnp.concatenate(
        [jnp.zeros((B, SEQ_HALF), jnp.int32), jnp.ones((B, SEQ_HALF), jnp.int32)], axis=1)

    pred = xss_bert_forward(params, input_ids, attention_mask, token_type_ids, SEQ_HALF)
    jax.block_until_ready(pred)
    assert pred.shape == (B,)
    print("KERNEL_OK")
</pallas_src>

<mosaic_0001>
module attributes {stable_mosaic.version = 11 : i64} {
  func.func @_encoder_kernel(%arg0: i32, %arg1: memref<1x32x32xf32, #tpu.memory_space<vmem>>, %arg2: memref<1x1x32xf32, #tpu.memory_space<vmem>>, %arg3: memref<1x1x32xf32, #tpu.memory_space<vmem>>, %arg4: memref<6x32xf32, #tpu.memory_space<vmem>>, %arg5: memref<32x96xf32, #tpu.memory_space<vmem>>, %arg6: memref<1x96xf32, #tpu.memory_space<vmem>>, %arg7: memref<32x32xf32, #tpu.memory_space<vmem>>, %arg8: memref<1x32xf32, #tpu.memory_space<vmem>>, %arg9: memref<32x128xf32, #tpu.memory_space<vmem>>, %arg10: memref<1x128xf32, #tpu.memory_space<vmem>>, %arg11: memref<128x32xf32, #tpu.memory_space<vmem>>, %arg12: memref<1x32xf32, #tpu.memory_space<vmem>>, %arg13: memref<1x32x32xf32, #tpu.memory_space<vmem>>, %arg14: memref<1x2x16x2xf32, #tpu.memory_space<vmem>>) attributes {dimension_semantics = [#tpu.dimension_semantics<parallel>], iteration_bounds = array<i64: 2>, scalar_prefetch = 0 : i64, scratch_operands = 0 : i64, tpu.core_type = #tpu.core_type<tc>, window_params = [{transform_indices = @transform_0, window_bounds = array<i64: 1, 32, 32>}, {transform_indices = @transform_1, window_bounds = array<i64: 1, 1, 32>}, {transform_indices = @transform_2, window_bounds = array<i64: 1, 1, 32>}, {pipeline_mode = #tpu.pipeline_mode<synchronous>, transform_indices = @transform_3, window_bounds = array<i64: 6, 32>}, {pipeline_mode = #tpu.pipeline_mode<synchronous>, transform_indices = @transform_4, window_bounds = array<i64: 32, 96>}, {pipeline_mode = #tpu.pipeline_mode<synchronous>, transform_indices = @transform_5, window_bounds = array<i64: 1, 96>}, {pipeline_mode = #tpu.pipeline_mode<synchronous>, transform_indices = @transform_6, window_bounds = array<i64: 32, 32>}, {pipeline_mode = #tpu.pipeline_mode<synchronous>, transform_indices = @transform_7, window_bounds = array<i64: 1, 32>}, {pipeline_mode = #tpu.pipeline_mode<synchronous>, transform_indices = @transform_8, window_bounds = array<i64: 32, 128>}, {pipeline_mode = #tpu.pipeline_mode<synchronous>, transform_indices = @transform_9, window_bounds = array<i64: 1, 128>}, {pipeline_mode = #tpu.pipeline_mode<synchronous>, transform_indices = @transform_10, window_bounds = array<i64: 128, 32>}, {pipeline_mode = #tpu.pipeline_mode<synchronous>, transform_indices = @transform_11, window_bounds = array<i64: 1, 32>}, {transform_indices = @transform_12, window_bounds = array<i64: 1, 32, 32>}, {transform_indices = @transform_13, window_bounds = array<i64: 1, 2, 16, 2>}]} {
    %c0 = arith.constant 0 : index
    %c0_0 = arith.constant 0 : index
    %c0_1 = arith.constant 0 : index
    %0 = vector.load %arg1[%c0, %c0_0, %c0_1] : memref<1x32x32xf32, #tpu.memory_space<vmem>>, vector<1x32x32xf32>
    %1 = vector.shape_cast %0 : vector<1x32x32xf32> to vector<32x32xf32>
    %c0_2 = arith.constant 0 : index
    %c0_3 = arith.constant 0 : index
    %2 = vector.load %arg4[%c0_2, %c0_3] : memref<6x32xf32, #tpu.memory_space<vmem>>, vector<6x32xf32>
    %3 = vector.extract_strided_slice %2 {offsets = [0, 0], sizes = [1, 32], strides = [1, 1]} : vector<6x32xf32> to vector<1x32xf32>
    %4 = vector.extract_strided_slice %2 {offsets = [1, 0], sizes = [1, 32], strides = [1, 1]} : vector<6x32xf32> to vector<1x32xf32>
    %cst = arith.constant dense<0.000000e+00> : vector<32xf32>
    %5 = vector.multi_reduction <add>, %1, %cst [1] : vector<32x32xf32> to vector<32xf32>
    %6 = vector.shape_cast %5 : vector<32xf32> to vector<32x1xf32>
    %cst_4 = arith.constant 3.200000e+01 : f32
    %7 = vector.broadcast %cst_4 : f32 to vector<32x1xf32>
    %8 = arith.divf %6, %7 : vector<32x1xf32>
    %9 = vector.broadcast %8 : vector<32x1xf32> to vector<32x32xf32>
    %10 = arith.subf %1, %9 : vector<32x32xf32>
    %11 = arith.mulf %10, %10 : vector<32x32xf32>
    %cst_5 = arith.constant dense<0.000000e+00> : vector<32xf32>
    %12 = vector.multi_reduction <add>, %11, %cst_5 [1] : vector<32x32xf32> to vector<32xf32>
    %13 = vector.shape_cast %12 : vector<32xf32> to vector<32x1xf32>
    %cst_6 = arith.constant 3.200000e+01 : f32
    %14 = vector.broadcast %cst_6 : f32 to vector<32x1xf32>
    %15 = arith.divf %13, %14 : vector<32x1xf32>
    %16 = vector.broadcast %8 : vector<32x1xf32> to vector<32x32xf32>
    %17 = arith.subf %1, %16 : vector<32x32xf32>
    %cst_7 = arith.constant 9.99999996E-13 : f32
    %18 = vector.broadcast %cst_7 : f32 to vector<32x1xf32>
    %19 = arith.addf %15, %18 : vector<32x1xf32>
    %20 = math.rsqrt %19 : vector<32x1xf32>
    %21 = vector.broadcast %20 : vector<32x1xf32> to vector<32x32xf32>
    %22 = arith.mulf %17, %21 : vector<32x32xf32>
    %23 = vector.broadcast %3 : vector<1x32xf32> to vector<32x32xf32>
    %24 = arith.mulf %22, %23 : vector<32x32xf32>
    %25 = vector.broadcast %4 : vector<1x32xf32> to vector<32x32xf32>
    %26 = arith.addf %24, %25 : vector<32x32xf32>
    %c0_8 = arith.constant 0 : index
    %c0_9 = arith.constant 0 : index
    %27 = vector.load %arg5[%c0_8, %c0_9] : memref<32x96xf32, #tpu.memory_space<vmem>>, vector<32x96xf32>
    %cst_10 = arith.constant dense<0.000000e+00> : vector<32x96xf32>
    %28 = tpu.matmul %26, %27, %cst_10 {dimension_numbers = #tpu.dot_dimension_numbers<[1], [0], [0], [1], [0, 0, 1, 1], [], []>} : vector<32x32xf32>, vector<32x96xf32>, vector<32x96xf32> -> vector<32x96xf32>
    %c0_11 = arith.constant 0 : index
    %c0_12 = arith.constant 0 : index
    %29 = vector.load %arg6[%c0_11, %c0_12] : memref<1x96xf32, #tpu.memory_space<vmem>>, vector<1x96xf32>
    %30 = vector.broadcast %29 : vector<1x96xf32> to vector<32x96xf32>
    %31 = arith.addf %28, %30 : vector<32x96xf32>
    %c0_13 = arith.constant 0 : index
    %c0_14 = arith.constant 0 : index
    %c0_15 = arith.constant 0 : index
    %32 = vector.load %arg2[%c0_13, %c0_14, %c0_15] : memref<1x1x32xf32, #tpu.memory_space<vmem>>, vector<1x1x32xf32>
    %33 = vector.shape_cast %32 : vector<1x1x32xf32> to vector<1x32xf32>
    %c0_16 = arith.constant 0 : index
    %c0_17 = arith.constant 0 : index
    %c0_18 = arith.constant 0 : index
    %34 = vector.load %arg3[%c0_16, %c0_17, %c0_18] : memref<1x1x32xf32, #tpu.memory_space<vmem>>, vector<1x1x32xf32>
    %35 = vector.shape_cast %34 : vector<1x1x32xf32> to vector<1x32xf32>
    %36 = vector.extract_strided_slice %31 {offsets = [0, 0], sizes = [32, 16], strides = [1, 1]} : vector<32x96xf32> to vector<32x16xf32>
    %37 = vector.extract_strided_slice %31 {offsets = [0, 32], sizes = [32, 16], strides = [1, 1]} : vector<32x96xf32> to vector<32x16xf32>
    %38 = vector.extract_strided_slice %31 {offsets = [0, 64], sizes = [32, 16], strides = [1, 1]} : vector<32x96xf32> to vector<32x16xf32>
    %cst_19 = arith.constant dense<0.000000e+00> : vector<32x32xf32>
    %39 = tpu.matmul %36, %37, %cst_19 {dimension_numbers = #tpu.dot_dimension_numbers<[1], [1], [0], [0], [0, 0, 1, 0], [], []>} : vector<32x16xf32>, vector<32x16xf32>, vector<32x32xf32> -> vector<32x32xf32>
    %cst_20 = arith.constant 2.500000e-01 : f32
    %40 = vector.broadcast %cst_20 : f32 to vector<32x32xf32>
    %41 = arith.mulf %39, %40 : vector<32x32xf32>
    %42 = vector.broadcast %33 : vector<1x32xf32> to vector<32x32xf32>
    %43 = arith.addf %41, %42 : vector<32x32xf32>
    %cst_21 = arith.constant dense<0xFF800000> : vector<32xf32>
    %44 = vector.multi_reduction <maximumf>, %43, %cst_21 [1] : vector<32x32xf32> to vector<32xf32>
    %45 = vector.shape_cast %44 : vector<32xf32> to vector<32x1xf32>
    %46 = vector.broadcast %45 : vector<32x1xf32> to vector<32x32xf32>
    %47 = arith.subf %43, %46 : vector<32x32xf32>
    %48 = math.exp %47 : vector<32x32xf32>
    %cst_22 = arith.constant dense<0.000000e+00> : vector<32xf32>
    %49 = vector.multi_reduction <add>, %48, %cst_22 [1] : vector<32x32xf32> to vector<32xf32>
    %50 = vector.shape_cast %49 : vector<32xf32> to vector<32x1xf32>
    %51 = tpu.reciprocal %50 {approx = true} : vector<32x1xf32> -> vector<32x1xf32>
    %52 = vector.broadcast %51 : vector<32x1xf32> to vector<32x32xf32>
    %53 = arith.mulf %48, %52 : vector<32x32xf32>
    %cst_23 = arith.constant dense<0.000000e+00> : vector<32x16xf32>
    %54 = tpu.matmul %53, %38, %cst_23 {dimension_numbers = #tpu.dot_dimension_numbers<[1], [0], [0], [1], [0, 0, 1, 1], [], []>} : vector<32x32xf32>, vector<32x16xf32>, vector<32x16xf32> -> vector<32x16xf32>
    %cst_24 = arith.constant 0.000000e+00 : f32
    %55 = vector.broadcast %cst_24 : f32 to vector<1x32xf32>
    %56 = arith.cmpf ogt, %35, %55 : vector<1x32xf32>
    %cst_25 = arith.constant 9.99999971E-10 : f32
    %57 = vector.shape_cast %56 : vector<1x32xi1> to vector<1x32xi1>
    %58 = vector.broadcast %57 : vector<1x32xi1> to vector<32x32xi1>
    %59 = vector.broadcast %cst_25 : f32 to vector<32x32xf32>
    %60 = arith.select %58, %59, %53 : vector<32x32xi1>, vector<32x32xf32>
    %61 = vector.extract_strided_slice %60 {offsets = [0, 0], sizes = [16, 16], strides = [1, 1]} : vector<32x32xf32> to vector<16x16xf32>
    %cst_26 = arith.constant dense<0.000000e+00> : vector<16xf32>
    %62 = vector.multi_reduction <add>, %61, %cst_26 [1] : vector<16x16xf32> to vector<16xf32>
    %63 = vector.shape_cast %62 : vector<16xf32> to vector<16x1xf32>
    %64 = vector.extract_strided_slice %60 {offsets = [16, 16], sizes = [16, 16], strides = [1, 1]} : vector<32x32xf32> to vector<16x16xf32>
    %cst_27 = arith.constant dense<0.000000e+00> : vector<16xf32>
    %65 = vector.multi_reduction <add>, %64, %cst_27 [1] : vector<16x16xf32> to vector<16xf32>
    %66 = vector.shape_cast %65 : vector<16xf32> to vector<16x1xf32>
    %67 = tpu.concatenate %63, %66 in 1 : vector<16x1xf32>, vector<16x1xf32> -> vector<16x2xf32>
    %c0_28 = arith.constant 0 : index
    %c0_29 = arith.constant 0 : index
    %c0_30 = arith.constant 0 : index
    %c0_31 = arith.constant 0 : index
    %68 = vector.load %arg14[%c0_28, %c0_29, %c0_30, %c0_31] : memref<1x2x16x2xf32, #tpu.memory_space<vmem>>, vector<1x1x16x2xf32>
    %69 = vector.shape_cast %68 : vector<1x1x16x2xf32> to vector<16x2xf32>
    %70 = vector.shape_cast %67 : vector<16x2xf32> to vector<1x1x16x2xf32>
    tpu.vector_store %arg14[%c0_28, %c0_29, %c0_30, %c0_31], %70 {strides = array<i32>} : memref<1x2x16x2xf32, #tpu.memory_space<vmem>>, vector<1x1x16x2xf32>,
    %71 = vector.extract_strided_slice %31 {offsets = [0, 16], sizes = [32, 16], strides = [1, 1]} : vector<32x96xf32> to vector<32x16xf32>
    %72 = vector.extract_strided_slice %31 {offsets = [0, 48], sizes = [32, 16], strides = [1, 1]} : vector<32x96xf32> to vector<32x16xf32>
    %73 = vector.extract_strided_slice %31 {offsets = [0, 80], sizes = [32, 16], strides = [1, 1]} : vector<32x96xf32> to vector<32x16xf32>
    %cst_32 = arith.constant dense<0.000000e+00> : vector<32x32xf32>
    %74 = tpu.matmul %71, %72, %cst_32 {dimension_numbers = #tpu.dot_dimension_numbers<[1], [1], [0], [0], [0, 0, 1, 0], [], []>} : vector<32x16xf32>, vector<32x16xf32>, vector<32x32xf32> -> vector<32x32xf32>
    %cst_33 = arith.constant 2.500000e-01 : f32
    %75 = vector.broadcast %cst_33 : f32 to vector<32x32xf32>
    %76 = arith.mulf %74, %75 : vector<32x32xf32>
    %77 = vector.broadcast %33 : vector<1x32xf32> to vector<32x32xf32>
    %78 = arith.addf %76, %77 : vector<32x32xf32>
    %cst_34 = arith.constant dense<0xFF800000> : vector<32xf32>
    %79 = vector.multi_reduction <maximumf>, %78, %cst_34 [1] : vector<32x32xf32> to vector<32xf32>
    %80 = vector.shape_cast %79 : vector<32xf32> to vector<32x1xf32>
    %81 = vector.broadcast %80 : vector<32x1xf32> to vector<32x32xf32>
    %82 = arith.subf %78, %81 : vector<32x32xf32>
    %83 = math.exp %82 : vector<32x32xf32>
    %cst_35 = arith.constant dense<0.000000e+00> : vector<32xf32>
    %84 = vector.multi_reduction <add>, %83, %cst_35 [1] : vector<32x32xf32> to vector<32xf32>
    %85 = vector.shape_cast %84 : vector<32xf32> to vector<32x1xf32>
    %86 = tpu.reciprocal %85 {approx = true} : vector<32x1xf32> -> vector<32x1xf32>
    %87 = vector.broadcast %86 : vector<32x1xf32> to vector<32x32xf32>
    %88 = arith.mulf %83, %87 : vector<32x32xf32>
    %cst_36 = arith.constant dense<0.000000e+00> : vector<32x16xf32>
    %89 = tpu.matmul %88, %73, %cst_36 {dimension_numbers = #tpu.dot_dimension_numbers<[1], [0], [0], [1], [0, 0, 1, 1], [], []>} : vector<32x32xf32>, vector<32x16xf32>, vector<32x16xf32> -> vector<32x16xf32>
    %cst_37 = arith.constant 0.000000e+00 : f32
    %90 = vector.broadcast %cst_37 : f32 to vector<1x32xf32>
    %91 = arith.cmpf ogt, %35, %90 : vector<1x32xf32>
    %cst_38 = arith.constant 9.99999971E-10 : f32
    %92 = vector.shape_cast %91 : vector<1x32xi1> to vector<1x32xi1>
    %93 = vector.broadcast %92 : vector<1x32xi1> to vector<32x32xi1>
    %94 = vector.broadcast %cst_38 : f32 to vector<32x32xf32>
    %95 = arith.select %93, %94, %88 : vector<32x32xi1>, vector<32x32xf32>
    %96 = vector.extract_strided_slice %95 {offsets = [0, 0], sizes = [16, 16], strides = [1, 1]} : vector<32x32xf32> to vector<16x16xf32>
    %cst_39 = arith.constant dense<0.000000e+00> : vector<16xf32>
    %97 = vector.multi_reduction <add>, %96, %cst_39 [1] : vector<16x16xf32> to vector<16xf32>
    %98 = vector.shape_cast %97 : vector<16xf32> to vector<16x1xf32>
    %99 = vector.extract_strided_slice %95 {offsets = [16, 16], sizes = [16, 16], strides = [1, 1]} : vector<32x32xf32> to vector<16x16xf32>
    %cst_40 = arith.constant dense<0.000000e+00> : vector<16xf32>
    %100 = vector.multi_reduction <add>, %99, %cst_40 [1] : vector<16x16xf32> to vector<16xf32>
    %101 = vector.shape_cast %100 : vector<16xf32> to vector<16x1xf32>
    %102 = tpu.concatenate %98, %101 in 1 : vector<16x1xf32>, vector<16x1xf32> -> vector<16x2xf32>
    %c0_41 = arith.constant 0 : index
    %c1 = arith.constant 1 : index
    %c0_42 = arith.constant 0 : index
    %c0_43 = arith.constant 0 : index
    %103 = vector.load %arg14[%c0_41, %c1, %c0_42, %c0_43] : memref<1x2x16x2xf32, #tpu.memory_space<vmem>>, vector<1x1x16x2xf32>
    %104 = vector.shape_cast %103 : vector<1x1x16x2xf32> to vector<16x2xf32>
    %105 = vector.shape_cast %102 : vector<16x2xf32> to vector<1x1x16x2xf32>
    tpu.vector_store %arg14[%c0_41, %c1, %c0_42, %c0_43], %105 {strides = array<i32>} : memref<1x2x16x2xf32, #tpu.memory_space<vmem>>, vector<1x1x16x2xf32>,
    %106 = tpu.concatenate %54, %89 in 1 : vector<32x16xf32>, vector<32x16xf32> -> vector<32x32xf32>
    %c0_44 = arith.constant 0 : index
    %c0_45 = arith.constant 0 : index
    %107 = vector.load %arg7[%c0_44, %c0_45] : memref<32x32xf32, #tpu.memory_space<vmem>>, vector<32x32xf32>
    %cst_46 = arith.constant dense<0.000000e+00> : vector<32x32xf32>
    %108 = tpu.matmul %106, %107, %cst_46 {dimension_numbers = #tpu.dot_dimension_numbers<[1], [0], [0], [1], [0, 0, 1, 1], [], []>} : vector<32x32xf32>, vector<32x32xf32>, vector<32x32xf32> -> vector<32x32xf32>
    %c0_47 = arith.constant 0 : index
    %c0_48 = arith.constant 0 : index
    %109 = vector.load %arg8[%c0_47, %c0_48] : memref<1x32xf32, #tpu.memory_space<vmem>>, vector<1x32xf32>
    %110 = vector.broadcast %109 : vector<1x32xf32> to vector<32x32xf32>
    %111 = arith.addf %108, %110 : vector<32x32xf32>
    %112 = arith.addf %26, %111 : vector<32x32xf32>
    %113 = vector.extract_strided_slice %2 {offsets = [2, 0], sizes = [1, 32], strides = [1, 1]} : vector<6x32xf32> to vector<1x32xf32>
    %114 = vector.extract_strided_slice %2 {offsets = [3, 0], sizes = [1, 32], strides = [1, 1]} : vector<6x32xf32> to vector<1x32xf32>
    %cst_49 = arith.constant dense<0.000000e+00> : vector<32xf32>
    %115 = vector.multi_reduction <add>, %112, %cst_49 [1] : vector<32x32xf32> to vector<32xf32>
    %116 = vector.shape_cast %115 : vector<32xf32> to vector<32x1xf32>
    %cst_50 = arith.constant 3.200000e+01 : f32
    %117 = vector.broadcast %cst_50 : f32 to vector<32x1xf32>
    %118 = arith.divf %116, %117 : vector<32x1xf32>
    %119 = vector.broadcast %118 : vector<32x1xf32> to vector<32x32xf32>
    %120 = arith.subf %112, %119 : vector<32x32xf32>
    %121 = arith.mulf %120, %120 : vector<32x32xf32>
    %cst_51 = arith.constant dense<0.000000e+00> : vector<32xf32>
    %122 = vector.multi_reduction <add>, %121, %cst_51 [1] : vector<32x32xf32> to vector<32xf32>
    %123 = vector.shape_cast %122 : vector<32xf32> to vector<32x1xf32>
    %cst_52 = arith.constant 3.200000e+01 : f32
    %124 = vector.broadcast %cst_52 : f32 to vector<32x1xf32>
    %125 = arith.divf %123, %124 : vector<32x1xf32>
    %126 = vector.broadcast %118 : vector<32x1xf32> to vector<32x32xf32>
    %127 = arith.subf %112, %126 : vector<32x32xf32>
    %cst_53 = arith.constant 9.99999996E-13 : f32
    %128 = vector.broadcast %cst_53 : f32 to vector<32x1xf32>
    %129 = arith.addf %125, %128 : vector<32x1xf32>
    %130 = math.rsqrt %129 : vector<32x1xf32>
    %131 = vector.broadcast %130 : vector<32x1xf32> to vector<32x32xf32>
    %132 = arith.mulf %127, %131 : vector<32x32xf32>
    %133 = vector.broadcast %113 : vector<1x32xf32> to vector<32x32xf32>
    %134 = arith.mulf %132, %133 : vector<32x32xf32>
    %135 = vector.broadcast %114 : vector<1x32xf32> to vector<32x32xf32>
    %136 = arith.addf %134, %135 : vector<32x32xf32>
    %c0_54 = arith.constant 0 : index
    %c0_55 = arith.constant 0 : index
    %137 = vector.load %arg9[%c0_54, %c0_55] : memref<32x128xf32, #tpu.memory_space<vmem>>, vector<32x128xf32>
    %cst_56 = arith.constant dense<0.000000e+00> : vector<32x128xf32>
    %138 = tpu.matmul %136, %137, %cst_56 {dimension_numbers = #tpu.dot_dimension_numbers<[1], [0], [0], [1], [0, 0, 1, 1], [], []>} : vector<32x32xf32>, vector<32x128xf32>, vector<32x128xf32> -> vector<32x128xf32>
    %c0_57 = arith.constant 0 : index
    %c0_58 = arith.constant 0 : index
    %139 = vector.load %arg10[%c0_57, %c0_58] : memref<1x128xf32, #tpu.memory_space<vmem>>, vector<1x128xf32>
    %140 = vector.broadcast %139 : vector<1x128xf32> to vector<32x128xf32>
    %141 = arith.addf %138, %140 : vector<32x128xf32>
    %cst_59 = arith.constant 5.000000e-01 : f32
    %142 = vector.broadcast %cst_59 : f32 to vector<32x128xf32>
    %143 = arith.mulf %142, %141 : vector<32x128xf32>
    %cst_60 = arith.constant 4.471500e-02 : f32
    %144 = vector.broadcast %cst_60 : f32 to vector<32x128xf32>
    %145 = arith.mulf %144, %141 : vector<32x128xf32>
    %146 = arith.mulf %145, %141 : vector<32x128xf32>
    %147 = arith.mulf %146, %141 : vector<32x128xf32>
    %148 = arith.addf %141, %147 : vector<32x128xf32>
    %cst_61 = arith.constant 0.797884583 : f32
    %149 = vector.broadcast %cst_61 : f32 to vector<32x128xf32>
    %150 = arith.mulf %149, %148 : vector<32x128xf32>
    %151 = math.tanh %150 : vector<32x128xf32>
    %cst_62 = arith.constant 1.000000e+00 : f32
    %152 = vector.broadcast %cst_62 : f32 to vector<32x128xf32>
    %153 = arith.addf %152, %151 : vector<32x128xf32>
    %154 = arith.mulf %143, %153 : vector<32x128xf32>
    %c0_63 = arith.constant 0 : index
    %c0_64 = arith.constant 0 : index
    %155 = vector.load %arg11[%c0_63, %c0_64] : memref<128x32xf32, #tpu.memory_space<vmem>>, vector<128x32xf32>
    %cst_65 = arith.constant dense<0.000000e+00> : vector<32x32xf32>
    %156 = tpu.matmul %154, %155, %cst_65 {dimension_numbers = #tpu.dot_dimension_numbers<[1], [0], [0], [1], [0, 0, 1, 1], [], []>} : vector<32x128xf32>, vector<128x32xf32>, vector<32x32xf32> -> vector<32x32xf32>
    %c0_66 = arith.constant 0 : index
    %c0_67 = arith.constant 0 : index
    %157 = vector.load %arg12[%c0_66, %c0_67] : memref<1x32xf32, #tpu.memory_space<vmem>>, vector<1x32xf32>
    %158 = vector.broadcast %157 : vector<1x32xf32> to vector<32x32xf32>
    %159 = arith.addf %156, %158 : vector<32x32xf32>
    %160 = arith.addf %136, %159 : vector<32x32xf32>
    %161 = vector.extract_strided_slice %2 {offsets = [4, 0], sizes = [1, 32], strides = [1, 1]} : vector<6x32xf32> to vector<1x32xf32>
    %162 = vector.extract_strided_slice %2 {offsets = [5, 0], sizes = [1, 32], strides = [1, 1]} : vector<6x32xf32> to vector<1x32xf32>
    %cst_68 = arith.constant dense<0.000000e+00> : vector<32xf32>
    %163 = vector.multi_reduction <add>, %160, %cst_68 [1] : vector<32x32xf32> to vector<32xf32>
    %164 = vector.shape_cast %163 : vector<32xf32> to vector<32x1xf32>
    %cst_69 = arith.constant 3.200000e+01 : f32
    %165 = vector.broadcast %cst_69 : f32 to vector<32x1xf32>
    %166 = arith.divf %164, %165 : vector<32x1xf32>
    %167 = vector.broadcast %166 : vector<32x1xf32> to vector<32x32xf32>
    %168 = arith.subf %160, %167 : vector<32x32xf32>
    %169 = arith.mulf %168, %168 : vector<32x32xf32>
    %cst_70 = arith.constant dense<0.000000e+00> : vector<32xf32>
    %170 = vector.multi_reduction <add>, %169, %cst_70 [1] : vector<32x32xf32> to vector<32xf32>
    %171 = vector.shape_cast %170 : vector<32xf32> to vector<32x1xf32>
    %cst_71 = arith.constant 3.200000e+01 : f32
    %172 = vector.broadcast %cst_71 : f32 to vector<32x1xf32>
    %173 = arith.divf %171, %172 : vector<32x1xf32>
    %174 = vector.broadcast %166 : vector<32x1xf32> to vector<32x32xf32>
    %175 = arith.subf %160, %174 : vector<32x32xf32>
    %cst_72 = arith.constant 9.99999996E-13 : f32
    %176 = vector.broadcast %cst_72 : f32 to vector<32x1xf32>
    %177 = arith.addf %173, %176 : vector<32x1xf32>
    %178 = math.rsqrt %177 : vector<32x1xf32>
    %179 = vector.broadcast %178 : vector<32x1xf32> to vector<32x32xf32>
    %180 = arith.mulf %175, %179 : vector<32x32xf32>
    %181 = vector.broadcast %161 : vector<1x32xf32> to vector<32x32xf32>
    %182 = arith.mulf %180, %181 : vector<32x32xf32>
    %183 = vector.broadcast %162 : vector<1x32xf32> to vector<32x32xf32>
    %184 = arith.addf %182, %183 : vector<32x32xf32>
    %c0_73 = arith.constant 0 : index
    %c0_74 = arith.constant 0 : index
    %c0_75 = arith.constant 0 : index
    %185 = vector.load %arg13[%c0_73, %c0_74, %c0_75] : memref<1x32x32xf32, #tpu.memory_space<vmem>>, vector<1x32x32xf32>
    %186 = vector.shape_cast %185 : vector<1x32x32xf32> to vector<32x32xf32>
    %187 = vector.shape_cast %184 : vector<32x32xf32> to vector<1x32x32xf32>
    tpu.vector_store %arg13[%c0_73, %c0_74, %c0_75], %187 {strides = array<i32>} : memref<1x32x32xf32, #tpu.memory_space<vmem>>, vector<1x32x32xf32>,
    return
  }
  func.func @transform_0(%arg0: i32) -> (i32, i32, i32) {
    %c0_i32 = arith.constant 0 : i32
    %c0_i32_0 = arith.constant 0 : i32
    %c0_i32_1 = arith.constant 0 : i32
    return %arg0, %c0_i32, %c0_i32_0 : i32, i32, i32
  }
  func.func @transform_1(%arg0: i32) -> (i32, i32, i32) {
    %c0_i32 = arith.constant 0 : i32
    %c0_i32_0 = arith.constant 0 : i32
    %c0_i32_1 = arith.constant 0 : i32
    return %arg0, %c0_i32, %c0_i32_0 : i32, i32, i32
  }
  func.func @transform_2(%arg0: i32) -> (i32, i32, i32) {
    %c0_i32 = arith.constant 0 : i32
    %c0_i32_0 = arith.constant 0 : i32
    %c0_i32_1 = arith.constant 0 : i32
    return %arg0, %c0_i32, %c0_i32_0 : i32, i32, i32
  }
  func.func @transform_3(%arg0: i32) -> (i32, i32) {
    %c0_i32 = arith.constant 0 : i32
    %c0_i32_0 = arith.constant 0 : i32
    %c0_i32_1 = arith.constant 0 : i32
    return %c0_i32, %c0_i32_0 : i32, i32
  }
  func.func @transform_4(%arg0: i32) -> (i32, i32) {
    %c0_i32 = arith.constant 0 : i32
    %c0_i32_0 = arith.constant 0 : i32
    %c0_i32_1 = arith.constant 0 : i32
    return %c0_i32, %c0_i32_0 : i32, i32
  }
  func.func @transform_5(%arg0: i32) -> (i32, i32) {
    %c0_i32 = arith.constant 0 : i32
    %c0_i32_0 = arith.constant 0 : i32
    %c0_i32_1 = arith.constant 0 : i32
    return %c0_i32, %c0_i32_0 : i32, i32
  }
  func.func @transform_6(%arg0: i32) -> (i32, i32) {
    %c0_i32 = arith.constant 0 : i32
    %c0_i32_0 = arith.constant 0 : i32
    %c0_i32_1 = arith.constant 0 : i32
    return %c0_i32, %c0_i32_0 : i32, i32
  }
  func.func @transform_7(%arg0: i32) -> (i32, i32) {
    %c0_i32 = arith.constant 0 : i32
    %c0_i32_0 = arith.constant 0 : i32
    %c0_i32_1 = arith.constant 0 : i32
    return %c0_i32, %c0_i32_0 : i32, i32
  }
  func.func @transform_8(%arg0: i32) -> (i32, i32) {
    %c0_i32 = arith.constant 0 : i32
    %c0_i32_0 = arith.constant 0 : i32
    %c0_i32_1 = arith.constant 0 : i32
    return %c0_i32, %c0_i32_0 : i32, i32
  }
  func.func @transform_9(%arg0: i32) -> (i32, i32) {
    %c0_i32 = arith.constant 0 : i32
    %c0_i32_0 = arith.constant 0 : i32
    %c0_i32_1 = arith.constant 0 : i32
    return %c0_i32, %c0_i32_0 : i32, i32
  }
  func.func @transform_10(%arg0: i32) -> (i32, i32) {
    %c0_i32 = arith.constant 0 : i32
    %c0_i32_0 = arith.constant 0 : i32
    %c0_i32_1 = arith.constant 0 : i32
    return %c0_i32, %c0_i32_0 : i32, i32
  }
  func.func @transform_11(%arg0: i32) -> (i32, i32) {
    %c0_i32 = arith.constant 0 : i32
    %c0_i32_0 = arith.constant 0 : i32
    %c0_i32_1 = arith.constant 0 : i32
    return %c0_i32, %c0_i32_0 : i32, i32
  }
  func.func @transform_12(%arg0: i32) -> (i32, i32, i32) {
    %c0_i32 = arith.constant 0 : i32
    %c0_i32_0 = arith.constant 0 : i32
    %c0_i32_1 = arith.constant 0 : i32
    return %arg0, %c0_i32, %c0_i32_0 : i32, i32, i32
  }
  func.func @transform_13(%arg0: i32) -> (i32, i32, i32, i32) {
    %c0_i32 = arith.constant 0 : i32
    %c0_i32_0 = arith.constant 0 : i32
    %c0_i32_1 = arith.constant 0 : i32
    %c0_i32_2 = arith.constant 0 : i32
    return %arg0, %c0_i32, %c0_i32_0, %c0_i32_1 : i32, i32, i32, i32
  }
}

module attributes {stable_mosaic.version = 11 : i64} {
  func.func @_cossim_kernel(%arg0: i32, %arg1: memref<2x16x32xf32, #tpu.memory_space<vmem>>, %arg2: memref<2x16x1xf32, #tpu.memory_space<vmem>>, %arg3: memref<2x16x32xf32, #tpu.memory_space<vmem>>, %arg4: memref<2x16x1xf32, #tpu.memory_space<vmem>>, %arg5: memref<32x32xf32, #tpu.memory_space<vmem>>, %arg6: memref<1x32xf32, #tpu.memory_space<vmem>>, %arg7: memref<32x32xf32, #tpu.memory_space<vmem>>, %arg8: memref<1x32xf32, #tpu.memory_space<vmem>>, %arg9: memref<2x1xf32, #tpu.memory_space<vmem>>) attributes {dimension_semantics = [#tpu.dimension_semantics<arbitrary>], iteration_bounds = array<i64: 1>, scalar_prefetch = 0 : i64, scratch_operands = 0 : i64, tpu.core_type = #tpu.core_type<tc>, window_params = [{pipeline_mode = #tpu.pipeline_mode<synchronous>, transform_indices = @transform_0, window_bounds = array<i64: 2, 16, 32>}, {pipeline_mode = #tpu.pipeline_mode<synchronous>, transform_indices = @transform_1, window_bounds = array<i64: 2, 16, 1>}, {pipeline_mode = #tpu.pipeline_mode<synchronous>, transform_indices = @transform_2, window_bounds = array<i64: 2, 16, 32>}, {pipeline_mode = #tpu.pipeline_mode<synchronous>, transform_indices = @transform_3, window_bounds = array<i64: 2, 16, 1>}, {pipeline_mode = #tpu.pipeline_mode<synchronous>, transform_indices = @transform_4, window_bounds = array<i64: 32, 32>}, {pipeline_mode = #tpu.pipeline_mode<synchronous>, transform_indices = @transform_5, window_bounds = array<i64: 1, 32>}, {pipeline_mode = #tpu.pipeline_mode<synchronous>, transform_indices = @transform_6, window_bounds = array<i64: 32, 32>}, {pipeline_mode = #tpu.pipeline_mode<synchronous>, transform_indices = @transform_7, window_bounds = array<i64: 1, 32>}, {pipeline_mode = #tpu.pipeline_mode<synchronous>, transform_indices = @transform_8, window_bounds = array<i64: 2, 1>}]} {
    %c0 = arith.constant 0 : index
    %c0_0 = arith.constant 0 : index
    %0 = vector.load %arg5[%c0, %c0_0] : memref<32x32xf32, #tpu.memory_space<vmem>>, vector<32x32xf32>
    %c0_1 = arith.constant 0 : index
    %c0_2 = arith.constant 0 : index
    %1 = vector.load %arg6[%c0_1, %c0_2] : memref<1x32xf32, #tpu.memory_space<vmem>>, vector<1x32xf32>
    %c0_3 = arith.constant 0 : index
    %c0_4 = arith.constant 0 : index
    %2 = vector.load %arg7[%c0_3, %c0_4] : memref<32x32xf32, #tpu.memory_space<vmem>>, vector<32x32xf32>
    %c0_5 = arith.constant 0 : index
    %c0_6 = arith.constant 0 : index
    %3 = vector.load %arg8[%c0_5, %c0_6] : memref<1x32xf32, #tpu.memory_space<vmem>>, vector<1x32xf32>
    %c0_7 = arith.constant 0 : index
    %c0_8 = arith.constant 0 : index
    %c0_9 = arith.constant 0 : index
    %4 = vector.load %arg1[%c0_7, %c0_8, %c0_9] : memref<2x16x32xf32, #tpu.memory_space<vmem>>, vector<2x16x32xf32>
    %c0_10 = arith.constant 0 : index
    %c0_11 = arith.constant 0 : index
    %c0_12 = arith.constant 0 : index
    %5 = vector.load %arg3[%c0_10, %c0_11, %c0_12] : memref<2x16x32xf32, #tpu.memory_space<vmem>>, vector<2x16x32xf32>
    %c0_13 = arith.constant 0 : index
    %c0_14 = arith.constant 0 : index
    %c0_15 = arith.constant 0 : index
    %6 = vector.load %arg2[%c0_13, %c0_14, %c0_15] : memref<2x16x1xf32, #tpu.memory_space<vmem>>, vector<2x16x1xf32>
    %c0_16 = arith.constant 0 : index
    %c0_17 = arith.constant 0 : index
    %c0_18 = arith.constant 0 : index
    %7 = vector.load %arg4[%c0_16, %c0_17, %c0_18] : memref<2x16x1xf32, #tpu.memory_space<vmem>>, vector<2x16x1xf32>
    %8 = vector.shape_cast %4 : vector<2x16x32xf32> to vector<32x32xf32>
    %cst = arith.constant dense<0.000000e+00> : vector<32x32xf32>
    %9 = tpu.matmul %8, %0, %cst {dimension_numbers = #tpu.dot_dimension_numbers<[1], [0], [0], [1], [0, 0, 1, 1], [], []>} : vector<32x32xf32>, vector<32x32xf32>, vector<32x32xf32> -> vector<32x32xf32>
    %10 = vector.broadcast %1 : vector<1x32xf32> to vector<32x32xf32>
    %11 = arith.addf %9, %10 : vector<32x32xf32>
    %cst_19 = arith.constant 0.000000e+00 : f32
    %12 = vector.broadcast %cst_19 : f32 to vector<32x32xf32>
    %13 = arith.maximumf %11, %12 : vector<32x32xf32>
    %cst_20 = arith.constant dense<0.000000e+00> : vector<32x32xf32>
    %14 = tpu.matmul %13, %2, %cst_20 {dimension_numbers = #tpu.dot_dimension_numbers<[1], [0], [0], [1], [0, 0, 1, 1], [], []>} : vector<32x32xf32>, vector<32x32xf32>, vector<32x32xf32> -> vector<32x32xf32>
    %15 = vector.broadcast %3 : vector<1x32xf32> to vector<32x32xf32>
    %16 = arith.addf %14, %15 : vector<32x32xf32>
    %17 = vector.shape_cast %16 : vector<32x32xf32> to vector<2x16x32xf32>
    %cst_21 = arith.constant dense<0xFF800000> : vector<2x32xf32>
    %18 = vector.multi_reduction <maximumf>, %17, %cst_21 [1] : vector<2x16x32xf32> to vector<2x32xf32>
    %19 = vector.shape_cast %18 : vector<2x32xf32> to vector<2x1x32xf32>
    %20 = vector.broadcast %19 : vector<2x1x32xf32> to vector<2x16x32xf32>
    %21 = arith.subf %17, %20 : vector<2x16x32xf32>
    %22 = math.exp %21 : vector<2x16x32xf32>
    %cst_22 = arith.constant dense<0.000000e+00> : vector<2x32xf32>
    %23 = vector.multi_reduction <add>, %22, %cst_22 [1] : vector<2x16x32xf32> to vector<2x32xf32>
    %24 = vector.shape_cast %23 : vector<2x32xf32> to vector<2x1x32xf32>
    %25 = tpu.reciprocal %24 {approx = true} : vector<2x1x32xf32> -> vector<2x1x32xf32>
    %26 = vector.broadcast %25 : vector<2x1x32xf32> to vector<2x16x32xf32>
    %27 = arith.mulf %22, %26 : vector<2x16x32xf32>
    %28 = arith.mulf %4, %27 : vector<2x16x32xf32>
    %29 = vector.shape_cast %5 : vector<2x16x32xf32> to vector<32x32xf32>
    %cst_23 = arith.constant dense<0.000000e+00> : vector<32x32xf32>
    %30 = tpu.matmul %29, %0, %cst_23 {dimension_numbers = #tpu.dot_dimension_numbers<[1], [0], [0], [1], [0, 0, 1, 1], [], []>} : vector<32x32xf32>, vector<32x32xf32>, vector<32x32xf32> -> vector<32x32xf32>
    %31 = vector.broadcast %1 : vector<1x32xf32> to vector<32x32xf32>
    %32 = arith.addf %30, %31 : vector<32x32xf32>
    %cst_24 = arith.constant 0.000000e+00 : f32
    %33 = vector.broadcast %cst_24 : f32 to vector<32x32xf32>
    %34 = arith.maximumf %32, %33 : vector<32x32xf32>
    %cst_25 = arith.constant dense<0.000000e+00> : vector<32x32xf32>
    %35 = tpu.matmul %34, %2, %cst_25 {dimension_numbers = #tpu.dot_dimension_numbers<[1], [0], [0], [1], [0, 0, 1, 1], [], []>} : vector<32x32xf32>, vector<32x32xf32>, vector<32x32xf32> -> vector<32x32xf32>
    %36 = vector.broadcast %3 : vector<1x32xf32> to vector<32x32xf32>
    %37 = arith.addf %35, %36 : vector<32x32xf32>
    %38 = vector.shape_cast %37 : vector<32x32xf32> to vector<2x16x32xf32>
    %cst_26 = arith.constant dense<0xFF800000> : vector<2x32xf32>
    %39 = vector.multi_reduction <maximumf>, %38, %cst_26 [1] : vector<2x16x32xf32> to vector<2x32xf32>
    %40 = vector.shape_cast %39 : vector<2x32xf32> to vector<2x1x32xf32>
    %41 = vector.broadcast %40 : vector<2x1x32xf32> to vector<2x16x32xf32>
    %42 = arith.subf %38, %41 : vector<2x16x32xf32>
    %43 = math.exp %42 : vector<2x16x32xf32>
    %cst_27 = arith.constant dense<0.000000e+00> : vector<2x32xf32>
    %44 = vector.multi_reduction <add>, %43, %cst_27 [1] : vector<2x16x32xf32> to vector<2x32xf32>
    %45 = vector.shape_cast %44 : vector<2x32xf32> to vector<2x1x32xf32>
    %46 = tpu.reciprocal %45 {approx = true} : vector<2x1x32xf32> -> vector<2x1x32xf32>
    %47 = vector.broadcast %46 : vector<2x1x32xf32> to vector<2x16x32xf32>
    %48 = arith.mulf %43, %47 : vector<2x16x32xf32>
    %49 = arith.mulf %5, %48 : vector<2x16x32xf32>
    %50 = vector.broadcast %6 : vector<2x16x1xf32> to vector<2x16x32xf32>
    %51 = arith.mulf %28, %50 : vector<2x16x32xf32>
    %cst_28 = arith.constant dense<0.000000e+00> : vector<2x32xf32>
    %52 = vector.multi_reduction <add>, %51, %cst_28 [1] : vector<2x16x32xf32> to vector<2x32xf32>
    %cst_29 = arith.constant dense<0.000000e+00> : vector<2x1xf32>
    %53 = vector.multi_reduction <add>, %6, %cst_29 [1] : vector<2x16x1xf32> to vector<2x1xf32>
    %cst_30 = arith.constant 9.99999971E-10 : f32
    %54 = vector.broadcast %cst_30 : f32 to vector<2x1xf32>
    %55 = arith.maximumf %53, %54 : vector<2x1xf32>
    %56 = vector.broadcast %55 : vector<2x1xf32> to vector<2x32xf32>
    %57 = arith.divf %52, %56 : vector<2x32xf32>
    %58 = vector.broadcast %7 : vector<2x16x1xf32> to vector<2x16x32xf32>
    %59 = arith.mulf %49, %58 : vector<2x16x32xf32>
    %cst_31 = arith.constant dense<0.000000e+00> : vector<2x32xf32>
    %60 = vector.multi_reduction <add>, %59, %cst_31 [1] : vector<2x16x32xf32> to vector<2x32xf32>
    %cst_32 = arith.constant dense<0.000000e+00> : vector<2x1xf32>
    %61 = vector.multi_reduction <add>, %7, %cst_32 [1] : vector<2x16x1xf32> to vector<2x1xf32>
    %cst_33 = arith.constant 9.99999971E-10 : f32
    %62 = vector.broadcast %cst_33 : f32 to vector<2x1xf32>
    %63 = arith.maximumf %61, %62 : vector<2x1xf32>
    %64 = vector.broadcast %63 : vector<2x1xf32> to vector<2x32xf32>
    %65 = arith.divf %60, %64 : vector<2x32xf32>
    %66 = arith.mulf %57, %65 : vector<2x32xf32>
    %cst_34 = arith.constant dense<0.000000e+00> : vector<2xf32>
    %67 = vector.multi_reduction <add>, %66, %cst_34 [1] : vector<2x32xf32> to vector<2xf32>
    %68 = arith.mulf %57, %57 : vector<2x32xf32>
    %cst_35 = arith.constant dense<0.000000e+00> : vector<2xf32>
    %69 = vector.multi_reduction <add>, %68, %cst_35 [1] : vector<2x32xf32> to vector<2xf32>
    %70 = math.sqrt %69 : vector<2xf32>
    %71 = arith.mulf %65, %65 : vector<2x32xf32>
    %cst_36 = arith.constant dense<0.000000e+00> : vector<2xf32>
    %72 = vector.multi_reduction <add>, %71, %cst_36 [1] : vector<2x32xf32> to vector<2xf32>
    %73 = math.sqrt %72 : vector<2xf32>
    %74 = arith.mulf %70, %73 : vector<2xf32>
    %cst_37 = arith.constant 9.99999993E-9 : f32
    %75 = vector.broadcast %cst_37 : f32 to vector<2xf32>
    %76 = arith.maximumf %74, %75 : vector<2xf32>
    %77 = arith.divf %67, %76 : vector<2xf32>
    %78 = vector.shape_cast %77 : vector<2xf32> to vector<2x1xf32>
    %c0_38 = arith.constant 0 : index
    %c0_39 = arith.constant 0 : index
    %79 = vector.load %arg9[%c0_38, %c0_39] : memref<2x1xf32, #tpu.memory_space<vmem>>, vector<2x1xf32>
    tpu.vector_store %arg9[%c0_38, %c0_39], %78 {strides = array<i32>} : memref<2x1xf32, #tpu.memory_space<vmem>>, vector<2x1xf32>,
    return
  }
  func.func @transform_0(%arg0: i32) -> (i32, i32, i32) {
    %c0_i32 = arith.constant 0 : i32
    %c0_i32_0 = arith.constant 0 : i32
    %c0_i32_1 = arith.constant 0 : i32
    %c0_i32_2 = arith.constant 0 : i32
    return %c0_i32, %c0_i32_0, %c0_i32_1 : i32, i32, i32
  }
  func.func @transform_1(%arg0: i32) -> (i32, i32, i32) {
    %c0_i32 = arith.constant 0 : i32
    %c0_i32_0 = arith.constant 0 : i32
    %c0_i32_1 = arith.constant 0 : i32
    %c0_i32_2 = arith.constant 0 : i32
    return %c0_i32, %c0_i32_0, %c0_i32_1 : i32, i32, i32
  }
  func.func @transform_2(%arg0: i32) -> (i32, i32, i32) {
    %c0_i32 = arith.constant 0 : i32
    %c0_i32_0 = arith.constant 0 : i32
    %c0_i32_1 = arith.constant 0 : i32
    %c0_i32_2 = arith.constant 0 : i32
    return %c0_i32, %c0_i32_0, %c0_i32_1 : i32, i32, i32
  }
  func.func @transform_3(%arg0: i32) -> (i32, i32, i32) {
    %c0_i32 = arith.constant 0 : i32
    %c0_i32_0 = arith.constant 0 : i32
    %c0_i32_1 = arith.constant 0 : i32
    %c0_i32_2 = arith.constant 0 : i32
    return %c0_i32, %c0_i32_0, %c0_i32_1 : i32, i32, i32
  }
  func.func @transform_4(%arg0: i32) -> (i32, i32) {
    %c0_i32 = arith.constant 0 : i32
    %c0_i32_0 = arith.constant 0 : i32
    %c0_i32_1 = arith.constant 0 : i32
    return %c0_i32, %c0_i32_0 : i32, i32
  }
  func.func @transform_5(%arg0: i32) -> (i32, i32) {
    %c0_i32 = arith.constant 0 : i32
    %c0_i32_0 = arith.constant 0 : i32
    %c0_i32_1 = arith.constant 0 : i32
    return %c0_i32, %c0_i32_0 : i32, i32
  }
  func.func @transform_6(%arg0: i32) -> (i32, i32) {
    %c0_i32 = arith.constant 0 : i32
    %c0_i32_0 = arith.constant 0 : i32
    %c0_i32_1 = arith.constant 0 : i32
    return %c0_i32, %c0_i32_0 : i32, i32
  }
  func.func @transform_7(%arg0: i32) -> (i32, i32) {
    %c0_i32 = arith.constant 0 : i32
    %c0_i32_0 = arith.constant 0 : i32
    %c0_i32_1 = arith.constant 0 : i32
    return %c0_i32, %c0_i32_0 : i32, i32
  }
  func.func @transform_8(%arg0: i32) -> (i32, i32) {
    %c0_i32 = arith.constant 0 : i32
    %c0_i32_0 = arith.constant 0 : i32
    %c0_i32_1 = arith.constant 0 : i32
    return %c0_i32, %c0_i32_0 : i32, i32
  }
}

module attributes {stable_mosaic.version = 11 : i64} {
  func.func @_seqdiff_kernel(%arg0: i32, %arg1: memref<2x2xi32, #tpu.memory_space<smem>>, %arg2: memref<2x2xi32, #tpu.memory_space<smem>>, %arg3: memref<1x32x32xf32, #tpu.memory_space<vmem>>, %arg4: memref<1x32x1xf32, #tpu.memory_space<vmem>>, %arg5: memref<64x64xf32, #tpu.memory_space<vmem>>, %arg6: memref<16x64xf32, #tpu.memory_space<vmem>>, %arg7: memref<1x64xf32, #tpu.memory_space<vmem>>, %arg8: memref<64x64xf32, #tpu.memory_space<vmem>>, %arg9: memref<16x64xf32, #tpu.memory_space<vmem>>, %arg10: memref<1x64xf32, #tpu.memory_space<vmem>>, %arg11: memref<96x2xf32, #tpu.memory_space<vmem>>, %arg12: memref<1x2xf32, #tpu.memory_space<vmem>>, %arg13: memref<1x1x2xf32, #tpu.memory_space<vmem>>, %arg14: memref<1x32x32xf32, #tpu.memory_space<vmem>>) attributes {dimension_semantics = [#tpu.dimension_semantics<parallel>], iteration_bounds = array<i64: 2>, scalar_prefetch = 2 : i64, scratch_operands = 0 : i64, tpu.core_type = #tpu.core_type<tc>, window_params = [{transform_indices = @transform_0, window_bounds = array<i64: 1, 32, 32>}, {transform_indices = @transform_1, window_bounds = array<i64: 1, 32, 1>}, {pipeline_mode = #tpu.pipeline_mode<synchronous>, transform_indices = @transform_2, window_bounds = array<i64: 64, 64>}, {pipeline_mode = #tpu.pipeline_mode<synchronous>, transform_indices = @transform_3, window_bounds = array<i64: 16, 64>}, {pipeline_mode = #tpu.pipeline_mode<synchronous>, transform_indices = @transform_4, window_bounds = array<i64: 1, 64>}, {pipeline_mode = #tpu.pipeline_mode<synchronous>, transform_indices = @transform_5, window_bounds = array<i64: 64, 64>}, {pipeline_mode = #tpu.pipeline_mode<synchronous>, transform_indices = @transform_6, window_bounds = array<i64: 16, 64>}, {pipeline_mode = #tpu.pipeline_mode<synchronous>, transform_indices = @transform_7, window_bounds = array<i64: 1, 64>}, {pipeline_mode = #tpu.pipeline_mode<synchronous>, transform_indices = @transform_8, window_bounds = array<i64: 96, 2>}, {pipeline_mode = #tpu.pipeline_mode<synchronous>, transform_indices = @transform_9, window_bounds = array<i64: 1, 2>}, {transform_indices = @transform_10, window_bounds = array<i64: 1, 1, 2>}, {transform_indices = @transform_11, window_bounds = array<i64: 1, 32, 32>}]} {
    %c0 = arith.constant 0 : index
    %c0_0 = arith.constant 0 : index
    %c0_1 = arith.constant 0 : index
    %0 = vector.load %arg3[%c0, %c0_0, %c0_1] : memref<1x32x32xf32, #tpu.memory_space<vmem>>, vector<1x32x32xf32>
    %1 = vector.shape_cast %0 : vector<1x32x32xf32> to vector<32x32xf32>
    %c0_2 = arith.constant 0 : index
    %c0_3 = arith.constant 0 : index
    %c0_4 = arith.constant 0 : index
    %2 = vector.load %arg4[%c0_2, %c0_3, %c0_4] : memref<1x32x1xf32, #tpu.memory_space<vmem>>, vector<1x32x1xf32>
    %3 = vector.shape_cast %2 : vector<1x32x1xf32> to vector<32x1xf32>
    %4 = tpu.iota {dimensions = array<i32: 0>} : vector<32x1xi32>
    %c0_i32 = arith.constant 0 : i32
    %5 = vector.broadcast %c0_i32 : i32 to vector<32x1xi32>
    %6 = arith.cmpi slt, %4, %5 : vector<32x1xi32>
    %7 = arith.index_cast %arg0 : i32 to index
    %c0_5 = arith.constant 0 : index
    %8 = memref.load %arg1[%7, %c0_5] : memref<2x2xi32, #tpu.memory_space<smem>>
    %9 = arith.index_cast %arg0 : i32 to index
    %c0_6 = arith.constant 0 : index
    %10 = memref.load %arg2[%9, %c0_6] : memref<2x2xi32, #tpu.memory_space<smem>>
    %11 = vector.broadcast %8 : i32 to vector<32x1xi32>
    %12 = arith.cmpi sge, %4, %11 : vector<32x1xi32>
    %c8_i32 = arith.constant 8 : i32
    %13 = arith.addi %8, %c8_i32 : i32
    %14 = vector.broadcast %13 : i32 to vector<32x1xi32>
    %15 = arith.cmpi slt, %4, %14 : vector<32x1xi32>
    %16 = arith.andi %12, %15 : vector<32x1xi1>
    %17 = arith.ori %6, %16 : vector<32x1xi1>
    %c16_i32 = arith.constant 16 : i32
    %18 = arith.addi %c16_i32, %10 : i32
    %19 = vector.broadcast %18 : i32 to vector<32x1xi32>
    %20 = arith.cmpi sge, %4, %19 : vector<32x1xi32>
    %c16_i32_7 = arith.constant 16 : i32
    %21 = arith.addi %c16_i32_7, %10 : i32
    %c8_i32_8 = arith.constant 8 : i32
    %22 = arith.addi %21, %c8_i32_8 : i32
    %23 = vector.broadcast %22 : i32 to vector<32x1xi32>
    %24 = arith.cmpi slt, %4, %23 : vector<32x1xi32>
    %25 = arith.andi %20, %24 : vector<32x1xi1>
    %26 = arith.ori %17, %25 : vector<32x1xi1>
    %c0_9 = arith.constant 0 : index
    %27 = arith.index_cast %8 : i32 to index
    %c0_10 = arith.constant 0 : index
    %28 = vector.load %arg3[%c0_9, %27, %c0_10] : memref<1x32x32xf32, #tpu.memory_space<vmem>>, vector<1x8x32xf32>
    %29 = vector.shape_cast %28 : vector<1x8x32xf32> to vector<8x32xf32>
    %c0_11 = arith.constant 0 : index
    %30 = arith.index_cast %8 : i32 to index
    %c0_12 = arith.constant 0 : index
    %31 = vector.load %arg4[%c0_11, %30, %c0_12] : memref<1x32x1xf32, #tpu.memory_space<vmem>>, vector<1x8x1xf32>
    %32 = vector.shape_cast %31 : vector<1x8x1xf32> to vector<8x1xf32>
    %cst = arith.constant 0.000000e+00 : f32
    %33 = vector.broadcast %cst : f32 to vector<8x1xf32>
    %34 = arith.cmpf oeq, %32, %33 : vector<8x1xf32>
    %cst_13 = arith.constant 9.99999971E-10 : f32
    %35 = vector.shape_cast %34 : vector<8x1xi1> to vector<8x1xi1>
    %36 = vector.broadcast %35 : vector<8x1xi1> to vector<8x32xi1>
    %37 = vector.broadcast %cst_13 : f32 to vector<8x32xf32>
    %38 = arith.select %36, %37, %29 : vector<8x32xi1>, vector<8x32xf32>
    %c16_i32_14 = arith.constant 16 : i32
    %39 = arith.addi %c16_i32_14, %10 : i32
    %c0_15 = arith.constant 0 : index
    %40 = arith.index_cast %39 : i32 to index
    %c0_16 = arith.constant 0 : index
    %41 = vector.load %arg3[%c0_15, %40, %c0_16] : memref<1x32x32xf32, #tpu.memory_space<vmem>>, vector<1x8x32xf32>
    %42 = vector.shape_cast %41 : vector<1x8x32xf32> to vector<8x32xf32>
    %c16_i32_17 = arith.constant 16 : i32
    %43 = arith.addi %c16_i32_17, %10 : i32
    %c0_18 = arith.constant 0 : index
    %44 = arith.index_cast %43 : i32 to index
    %c0_19 = arith.constant 0 : index
    %45 = vector.load %arg4[%c0_18, %44, %c0_19] : memref<1x32x1xf32, #tpu.memory_space<vmem>>, vector<1x8x1xf32>
    %46 = vector.shape_cast %45 : vector<1x8x1xf32> to vector<8x1xf32>
    %cst_20 = arith.constant 0.000000e+00 : f32
    %47 = vector.broadcast %cst_20 : f32 to vector<8x1xf32>
    %48 = arith.cmpf oeq, %46, %47 : vector<8x1xf32>
    %cst_21 = arith.constant 9.99999971E-10 : f32
    %49 = vector.shape_cast %48 : vector<8x1xi1> to vector<8x1xi1>
    %50 = vector.broadcast %49 : vector<8x1xi1> to vector<8x32xi1>
    %51 = vector.broadcast %cst_21 : f32 to vector<8x32xf32>
    %52 = arith.select %50, %51, %42 : vector<8x32xi1>, vector<8x32xf32>
    %53 = tpu.concatenate %38, %52 in 1 : vector<8x32xf32>, vector<8x32xf32> -> vector<8x64xf32>
    %54 = arith.index_cast %arg0 : i32 to index
    %c1 = arith.constant 1 : index
    %55 = memref.load %arg1[%54, %c1] : memref<2x2xi32, #tpu.memory_space<smem>>
    %56 = arith.index_cast %arg0 : i32 to index
    %c1_22 = arith.constant 1 : index
    %57 = memref.load %arg2[%56, %c1_22] : memref<2x2xi32, #tpu.memory_space<smem>>
    %58 = vector.broadcast %55 : i32 to vector<32x1xi32>
    %59 = arith.cmpi sge, %4, %58 : vector<32x1xi32>
    %c8_i32_23 = arith.constant 8 : i32
    %60 = arith.addi %55, %c8_i32_23 : i32
    %61 = vector.broadcast %60 : i32 to vector<32x1xi32>
    %62 = arith.cmpi slt, %4, %61 : vector<32x1xi32>
    %63 = arith.andi %59, %62 : vector<32x1xi1>
    %64 = arith.ori %26, %63 : vector<32x1xi1>
    %c16_i32_24 = arith.constant 16 : i32
    %65 = arith.addi %c16_i32_24, %57 : i32
    %66 = vector.broadcast %65 : i32 to vector<32x1xi32>
    %67 = arith.cmpi sge, %4, %66 : vector<32x1xi32>
    %c16_i32_25 = arith.constant 16 : i32
    %68 = arith.addi %c16_i32_25, %57 : i32
    %c8_i32_26 = arith.constant 8 : i32
    %69 = arith.addi %68, %c8_i32_26 : i32
    %70 = vector.broadcast %69 : i32 to vector<32x1xi32>
    %71 = arith.cmpi slt, %4, %70 : vector<32x1xi32>
    %72 = arith.andi %67, %71 : vector<32x1xi1>
    %73 = arith.ori %64, %72 : vector<32x1xi1>
    %c0_27 = arith.constant 0 : index
    %74 = arith.index_cast %55 : i32 to index
    %c0_28 = arith.constant 0 : index
    %75 = vector.load %arg3[%c0_27, %74, %c0_28] : memref<1x32x32xf32, #tpu.memory_space<vmem>>, vector<1x8x32xf32>
    %76 = vector.shape_cast %75 : vector<1x8x32xf32> to vector<8x32xf32>
    %c0_29 = arith.constant 0 : index
    %77 = arith.index_cast %55 : i32 to index
    %c0_30 = arith.constant 0 : index
    %78 = vector.load %arg4[%c0_29, %77, %c0_30] : memref<1x32x1xf32, #tpu.memory_space<vmem>>, vector<1x8x1xf32>
    %79 = vector.shape_cast %78 : vector<1x8x1xf32> to vector<8x1xf32>
    %cst_31 = arith.constant 0.000000e+00 : f32
    %80 = vector.broadcast %cst_31 : f32 to vector<8x1xf32>
    %81 = arith.cmpf oeq, %79, %80 : vector<8x1xf32>
    %cst_32 = arith.constant 9.99999971E-10 : f32
    %82 = vector.shape_cast %81 : vector<8x1xi1> to vector<8x1xi1>
    %83 = vector.broadcast %82 : vector<8x1xi1> to vector<8x32xi1>
    %84 = vector.broadcast %cst_32 : f32 to vector<8x32xf32>
    %85 = arith.select %83, %84, %76 : vector<8x32xi1>, vector<8x32xf32>
    %c16_i32_33 = arith.constant 16 : i32
    %86 = arith.addi %c16_i32_33, %57 : i32
    %c0_34 = arith.constant 0 : index
    %87 = arith.index_cast %86 : i32 to index
    %c0_35 = arith.constant 0 : index
    %88 = vector.load %arg3[%c0_34, %87, %c0_35] : memref<1x32x32xf32, #tpu.memory_space<vmem>>, vector<1x8x32xf32>
    %89 = vector.shape_cast %88 : vector<1x8x32xf32> to vector<8x32xf32>
    %c16_i32_36 = arith.constant 16 : i32
    %90 = arith.addi %c16_i32_36, %57 : i32
    %c0_37 = arith.constant 0 : index
    %91 = arith.index_cast %90 : i32 to index
    %c0_38 = arith.constant 0 : index
    %92 = vector.load %arg4[%c0_37, %91, %c0_38] : memref<1x32x1xf32, #tpu.memory_space<vmem>>, vector<1x8x1xf32>
    %93 = vector.shape_cast %92 : vector<1x8x1xf32> to vector<8x1xf32>
    %cst_39 = arith.constant 0.000000e+00 : f32
    %94 = vector.broadcast %cst_39 : f32 to vector<8x1xf32>
    %95 = arith.cmpf oeq, %93, %94 : vector<8x1xf32>
    %cst_40 = arith.constant 9.99999971E-10 : f32
    %96 = vector.shape_cast %95 : vector<8x1xi1> to vector<8x1xi1>
    %97 = vector.broadcast %96 : vector<8x1xi1> to vector<8x32xi1>
    %98 = vector.broadcast %cst_40 : f32 to vector<8x32xf32>
    %99 = arith.select %97, %98, %89 : vector<8x32xi1>, vector<8x32xf32>
    %100 = tpu.concatenate %85, %99 in 1 : vector<8x32xf32>, vector<8x32xf32> -> vector<8x64xf32>
    %101 = tpu.concatenate %53, %100 in 0 : vector<8x64xf32>, vector<8x64xf32> -> vector<16x64xf32>
    %cst_41 = arith.constant 0.000000e+00 : f32
    %102 = vector.broadcast %cst_41 : f32 to vector<32x1xf32>
    %103 = arith.cmpf oeq, %3, %102 : vector<32x1xf32>
    %104 = arith.andi %73, %103 : vector<32x1xi1>
    %cst_42 = arith.constant 9.99999971E-10 : f32
    %105 = vector.shape_cast %104 : vector<32x1xi1> to vector<32x1xi1>
    %106 = vector.broadcast %105 : vector<32x1xi1> to vector<32x32xi1>
    %107 = vector.broadcast %cst_42 : f32 to vector<32x32xf32>
    %108 = arith.select %106, %107, %1 : vector<32x32xi1>, vector<32x32xf32>
    %c0_43 = arith.constant 0 : index
    %c0_44 = arith.constant 0 : index
    %c0_45 = arith.constant 0 : index
    %109 = vector.load %arg14[%c0_43, %c0_44, %c0_45] : memref<1x32x32xf32, #tpu.memory_space<vmem>>, vector<1x32x32xf32>
    %110 = vector.shape_cast %109 : vector<1x32x32xf32> to vector<32x32xf32>
    %111 = vector.shape_cast %108 : vector<32x32xf32> to vector<1x32x32xf32>
    tpu.vector_store %arg14[%c0_43, %c0_44, %c0_45], %111 {strides = array<i32>} : memref<1x32x32xf32, #tpu.memory_space<vmem>>, vector<1x32x32xf32>,
    %cst_46 = arith.constant dense<0.000000e+00> : vector<32xf32>
    %112 = vector.multi_reduction <add>, %108, %cst_46 [0] : vector<32x32xf32> to vector<32xf32>
    %113 = vector.shape_cast %112 : vector<32xf32> to vector<1x32xf32>
    %cst_47 = arith.constant 3.200000e+01 : f32
    %114 = vector.broadcast %cst_47 : f32 to vector<1x32xf32>
    %115 = arith.divf %113, %114 : vector<1x32xf32>
    %c0_48 = arith.constant 0 : index
    %c0_49 = arith.constant 0 : index
    %116 = vector.load %arg5[%c0_48, %c0_49] : memref<64x64xf32, #tpu.memory_space<vmem>>, vector<64x64xf32>
    %cst_50 = arith.constant dense<0.000000e+00> : vector<16x64xf32>
    %117 = tpu.matmul %101, %116, %cst_50 {dimension_numbers = #tpu.dot_dimension_numbers<[1], [0], [0], [1], [0, 0, 1, 1], [], []>} : vector<16x64xf32>, vector<64x64xf32>, vector<16x64xf32> -> vector<16x64xf32>
    %c0_51 = arith.constant 0 : index
    %c0_52 = arith.constant 0 : index
    %118 = vector.load %arg7[%c0_51, %c0_52] : memref<1x64xf32, #tpu.memory_space<vmem>>, vector<1x64xf32>
    %119 = vector.broadcast %118 : vector<1x64xf32> to vector<16x64xf32>
    %120 = arith.addf %117, %119 : vector<16x64xf32>
    %121 = vector.shape_cast %120 : vector<16x64xf32> to vector<2x8x64xf32>
    %c0_53 = arith.constant 0 : index
    %c0_54 = arith.constant 0 : index
    %122 = vector.load %arg8[%c0_53, %c0_54] : memref<64x64xf32, #tpu.memory_space<vmem>>, vector<64x64xf32>
    %cst_55 = arith.constant dense<0.000000e+00> : vector<16x64xf32>
    %123 = tpu.matmul %101, %122, %cst_55 {dimension_numbers = #tpu.dot_dimension_numbers<[1], [0], [0], [1], [0, 0, 1, 1], [], []>} : vector<16x64xf32>, vector<64x64xf32>, vector<16x64xf32> -> vector<16x64xf32>
    %c0_56 = arith.constant 0 : index
    %c0_57 = arith.constant 0 : index
    %124 = vector.load %arg10[%c0_56, %c0_57] : memref<1x64xf32, #tpu.memory_space<vmem>>, vector<1x64xf32>
    %125 = vector.broadcast %124 : vector<1x64xf32> to vector<16x64xf32>
    %126 = arith.addf %123, %125 : vector<16x64xf32>
    %127 = vector.shape_cast %126 : vector<16x64xf32> to vector<2x8x64xf32>
    %c0_58 = arith.constant 0 : index
    %c0_59 = arith.constant 0 : index
    %128 = vector.load %arg6[%c0_58, %c0_59] : memref<16x64xf32, #tpu.memory_space<vmem>>, vector<16x64xf32>
    %c0_60 = arith.constant 0 : index
    %c0_61 = arith.constant 0 : index
    %129 = vector.load %arg9[%c0_60, %c0_61] : memref<16x64xf32, #tpu.memory_space<vmem>>, vector<16x64xf32>
    %cst_62 = arith.constant 0.000000e+00 : f32
    %130 = vector.broadcast %cst_62 : f32 to vector<2x16xf32>
    %cst_63 = arith.constant 0.000000e+00 : f32
    %131 = vector.broadcast %cst_63 : f32 to vector<2x16xf32>
    %cst_64 = arith.constant 0.000000e+00 : f32
    %132 = vector.broadcast %cst_64 : f32 to vector<2x16xf32>
    %133 = vector.extract_strided_slice %121 {offsets = [0, 0, 0], sizes = [2, 1, 64], strides = [1, 1, 1]} : vector<2x8x64xf32> to vector<2x1x64xf32>
    %134 = vector.shape_cast %133 : vector<2x1x64xf32> to vector<2x64xf32>
    %cst_65 = arith.constant dense<0.000000e+00> : vector<2x64xf32>
    %135 = tpu.matmul %130, %128, %cst_65 {dimension_numbers = #tpu.dot_dimension_numbers<[1], [0], [0], [1], [0, 0, 1, 1], [], []>} : vector<2x16xf32>, vector<16x64xf32>, vector<2x64xf32> -> vector<2x64xf32>
    %136 = arith.addf %134, %135 : vector<2x64xf32>
    %137 = vector.extract_strided_slice %136 {offsets = [0, 0], sizes = [2, 16], strides = [1, 1]} : vector<2x64xf32> to vector<2x16xf32>
    %138 = arith.negf %137 : vector<2x16xf32>
    %139 = math.exp %138 : vector<2x16xf32>
    %cst_66 = arith.constant 1.000000e+00 : f32
    %140 = vector.broadcast %cst_66 : f32 to vector<2x16xf32>
    %141 = arith.addf %140, %139 : vector<2x16xf32>
    %142 = arith.divf %140, %141 : vector<2x16xf32>
    %143 = vector.extract_strided_slice %136 {offsets = [0, 16], sizes = [2, 16], strides = [1, 1]} : vector<2x64xf32> to vector<2x16xf32>
    %144 = arith.negf %143 : vector<2x16xf32>
    %145 = math.exp %144 : vector<2x16xf32>
    %cst_67 = arith.constant 1.000000e+00 : f32
    %146 = vector.broadcast %cst_67 : f32 to vector<2x16xf32>
    %147 = arith.addf %146, %145 : vector<2x16xf32>
    %148 = arith.divf %146, %147 : vector<2x16xf32>
    %149 = vector.extract_strided_slice %136 {offsets = [0, 32], sizes = [2, 16], strides = [1, 1]} : vector<2x64xf32> to vector<2x16xf32>
    %150 = math.tanh %149 : vector<2x16xf32>
    %151 = vector.extract_strided_slice %136 {offsets = [0, 48], sizes = [2, 16], strides = [1, 1]} : vector<2x64xf32> to vector<2x16xf32>
    %152 = arith.negf %151 : vector<2x16xf32>
    %153 = math.exp %152 : vector<2x16xf32>
    %cst_68 = arith.constant 1.000000e+00 : f32
    %154 = vector.broadcast %cst_68 : f32 to vector<2x16xf32>
    %155 = arith.addf %154, %153 : vector<2x16xf32>
    %156 = arith.divf %154, %155 : vector<2x16xf32>
    %157 = arith.mulf %148, %131 : vector<2x16xf32>
    %158 = arith.mulf %142, %150 : vector<2x16xf32>
    %159 = arith.addf %157, %158 : vector<2x16xf32>
    %160 = math.tanh %159 : vector<2x16xf32>
    %161 = arith.mulf %156, %160 : vector<2x16xf32>
    %162 = arith.addf %132, %161 : vector<2x16xf32>
    %163 = vector.extract_strided_slice %121 {offsets = [0, 1, 0], sizes = [2, 1, 64], strides = [1, 1, 1]} : vector<2x8x64xf32> to vector<2x1x64xf32>
    %164 = vector.shape_cast %163 : vector<2x1x64xf32> to vector<2x64xf32>
    %cst_69 = arith.constant dense<0.000000e+00> : vector<2x64xf32>
    %165 = tpu.matmul %161, %128, %cst_69 {dimension_numbers = #tpu.dot_dimension_numbers<[1], [0], [0], [1], [0, 0, 1, 1], [], []>} : vector<2x16xf32>, vector<16x64xf32>, vector<2x64xf32> -> vector<2x64xf32>
    %166 = arith.addf %164, %165 : vector<2x64xf32>
    %167 = vector.extract_strided_slice %166 {offsets = [0, 0], sizes = [2, 16], strides = [1, 1]} : vector<2x64xf32> to vector<2x16xf32>
    %168 = arith.negf %167 : vector<2x16xf32>
    %169 = math.exp %168 : vector<2x16xf32>
    %cst_70 = arith.constant 1.000000e+00 : f32
    %170 = vector.broadcast %cst_70 : f32 to vector<2x16xf32>
    %171 = arith.addf %170, %169 : vector<2x16xf32>
    %172 = arith.divf %170, %171 : vector<2x16xf32>
    %173 = vector.extract_strided_slice %166 {offsets = [0, 16], sizes = [2, 16], strides = [1, 1]} : vector<2x64xf32> to vector<2x16xf32>
    %174 = arith.negf %173 : vector<2x16xf32>
    %175 = math.exp %174 : vector<2x16xf32>
    %cst_71 = arith.constant 1.000000e+00 : f32
    %176 = vector.broadcast %cst_71 : f32 to vector<2x16xf32>
    %177 = arith.addf %176, %175 : vector<2x16xf32>
    %178 = arith.divf %176, %177 : vector<2x16xf32>
    %179 = vector.extract_strided_slice %166 {offsets = [0, 32], sizes = [2, 16], strides = [1, 1]} : vector<2x64xf32> to vector<2x16xf32>
    %180 = math.tanh %179 : vector<2x16xf32>
    %181 = vector.extract_strided_slice %166 {offsets = [0, 48], sizes = [2, 16], strides = [1, 1]} : vector<2x64xf32> to vector<2x16xf32>
    %182 = arith.negf %181 : vector<2x16xf32>
    %183 = math.exp %182 : vector<2x16xf32>
    %cst_72 = arith.constant 1.000000e+00 : f32
    %184 = vector.broadcast %cst_72 : f32 to vector<2x16xf32>
    %185 = arith.addf %184, %183 : vector<2x16xf32>
    %186 = arith.divf %184, %185 : vector<2x16xf32>
    %187 = arith.mulf %178, %159 : vector<2x16xf32>
    %188 = arith.mulf %172, %180 : vector<2x16xf32>
    %189 = arith.addf %187, %188 : vector<2x16xf32>
    %190 = math.tanh %189 : vector<2x16xf32>
    %191 = arith.mulf %186, %190 : vector<2x16xf32>
    %192 = arith.addf %162, %191 : vector<2x16xf32>
    %193 = vector.extract_strided_slice %121 {offsets = [0, 2, 0], sizes = [2, 1, 64], strides = [1, 1, 1]} : vector<2x8x64xf32> to vector<2x1x64xf32>
    %194 = vector.shape_cast %193 : vector<2x1x64xf32> to vector<2x64xf32>
    %cst_73 = arith.constant dense<0.000000e+00> : vector<2x64xf32>
    %195 = tpu.matmul %191, %128, %cst_73 {dimension_numbers = #tpu.dot_dimension_numbers<[1], [0], [0], [1], [0, 0, 1, 1], [], []>} : vector<2x16xf32>, vector<16x64xf32>, vector<2x64xf32> -> vector<2x64xf32>
    %196 = arith.addf %194, %195 : vector<2x64xf32>
    %197 = vector.extract_strided_slice %196 {offsets = [0, 0], sizes = [2, 16], strides = [1, 1]} : vector<2x64xf32> to vector<2x16xf32>
    %198 = arith.negf %197 : vector<2x16xf32>
    %199 = math.exp %198 : vector<2x16xf32>
    %cst_74 = arith.constant 1.000000e+00 : f32
    %200 = vector.broadcast %cst_74 : f32 to vector<2x16xf32>
    %201 = arith.addf %200, %199 : vector<2x16xf32>
    %202 = arith.divf %200, %201 : vector<2x16xf32>
    %203 = vector.extract_strided_slice %196 {offsets = [0, 16], sizes = [2, 16], strides = [1, 1]} : vector<2x64xf32> to vector<2x16xf32>
    %204 = arith.negf %203 : vector<2x16xf32>
    %205 = math.exp %204 : vector<2x16xf32>
    %cst_75 = arith.constant 1.000000e+00 : f32
    %206 = vector.broadcast %cst_75 : f32 to vector<2x16xf32>
    %207 = arith.addf %206, %205 : vector<2x16xf32>
    %208 = arith.divf %206, %207 : vector<2x16xf32>
    %209 = vector.extract_strided_slice %196 {offsets = [0, 32], sizes = [2, 16], strides = [1, 1]} : vector<2x64xf32> to vector<2x16xf32>
    %210 = math.tanh %209 : vector<2x16xf32>
    %211 = vector.extract_strided_slice %196 {offsets = [0, 48], sizes = [2, 16], strides = [1, 1]} : vector<2x64xf32> to vector<2x16xf32>
    %212 = arith.negf %211 : vector<2x16xf32>
    %213 = math.exp %212 : vector<2x16xf32>
    %cst_76 = arith.constant 1.000000e+00 : f32
    %214 = vector.broadcast %cst_76 : f32 to vector<2x16xf32>
    %215 = arith.addf %214, %213 : vector<2x16xf32>
    %216 = arith.divf %214, %215 : vector<2x16xf32>
    %217 = arith.mulf %208, %189 : vector<2x16xf32>
    %218 = arith.mulf %202, %210 : vector<2x16xf32>
    %219 = arith.addf %217, %218 : vector<2x16xf32>
    %220 = math.tanh %219 : vector<2x16xf32>
    %221 = arith.mulf %216, %220 : vector<2x16xf32>
    %222 = arith.addf %192, %221 : vector<2x16xf32>
    %223 = vector.extract_strided_slice %121 {offsets = [0, 3, 0], sizes = [2, 1, 64], strides = [1, 1, 1]} : vector<2x8x64xf32> to vector<2x1x64xf32>
    %224 = vector.shape_cast %223 : vector<2x1x64xf32> to vector<2x64xf32>
    %cst_77 = arith.constant dense<0.000000e+00> : vector<2x64xf32>
    %225 = tpu.matmul %221, %128, %cst_77 {dimension_numbers = #tpu.dot_dimension_numbers<[1], [0], [0], [1], [0, 0, 1, 1], [], []>} : vector<2x16xf32>, vector<16x64xf32>, vector<2x64xf32> -> vector<2x64xf32>
    %226 = arith.addf %224, %225 : vector<2x64xf32>
    %227 = vector.extract_strided_slice %226 {offsets = [0, 0], sizes = [2, 16], strides = [1, 1]} : vector<2x64xf32> to vector<2x16xf32>
    %228 = arith.negf %227 : vector<2x16xf32>
    %229 = math.exp %228 : vector<2x16xf32>
    %cst_78 = arith.constant 1.000000e+00 : f32
    %230 = vector.broadcast %cst_78 : f32 to vector<2x16xf32>
    %231 = arith.addf %230, %229 : vector<2x16xf32>
    %232 = arith.divf %230, %231 : vector<2x16xf32>
    %233 = vector.extract_strided_slice %226 {offsets = [0, 16], sizes = [2, 16], strides = [1, 1]} : vector<2x64xf32> to vector<2x16xf32>
    %234 = arith.negf %233 : vector<2x16xf32>
    %235 = math.exp %234 : vector<2x16xf32>
    %cst_79 = arith.constant 1.000000e+00 : f32
    %236 = vector.broadcast %cst_79 : f32 to vector<2x16xf32>
    %237 = arith.addf %236, %235 : vector<2x16xf32>
    %238 = arith.divf %236, %237 : vector<2x16xf32>
    %239 = vector.extract_strided_slice %226 {offsets = [0, 32], sizes = [2, 16], strides = [1, 1]} : vector<2x64xf32> to vector<2x16xf32>
    %240 = math.tanh %239 : vector<2x16xf32>
    %241 = vector.extract_strided_slice %226 {offsets = [0, 48], sizes = [2, 16], strides = [1, 1]} : vector<2x64xf32> to vector<2x16xf32>
    %242 = arith.negf %241 : vector<2x16xf32>
    %243 = math.exp %242 : vector<2x16xf32>
    %cst_80 = arith.constant 1.000000e+00 : f32
    %244 = vector.broadcast %cst_80 : f32 to vector<2x16xf32>
    %245 = arith.addf %244, %243 : vector<2x16xf32>
    %246 = arith.divf %244, %245 : vector<2x16xf32>
    %247 = arith.mulf %238, %219 : vector<2x16xf32>
    %248 = arith.mulf %232, %240 : vector<2x16xf32>
    %249 = arith.addf %247, %248 : vector<2x16xf32>
    %250 = math.tanh %249 : vector<2x16xf32>
    %251 = arith.mulf %246, %250 : vector<2x16xf32>
    %252 = arith.addf %222, %251 : vector<2x16xf32>
    %253 = vector.extract_strided_slice %121 {offsets = [0, 4, 0], sizes = [2, 1, 64], strides = [1, 1, 1]} : vector<2x8x64xf32> to vector<2x1x64xf32>
    %254 = vector.shape_cast %253 : vector<2x1x64xf32> to vector<2x64xf32>
    %cst_81 = arith.constant dense<0.000000e+00> : vector<2x64xf32>
    %255 = tpu.matmul %251, %128, %cst_81 {dimension_numbers = #tpu.dot_dimension_numbers<[1], [0], [0], [1], [0, 0, 1, 1], [], []>} : vector<2x16xf32>, vector<16x64xf32>, vector<2x64xf32> -> vector<2x64xf32>
    %256 = arith.addf %254, %255 : vector<2x64xf32>
    %257 = vector.extract_strided_slice %256 {offsets = [0, 0], sizes = [2, 16], strides = [1, 1]} : vector<2x64xf32> to vector<2x16xf32>
    %258 = arith.negf %257 : vector<2x16xf32>
    %259 = math.exp %258 : vector<2x16xf32>
    %cst_82 = arith.constant 1.000000e+00 : f32
    %260 = vector.broadcast %cst_82 : f32 to vector<2x16xf32>
    %261 = arith.addf %260, %259 : vector<2x16xf32>
    %262 = arith.divf %260, %261 : vector<2x16xf32>
    %263 = vector.extract_strided_slice %256 {offsets = [0, 16], sizes = [2, 16], strides = [1, 1]} : vector<2x64xf32> to vector<2x16xf32>
    %264 = arith.negf %263 : vector<2x16xf32>
    %265 = math.exp %264 : vector<2x16xf32>
    %cst_83 = arith.constant 1.000000e+00 : f32
    %266 = vector.broadcast %cst_83 : f32 to vector<2x16xf32>
    %267 = arith.addf %266, %265 : vector<2x16xf32>
    %268 = arith.divf %266, %267 : vector<2x16xf32>
    %269 = vector.extract_strided_slice %256 {offsets = [0, 32], sizes = [2, 16], strides = [1, 1]} : vector<2x64xf32> to vector<2x16xf32>
    %270 = math.tanh %269 : vector<2x16xf32>
    %271 = vector.extract_strided_slice %256 {offsets = [0, 48], sizes = [2, 16], strides = [1, 1]} : vector<2x64xf32> to vector<2x16xf32>
    %272 = arith.negf %271 : vector<2x16xf32>
    %273 = math.exp %272 : vector<2x16xf32>
    %cst_84 = arith.constant 1.000000e+00 : f32
    %274 = vector.broadcast %cst_84 : f32 to vector<2x16xf32>
    %275 = arith.addf %274, %273 : vector<2x16xf32>
    %276 = arith.divf %274, %275 : vector<2x16xf32>
    %277 = arith.mulf %268, %249 : vector<2x16xf32>
    %278 = arith.mulf %262, %270 : vector<2x16xf32>
    %279 = arith.addf %277, %278 : vector<2x16xf32>
    %280 = math.tanh %279 : vector<2x16xf32>
    %281 = arith.mulf %276, %280 : vector<2x16xf32>
    %282 = arith.addf %252, %281 : vector<2x16xf32>
    %283 = vector.extract_strided_slice %121 {offsets = [0, 5, 0], sizes = [2, 1, 64], strides = [1, 1, 1]} : vector<2x8x64xf32> to vector<2x1x64xf32>
    %284 = vector.shape_cast %283 : vector<2x1x64xf32> to vector<2x64xf32>
    %cst_85 = arith.constant dense<0.000000e+00> : vector<2x64xf32>
    %285 = tpu.matmul %281, %128, %cst_85 {dimension_numbers = #tpu.dot_dimension_numbers<[1], [0], [0], [1], [0, 0, 1, 1], [], []>} : vector<2x16xf32>, vector<16x64xf32>, vector<2x64xf32> -> vector<2x64xf32>
    %286 = arith.addf %284, %285 : vector<2x64xf32>
    %287 = vector.extract_strided_slice %286 {offsets = [0, 0], sizes = [2, 16], strides = [1, 1]} : vector<2x64xf32> to vector<2x16xf32>
    %288 = arith.negf %287 : vector<2x16xf32>
    %289 = math.exp %288 : vector<2x16xf32>
    %cst_86 = arith.constant 1.000000e+00 : f32
    %290 = vector.broadcast %cst_86 : f32 to vector<2x16xf32>
    %291 = arith.addf %290, %289 : vector<2x16xf32>
    %292 = arith.divf %290, %291 : vector<2x16xf32>
    %293 = vector.extract_strided_slice %286 {offsets = [0, 16], sizes = [2, 16], strides = [1, 1]} : vector<2x64xf32> to vector<2x16xf32>
    %294 = arith.negf %293 : vector<2x16xf32>
    %295 = math.exp %294 : vector<2x16xf32>
    %cst_87 = arith.constant 1.000000e+00 : f32
    %296 = vector.broadcast %cst_87 : f32 to vector<2x16xf32>
    %297 = arith.addf %296, %295 : vector<2x16xf32>
    %298 = arith.divf %296, %297 : vector<2x16xf32>
    %299 = vector.extract_strided_slice %286 {offsets = [0, 32], sizes = [2, 16], strides = [1, 1]} : vector<2x64xf32> to vector<2x16xf32>
    %300 = math.tanh %299 : vector<2x16xf32>
    %301 = vector.extract_strided_slice %286 {offsets = [0, 48], sizes = [2, 16], strides = [1, 1]} : vector<2x64xf32> to vector<2x16xf32>
    %302 = arith.negf %301 : vector<2x16xf32>
    %303 = math.exp %302 : vector<2x16xf32>
    %cst_88 = arith.constant 1.000000e+00 : f32
    %304 = vector.broadcast %cst_88 : f32 to vector<2x16xf32>
    %305 = arith.addf %304, %303 : vector<2x16xf32>
    %306 = arith.divf %304, %305 : vector<2x16xf32>
    %307 = arith.mulf %298, %279 : vector<2x16xf32>
    %308 = arith.mulf %292, %300 : vector<2x16xf32>
    %309 = arith.addf %307, %308 : vector<2x16xf32>
    %310 = math.tanh %309 : vector<2x16xf32>
    %311 = arith.mulf %306, %310 : vector<2x16xf32>
    %312 = arith.addf %282, %311 : vector<2x16xf32>
    %313 = vector.extract_strided_slice %121 {offsets = [0, 6, 0], sizes = [2, 1, 64], strides = [1, 1, 1]} : vector<2x8x64xf32> to vector<2x1x64xf32>
    %314 = vector.shape_cast %313 : vector<2x1x64xf32> to vector<2x64xf32>
    %cst_89 = arith.constant dense<0.000000e+00> : vector<2x64xf32>
    %315 = tpu.matmul %311, %128, %cst_89 {dimension_numbers = #tpu.dot_dimension_numbers<[1], [0], [0], [1], [0, 0, 1, 1], [], []>} : vector<2x16xf32>, vector<16x64xf32>, vector<2x64xf32> -> vector<2x64xf32>
    %316 = arith.addf %314, %315 : vector<2x64xf32>
    %317 = vector.extract_strided_slice %316 {offsets = [0, 0], sizes = [2, 16], strides = [1, 1]} : vector<2x64xf32> to vector<2x16xf32>
    %318 = arith.negf %317 : vector<2x16xf32>
    %319 = math.exp %318 : vector<2x16xf32>
    %cst_90 = arith.constant 1.000000e+00 : f32
    %320 = vector.broadcast %cst_90 : f32 to vector<2x16xf32>
    %321 = arith.addf %320, %319 : vector<2x16xf32>
    %322 = arith.divf %320, %321 : vector<2x16xf32>
    %323 = vector.extract_strided_slice %316 {offsets = [0, 16], sizes = [2, 16], strides = [1, 1]} : vector<2x64xf32> to vector<2x16xf32>
    %324 = arith.negf %323 : vector<2x16xf32>
    %325 = math.exp %324 : vector<2x16xf32>
    %cst_91 = arith.constant 1.000000e+00 : f32
    %326 = vector.broadcast %cst_91 : f32 to vector<2x16xf32>
    %327 = arith.addf %326, %325 : vector<2x16xf32>
    %328 = arith.divf %326, %327 : vector<2x16xf32>
    %329 = vector.extract_strided_slice %316 {offsets = [0, 32], sizes = [2, 16], strides = [1, 1]} : vector<2x64xf32> to vector<2x16xf32>
    %330 = math.tanh %329 : vector<2x16xf32>
    %331 = vector.extract_strided_slice %316 {offsets = [0, 48], sizes = [2, 16], strides = [1, 1]} : vector<2x64xf32> to vector<2x16xf32>
    %332 = arith.negf %331 : vector<2x16xf32>
    %333 = math.exp %332 : vector<2x16xf32>
    %cst_92 = arith.constant 1.000000e+00 : f32
    %334 = vector.broadcast %cst_92 : f32 to vector<2x16xf32>
    %335 = arith.addf %334, %333 : vector<2x16xf32>
    %336 = arith.divf %334, %335 : vector<2x16xf32>
    %337 = arith.mulf %328, %309 : vector<2x16xf32>
    %338 = arith.mulf %322, %330 : vector<2x16xf32>
    %339 = arith.addf %337, %338 : vector<2x16xf32>
    %340 = math.tanh %339 : vector<2x16xf32>
    %341 = arith.mulf %336, %340 : vector<2x16xf32>
    %342 = arith.addf %312, %341 : vector<2x16xf32>
    %343 = vector.extract_strided_slice %121 {offsets = [0, 7, 0], sizes = [2, 1, 64], strides = [1, 1, 1]} : vector<2x8x64xf32> to vector<2x1x64xf32>
    %344 = vector.shape_cast %343 : vector<2x1x64xf32> to vector<2x64xf32>
    %cst_93 = arith.constant dense<0.000000e+00> : vector<2x64xf32>
    %345 = tpu.matmul %341, %128, %cst_93 {dimension_numbers = #tpu.dot_dimension_numbers<[1], [0], [0], [1], [0, 0, 1, 1], [], []>} : vector<2x16xf32>, vector<16x64xf32>, vector<2x64xf32> -> vector<2x64xf32>
    %346 = arith.addf %344, %345 : vector<2x64xf32>
    %347 = vector.extract_strided_slice %346 {offsets = [0, 0], sizes = [2, 16], strides = [1, 1]} : vector<2x64xf32> to vector<2x16xf32>
    %348 = arith.negf %347 : vector<2x16xf32>
    %349 = math.exp %348 : vector<2x16xf32>
    %cst_94 = arith.constant 1.000000e+00 : f32
    %350 = vector.broadcast %cst_94 : f32 to vector<2x16xf32>
    %351 = arith.addf %350, %349 : vector<2x16xf32>
    %352 = arith.divf %350, %351 : vector<2x16xf32>
    %353 = vector.extract_strided_slice %346 {offsets = [0, 16], sizes = [2, 16], strides = [1, 1]} : vector<2x64xf32> to vector<2x16xf32>
    %354 = arith.negf %353 : vector<2x16xf32>
    %355 = math.exp %354 : vector<2x16xf32>
    %cst_95 = arith.constant 1.000000e+00 : f32
    %356 = vector.broadcast %cst_95 : f32 to vector<2x16xf32>
    %357 = arith.addf %356, %355 : vector<2x16xf32>
    %358 = arith.divf %356, %357 : vector<2x16xf32>
    %359 = vector.extract_strided_slice %346 {offsets = [0, 32], sizes = [2, 16], strides = [1, 1]} : vector<2x64xf32> to vector<2x16xf32>
    %360 = math.tanh %359 : vector<2x16xf32>
    %361 = vector.extract_strided_slice %346 {offsets = [0, 48], sizes = [2, 16], strides = [1, 1]} : vector<2x64xf32> to vector<2x16xf32>
    %362 = arith.negf %361 : vector<2x16xf32>
    %363 = math.exp %362 : vector<2x16xf32>
    %cst_96 = arith.constant 1.000000e+00 : f32
    %364 = vector.broadcast %cst_96 : f32 to vector<2x16xf32>
    %365 = arith.addf %364, %363 : vector<2x16xf32>
    %366 = arith.divf %364, %365 : vector<2x16xf32>
    %367 = arith.mulf %358, %339 : vector<2x16xf32>
    %368 = arith.mulf %352, %360 : vector<2x16xf32>
    %369 = arith.addf %367, %368 : vector<2x16xf32>
    %370 = math.tanh %369 : vector<2x16xf32>
    %371 = arith.mulf %366, %370 : vector<2x16xf32>
    %372 = arith.addf %342, %371 : vector<2x16xf32>
    %cst_97 = arith.constant 1.250000e-01 : f32
    %373 = vector.broadcast %cst_97 : f32 to vector<2x16xf32>
    %374 = arith.mulf %372, %373 : vector<2x16xf32>
    %cst_98 = arith.constant 0.000000e+00 : f32
    %375 = vector.broadcast %cst_98 : f32 to vector<2x16xf32>
    %cst_99 = arith.constant 0.000000e+00 : f32
    %376 = vector.broadcast %cst_99 : f32 to vector<2x16xf32>
    %cst_100 = arith.constant 0.000000e+00 : f32
    %377 = vector.broadcast %cst_100 : f32 to vector<2x16xf32>
    %378 = vector.extract_strided_slice %127 {offsets = [0, 7, 0], sizes = [2, 1, 64], strides = [1, 1, 1]} : vector<2x8x64xf32> to vector<2x1x64xf32>
    %379 = vector.shape_cast %378 : vector<2x1x64xf32> to vector<2x64xf32>
    %cst_101 = arith.constant dense<0.000000e+00> : vector<2x64xf32>
    %380 = tpu.matmul %375, %129, %cst_101 {dimension_numbers = #tpu.dot_dimension_numbers<[1], [0], [0], [1], [0, 0, 1, 1], [], []>} : vector<2x16xf32>, vector<16x64xf32>, vector<2x64xf32> -> vector<2x64xf32>
    %381 = arith.addf %379, %380 : vector<2x64xf32>
    %382 = vector.extract_strided_slice %381 {offsets = [0, 0], sizes = [2, 16], strides = [1, 1]} : vector<2x64xf32> to vector<2x16xf32>
    %383 = arith.negf %382 : vector<2x16xf32>
    %384 = math.exp %383 : vector<2x16xf32>
    %cst_102 = arith.constant 1.000000e+00 : f32
    %385 = vector.broadcast %cst_102 : f32 to vector<2x16xf32>
    %386 = arith.addf %385, %384 : vector<2x16xf32>
    %387 = arith.divf %385, %386 : vector<2x16xf32>
    %388 = vector.extract_strided_slice %381 {offsets = [0, 16], sizes = [2, 16], strides = [1, 1]} : vector<2x64xf32> to vector<2x16xf32>
    %389 = arith.negf %388 : vector<2x16xf32>
    %390 = math.exp %389 : vector<2x16xf32>
    %cst_103 = arith.constant 1.000000e+00 : f32
    %391 = vector.broadcast %cst_103 : f32 to vector<2x16xf32>
    %392 = arith.addf %391, %390 : vector<2x16xf32>
    %393 = arith.divf %391, %392 : vector<2x16xf32>
    %394 = vector.extract_strided_slice %381 {offsets = [0, 32], sizes = [2, 16], strides = [1, 1]} : vector<2x64xf32> to vector<2x16xf32>
    %395 = math.tanh %394 : vector<2x16xf32>
    %396 = vector.extract_strided_slice %381 {offsets = [0, 48], sizes = [2, 16], strides = [1, 1]} : vector<2x64xf32> to vector<2x16xf32>
    %397 = arith.negf %396 : vector<2x16xf32>
    %398 = math.exp %397 : vector<2x16xf32>
    %cst_104 = arith.constant 1.000000e+00 : f32
    %399 = vector.broadcast %cst_104 : f32 to vector<2x16xf32>
    %400 = arith.addf %399, %398 : vector<2x16xf32>
    %401 = arith.divf %399, %400 : vector<2x16xf32>
    %402 = arith.mulf %393, %376 : vector<2x16xf32>
    %403 = arith.mulf %387, %395 : vector<2x16xf32>
    %404 = arith.addf %402, %403 : vector<2x16xf32>
    %405 = math.tanh %404 : vector<2x16xf32>
    %406 = arith.mulf %401, %405 : vector<2x16xf32>
    %407 = arith.addf %377, %406 : vector<2x16xf32>
    %408 = vector.extract_strided_slice %127 {offsets = [0, 6, 0], sizes = [2, 1, 64], strides = [1, 1, 1]} : vector<2x8x64xf32> to vector<2x1x64xf32>
    %409 = vector.shape_cast %408 : vector<2x1x64xf32> to vector<2x64xf32>
    %cst_105 = arith.constant dense<0.000000e+00> : vector<2x64xf32>
    %410 = tpu.matmul %406, %129, %cst_105 {dimension_numbers = #tpu.dot_dimension_numbers<[1], [0], [0], [1], [0, 0, 1, 1], [], []>} : vector<2x16xf32>, vector<16x64xf32>, vector<2x64xf32> -> vector<2x64xf32>
    %411 = arith.addf %409, %410 : vector<2x64xf32>
    %412 = vector.extract_strided_slice %411 {offsets = [0, 0], sizes = [2, 16], strides = [1, 1]} : vector<2x64xf32> to vector<2x16xf32>
    %413 = arith.negf %412 : vector<2x16xf32>
    %414 = math.exp %413 : vector<2x16xf32>
    %cst_106 = arith.constant 1.000000e+00 : f32
    %415 = vector.broadcast %cst_106 : f32 to vector<2x16xf32>
    %416 = arith.addf %415, %414 : vector<2x16xf32>
    %417 = arith.divf %415, %416 : vector<2x16xf32>
    %418 = vector.extract_strided_slice %411 {offsets = [0, 16], sizes = [2, 16], strides = [1, 1]} : vector<2x64xf32> to vector<2x16xf32>
    %419 = arith.negf %418 : vector<2x16xf32>
    %420 = math.exp %419 : vector<2x16xf32>
    %cst_107 = arith.constant 1.000000e+00 : f32
    %421 = vector.broadcast %cst_107 : f32 to vector<2x16xf32>
    %422 = arith.addf %421, %420 : vector<2x16xf32>
    %423 = arith.divf %421, %422 : vector<2x16xf32>
    %424 = vector.extract_strided_slice %411 {offsets = [0, 32], sizes = [2, 16], strides = [1, 1]} : vector<2x64xf32> to vector<2x16xf32>
    %425 = math.tanh %424 : vector<2x16xf32>
    %426 = vector.extract_strided_slice %411 {offsets = [0, 48], sizes = [2, 16], strides = [1, 1]} : vector<2x64xf32> to vector<2x16xf32>
    %427 = arith.negf %426 : vector<2x16xf32>
    %428 = math.exp %427 : vector<2x16xf32>
    %cst_108 = arith.constant 1.000000e+00 : f32
    %429 = vector.broadcast %cst_108 : f32 to vector<2x16xf32>
    %430 = arith.addf %429, %428 : vector<2x16xf32>
    %431 = arith.divf %429, %430 : vector<2x16xf32>
    %432 = arith.mulf %423, %404 : vector<2x16xf32>
    %433 = arith.mulf %417, %425 : vector<2x16xf32>
    %434 = arith.addf %432, %433 : vector<2x16xf32>
    %435 = math.tanh %434 : vector<2x16xf32>
    %436 = arith.mulf %431, %435 : vector<2x16xf32>
    %437 = arith.addf %407, %436 : vector<2x16xf32>
    %438 = vector.extract_strided_slice %127 {offsets = [0, 5, 0], sizes = [2, 1, 64], strides = [1, 1, 1]} : vector<2x8x64xf32> to vector<2x1x64xf32>
    %439 = vector.shape_cast %438 : vector<2x1x64xf32> to vector<2x64xf32>
    %cst_109 = arith.constant dense<0.000000e+00> : vector<2x64xf32>
    %440 = tpu.matmul %436, %129, %cst_109 {dimension_numbers = #tpu.dot_dimension_numbers<[1], [0], [0], [1], [0, 0, 1, 1], [], []>} : vector<2x16xf32>, vector<16x64xf32>, vector<2x64xf32> -> vector<2x64xf32>
    %441 = arith.addf %439, %440 : vector<2x64xf32>
    %442 = vector.extract_strided_slice %441 {offsets = [0, 0], sizes = [2, 16], strides = [1, 1]} : vector<2x64xf32> to vector<2x16xf32>
    %443 = arith.negf %442 : vector<2x16xf32>
    %444 = math.exp %443 : vector<2x16xf32>
    %cst_110 = arith.constant 1.000000e+00 : f32
    %445 = vector.broadcast %cst_110 : f32 to vector<2x16xf32>
    %446 = arith.addf %445, %444 : vector<2x16xf32>
    %447 = arith.divf %445, %446 : vector<2x16xf32>
    %448 = vector.extract_strided_slice %441 {offsets = [0, 16], sizes = [2, 16], strides = [1, 1]} : vector<2x64xf32> to vector<2x16xf32>
    %449 = arith.negf %448 : vector<2x16xf32>
    %450 = math.exp %449 : vector<2x16xf32>
    %cst_111 = arith.constant 1.000000e+00 : f32
    %451 = vector.broadcast %cst_111 : f32 to vector<2x16xf32>
    %452 = arith.addf %451, %450 : vector<2x16xf32>
    %453 = arith.divf %451, %452 : vector<2x16xf32>
    %454 = vector.extract_strided_slice %441 {offsets = [0, 32], sizes = [2, 16], strides = [1, 1]} : vector<2x64xf32> to vector<2x16xf32>
    %455 = math.tanh %454 : vector<2x16xf32>
    %456 = vector.extract_strided_slice %441 {offsets = [0, 48], sizes = [2, 16], strides = [1, 1]} : vector<2x64xf32> to vector<2x16xf32>
    %457 = arith.negf %456 : vector<2x16xf32>
    %458 = math.exp %457 : vector<2x16xf32>
    %cst_112 = arith.constant 1.000000e+00 : f32
    %459 = vector.broadcast %cst_112 : f32 to vector<2x16xf32>
    %460 = arith.addf %459, %458 : vector<2x16xf32>
    %461 = arith.divf %459, %460 : vector<2x16xf32>
    %462 = arith.mulf %453, %434 : vector<2x16xf32>
    %463 = arith.mulf %447, %455 : vector<2x16xf32>
    %464 = arith.addf %462, %463 : vector<2x16xf32>
    %465 = math.tanh %464 : vector<2x16xf32>
    %466 = arith.mulf %461, %465 : vector<2x16xf32>
    %467 = arith.addf %437, %466 : vector<2x16xf32>
    %468 = vector.extract_strided_slice %127 {offsets = [0, 4, 0], sizes = [2, 1, 64], strides = [1, 1, 1]} : vector<2x8x64xf32> to vector<2x1x64xf32>
    %469 = vector.shape_cast %468 : vector<2x1x64xf32> to vector<2x64xf32>
    %cst_113 = arith.constant dense<0.000000e+00> : vector<2x64xf32>
    %470 = tpu.matmul %466, %129, %cst_113 {dimension_numbers = #tpu.dot_dimension_numbers<[1], [0], [0], [1], [0, 0, 1, 1], [], []>} : vector<2x16xf32>, vector<16x64xf32>, vector<2x64xf32> -> vector<2x64xf32>
    %471 = arith.addf %469, %470 : vector<2x64xf32>
    %472 = vector.extract_strided_slice %471 {offsets = [0, 0], sizes = [2, 16], strides = [1, 1]} : vector<2x64xf32> to vector<2x16xf32>
    %473 = arith.negf %472 : vector<2x16xf32>
    %474 = math.exp %473 : vector<2x16xf32>
    %cst_114 = arith.constant 1.000000e+00 : f32
    %475 = vector.broadcast %cst_114 : f32 to vector<2x16xf32>
    %476 = arith.addf %475, %474 : vector<2x16xf32>
    %477 = arith.divf %475, %476 : vector<2x16xf32>
    %478 = vector.extract_strided_slice %471 {offsets = [0, 16], sizes = [2, 16], strides = [1, 1]} : vector<2x64xf32> to vector<2x16xf32>
    %479 = arith.negf %478 : vector<2x16xf32>
    %480 = math.exp %479 : vector<2x16xf32>
    %cst_115 = arith.constant 1.000000e+00 : f32
    %481 = vector.broadcast %cst_115 : f32 to vector<2x16xf32>
    %482 = arith.addf %481, %480 : vector<2x16xf32>
    %483 = arith.divf %481, %482 : vector<2x16xf32>
    %484 = vector.extract_strided_slice %471 {offsets = [0, 32], sizes = [2, 16], strides = [1, 1]} : vector<2x64xf32> to vector<2x16xf32>
    %485 = math.tanh %484 : vector<2x16xf32>
    %486 = vector.extract_strided_slice %471 {offsets = [0, 48], sizes = [2, 16], strides = [1, 1]} : vector<2x64xf32> to vector<2x16xf32>
    %487 = arith.negf %486 : vector<2x16xf32>
    %488 = math.exp %487 : vector<2x16xf32>
    %cst_116 = arith.constant 1.000000e+00 : f32
    %489 = vector.broadcast %cst_116 : f32 to vector<2x16xf32>
    %490 = arith.addf %489, %488 : vector<2x16xf32>
    %491 = arith.divf %489, %490 : vector<2x16xf32>
    %492 = arith.mulf %483, %464 : vector<2x16xf32>
    %493 = arith.mulf %477, %485 : vector<2x16xf32>
    %494 = arith.addf %492, %493 : vector<2x16xf32>
    %495 = math.tanh %494 : vector<2x16xf32>
    %496 = arith.mulf %491, %495 : vector<2x16xf32>
    %497 = arith.addf %467, %496 : vector<2x16xf32>
    %498 = vector.extract_strided_slice %127 {offsets = [0, 3, 0], sizes = [2, 1, 64], strides = [1, 1, 1]} : vector<2x8x64xf32> to vector<2x1x64xf32>
    %499 = vector.shape_cast %498 : vector<2x1x64xf32> to vector<2x64xf32>
    %cst_117 = arith.constant dense<0.000000e+00> : vector<2x64xf32>
    %500 = tpu.matmul %496, %129, %cst_117 {dimension_numbers = #tpu.dot_dimension_numbers<[1], [0], [0], [1], [0, 0, 1, 1], [], []>} : vector<2x16xf32>, vector<16x64xf32>, vector<2x64xf32> -> vector<2x64xf32>
    %501 = arith.addf %499, %500 : vector<2x64xf32>
    %502 = vector.extract_strided_slice %501 {offsets = [0, 0], sizes = [2, 16], strides = [1, 1]} : vector<2x64xf32> to vector<2x16xf32>
    %503 = arith.negf %502 : vector<2x16xf32>
    %504 = math.exp %503 : vector<2x16xf32>
    %cst_118 = arith.constant 1.000000e+00 : f32
    %505 = vector.broadcast %cst_118 : f32 to vector<2x16xf32>
    %506 = arith.addf %505, %504 : vector<2x16xf32>
    %507 = arith.divf %505, %506 : vector<2x16xf32>
    %508 = vector.extract_strided_slice %501 {offsets = [0, 16], sizes = [2, 16], strides = [1, 1]} : vector<2x64xf32> to vector<2x16xf32>
    %509 = arith.negf %508 : vector<2x16xf32>
    %510 = math.exp %509 : vector<2x16xf32>
    %cst_119 = arith.constant 1.000000e+00 : f32
    %511 = vector.broadcast %cst_119 : f32 to vector<2x16xf32>
    %512 = arith.addf %511, %510 : vector<2x16xf32>
    %513 = arith.divf %511, %512 : vector<2x16xf32>
    %514 = vector.extract_strided_slice %501 {offsets = [0, 32], sizes = [2, 16], strides = [1, 1]} : vector<2x64xf32> to vector<2x16xf32>
    %515 = math.tanh %514 : vector<2x16xf32>
    %516 = vector.extract_strided_slice %501 {offsets = [0, 48], sizes = [2, 16], strides = [1, 1]} : vector<2x64xf32> to vector<2x16xf32>
    %517 = arith.negf %516 : vector<2x16xf32>
    %518 = math.exp %517 : vector<2x16xf32>
    %cst_120 = arith.constant 1.000000e+00 : f32
    %519 = vector.broadcast %cst_120 : f32 to vector<2x16xf32>
    %520 = arith.addf %519, %518 : vector<2x16xf32>
    %521 = arith.divf %519, %520 : vector<2x16xf32>
    %522 = arith.mulf %513, %494 : vector<2x16xf32>
    %523 = arith.mulf %507, %515 : vector<2x16xf32>
    %524 = arith.addf %522, %523 : vector<2x16xf32>
    %525 = math.tanh %524 : vector<2x16xf32>
    %526 = arith.mulf %521, %525 : vector<2x16xf32>
    %527 = arith.addf %497, %526 : vector<2x16xf32>
    %528 = vector.extract_strided_slice %127 {offsets = [0, 2, 0], sizes = [2, 1, 64], strides = [1, 1, 1]} : vector<2x8x64xf32> to vector<2x1x64xf32>
    %529 = vector.shape_cast %528 : vector<2x1x64xf32> to vector<2x64xf32>
    %cst_121 = arith.constant dense<0.000000e+00> : vector<2x64xf32>
    %530 = tpu.matmul %526, %129, %cst_121 {dimension_numbers = #tpu.dot_dimension_numbers<[1], [0], [0], [1], [0, 0, 1, 1], [], []>} : vector<2x16xf32>, vector<16x64xf32>, vector<2x64xf32> -> vector<2x64xf32>
    %531 = arith.addf %529, %530 : vector<2x64xf32>
    %532 = vector.extract_strided_slice %531 {offsets = [0, 0], sizes = [2, 16], strides = [1, 1]} : vector<2x64xf32> to vector<2x16xf32>
    %533 = arith.negf %532 : vector<2x16xf32>
    %534 = math.exp %533 : vector<2x16xf32>
    %cst_122 = arith.constant 1.000000e+00 : f32
    %535 = vector.broadcast %cst_122 : f32 to vector<2x16xf32>
    %536 = arith.addf %535, %534 : vector<2x16xf32>
    %537 = arith.divf %535, %536 : vector<2x16xf32>
    %538 = vector.extract_strided_slice %531 {offsets = [0, 16], sizes = [2, 16], strides = [1, 1]} : vector<2x64xf32> to vector<2x16xf32>
    %539 = arith.negf %538 : vector<2x16xf32>
    %540 = math.exp %539 : vector<2x16xf32>
    %cst_123 = arith.constant 1.000000e+00 : f32
    %541 = vector.broadcast %cst_123 : f32 to vector<2x16xf32>
    %542 = arith.addf %541, %540 : vector<2x16xf32>
    %543 = arith.divf %541, %542 : vector<2x16xf32>
    %544 = vector.extract_strided_slice %531 {offsets = [0, 32], sizes = [2, 16], strides = [1, 1]} : vector<2x64xf32> to vector<2x16xf32>
    %545 = math.tanh %544 : vector<2x16xf32>
    %546 = vector.extract_strided_slice %531 {offsets = [0, 48], sizes = [2, 16], strides = [1, 1]} : vector<2x64xf32> to vector<2x16xf32>
    %547 = arith.negf %546 : vector<2x16xf32>
    %548 = math.exp %547 : vector<2x16xf32>
    %cst_124 = arith.constant 1.000000e+00 : f32
    %549 = vector.broadcast %cst_124 : f32 to vector<2x16xf32>
    %550 = arith.addf %549, %548 : vector<2x16xf32>
    %551 = arith.divf %549, %550 : vector<2x16xf32>
    %552 = arith.mulf %543, %524 : vector<2x16xf32>
    %553 = arith.mulf %537, %545 : vector<2x16xf32>
    %554 = arith.addf %552, %553 : vector<2x16xf32>
    %555 = math.tanh %554 : vector<2x16xf32>
    %556 = arith.mulf %551, %555 : vector<2x16xf32>
    %557 = arith.addf %527, %556 : vector<2x16xf32>
    %558 = vector.extract_strided_slice %127 {offsets = [0, 1, 0], sizes = [2, 1, 64], strides = [1, 1, 1]} : vector<2x8x64xf32> to vector<2x1x64xf32>
    %559 = vector.shape_cast %558 : vector<2x1x64xf32> to vector<2x64xf32>
    %cst_125 = arith.constant dense<0.000000e+00> : vector<2x64xf32>
    %560 = tpu.matmul %556, %129, %cst_125 {dimension_numbers = #tpu.dot_dimension_numbers<[1], [0], [0], [1], [0, 0, 1, 1], [], []>} : vector<2x16xf32>, vector<16x64xf32>, vector<2x64xf32> -> vector<2x64xf32>
    %561 = arith.addf %559, %560 : vector<2x64xf32>
    %562 = vector.extract_strided_slice %561 {offsets = [0, 0], sizes = [2, 16], strides = [1, 1]} : vector<2x64xf32> to vector<2x16xf32>
    %563 = arith.negf %562 : vector<2x16xf32>
    %564 = math.exp %563 : vector<2x16xf32>
    %cst_126 = arith.constant 1.000000e+00 : f32
    %565 = vector.broadcast %cst_126 : f32 to vector<2x16xf32>
    %566 = arith.addf %565, %564 : vector<2x16xf32>
    %567 = arith.divf %565, %566 : vector<2x16xf32>
    %568 = vector.extract_strided_slice %561 {offsets = [0, 16], sizes = [2, 16], strides = [1, 1]} : vector<2x64xf32> to vector<2x16xf32>
    %569 = arith.negf %568 : vector<2x16xf32>
    %570 = math.exp %569 : vector<2x16xf32>
    %cst_127 = arith.constant 1.000000e+00 : f32
    %571 = vector.broadcast %cst_127 : f32 to vector<2x16xf32>
    %572 = arith.addf %571, %570 : vector<2x16xf32>
    %573 = arith.divf %571, %572 : vector<2x16xf32>
    %574 = vector.extract_strided_slice %561 {offsets = [0, 32], sizes = [2, 16], strides = [1, 1]} : vector<2x64xf32> to vector<2x16xf32>
    %575 = math.tanh %574 : vector<2x16xf32>
    %576 = vector.extract_strided_slice %561 {offsets = [0, 48], sizes = [2, 16], strides = [1, 1]} : vector<2x64xf32> to vector<2x16xf32>
    %577 = arith.negf %576 : vector<2x16xf32>
    %578 = math.exp %577 : vector<2x16xf32>
    %cst_128 = arith.constant 1.000000e+00 : f32
    %579 = vector.broadcast %cst_128 : f32 to vector<2x16xf32>
    %580 = arith.addf %579, %578 : vector<2x16xf32>
    %581 = arith.divf %579, %580 : vector<2x16xf32>
    %582 = arith.mulf %573, %554 : vector<2x16xf32>
    %583 = arith.mulf %567, %575 : vector<2x16xf32>
    %584 = arith.addf %582, %583 : vector<2x16xf32>
    %585 = math.tanh %584 : vector<2x16xf32>
    %586 = arith.mulf %581, %585 : vector<2x16xf32>
    %587 = arith.addf %557, %586 : vector<2x16xf32>
    %588 = vector.extract_strided_slice %127 {offsets = [0, 0, 0], sizes = [2, 1, 64], strides = [1, 1, 1]} : vector<2x8x64xf32> to vector<2x1x64xf32>
    %589 = vector.shape_cast %588 : vector<2x1x64xf32> to vector<2x64xf32>
    %cst_129 = arith.constant dense<0.000000e+00> : vector<2x64xf32>
    %590 = tpu.matmul %586, %129, %cst_129 {dimension_numbers = #tpu.dot_dimension_numbers<[1], [0], [0], [1], [0, 0, 1, 1], [], []>} : vector<2x16xf32>, vector<16x64xf32>, vector<2x64xf32> -> vector<2x64xf32>
    %591 = arith.addf %589, %590 : vector<2x64xf32>
    %592 = vector.extract_strided_slice %591 {offsets = [0, 0], sizes = [2, 16], strides = [1, 1]} : vector<2x64xf32> to vector<2x16xf32>
    %593 = arith.negf %592 : vector<2x16xf32>
    %594 = math.exp %593 : vector<2x16xf32>
    %cst_130 = arith.constant 1.000000e+00 : f32
    %595 = vector.broadcast %cst_130 : f32 to vector<2x16xf32>
    %596 = arith.addf %595, %594 : vector<2x16xf32>
    %597 = arith.divf %595, %596 : vector<2x16xf32>
    %598 = vector.extract_strided_slice %591 {offsets = [0, 16], sizes = [2, 16], strides = [1, 1]} : vector<2x64xf32> to vector<2x16xf32>
    %599 = arith.negf %598 : vector<2x16xf32>
    %600 = math.exp %599 : vector<2x16xf32>
    %cst_131 = arith.constant 1.000000e+00 : f32
    %601 = vector.broadcast %cst_131 : f32 to vector<2x16xf32>
    %602 = arith.addf %601, %600 : vector<2x16xf32>
    %603 = arith.divf %601, %602 : vector<2x16xf32>
    %604 = vector.extract_strided_slice %591 {offsets = [0, 32], sizes = [2, 16], strides = [1, 1]} : vector<2x64xf32> to vector<2x16xf32>
    %605 = math.tanh %604 : vector<2x16xf32>
    %606 = vector.extract_strided_slice %591 {offsets = [0, 48], sizes = [2, 16], strides = [1, 1]} : vector<2x64xf32> to vector<2x16xf32>
    %607 = arith.negf %606 : vector<2x16xf32>
    %608 = math.exp %607 : vector<2x16xf32>
    %cst_132 = arith.constant 1.000000e+00 : f32
    %609 = vector.broadcast %cst_132 : f32 to vector<2x16xf32>
    %610 = arith.addf %609, %608 : vector<2x16xf32>
    %611 = arith.divf %609, %610 : vector<2x16xf32>
    %612 = arith.mulf %603, %584 : vector<2x16xf32>
    %613 = arith.mulf %597, %605 : vector<2x16xf32>
    %614 = arith.addf %612, %613 : vector<2x16xf32>
    %615 = math.tanh %614 : vector<2x16xf32>
    %616 = arith.mulf %611, %615 : vector<2x16xf32>
    %617 = arith.addf %587, %616 : vector<2x16xf32>
    %cst_133 = arith.constant 1.250000e-01 : f32
    %618 = vector.broadcast %cst_133 : f32 to vector<2x16xf32>
    %619 = arith.mulf %617, %618 : vector<2x16xf32>
    %620 = tpu.concatenate %374, %619 in 1 : vector<2x16xf32>, vector<2x16xf32> -> vector<2x32xf32>
    %621 = vector.extract_strided_slice %620 {offsets = [0, 0], sizes = [1, 32], strides = [1, 1]} : vector<2x32xf32> to vector<1x32xf32>
    %622 = vector.extract_strided_slice %620 {offsets = [1, 0], sizes = [1, 32], strides = [1, 1]} : vector<2x32xf32> to vector<1x32xf32>
    %623 = tpu.concatenate %621, %622, %115 in 1 : vector<1x32xf32>, vector<1x32xf32>, vector<1x32xf32> -> vector<1x96xf32>
    %c0_134 = arith.constant 0 : index
    %c0_135 = arith.constant 0 : index
    %624 = vector.load %arg11[%c0_134, %c0_135] : memref<96x2xf32, #tpu.memory_space<vmem>>, vector<96x2xf32>
    %cst_136 = arith.constant dense<0.000000e+00> : vector<1x2xf32>
    %625 = tpu.matmul %623, %624, %cst_136 {dimension_numbers = #tpu.dot_dimension_numbers<[1], [0], [0], [1], [0, 0, 1, 1], [], []>} : vector<1x96xf32>, vector<96x2xf32>, vector<1x2xf32> -> vector<1x2xf32>
    %c0_137 = arith.constant 0 : index
    %c0_138 = arith.constant 0 : index
    %626 = vector.load %arg12[%c0_137, %c0_138] : memref<1x2xf32, #tpu.memory_space<vmem>>, vector<1x2xf32>
    %627 = arith.addf %625, %626 : vector<1x2xf32>
    %cst_139 = arith.constant dense<0xFF800000> : vector<1xf32>
    %628 = vector.multi_reduction <maximumf>, %627, %cst_139 [1] : vector<1x2xf32> to vector<1xf32>
    %629 = vector.shape_cast %628 : vector<1xf32> to vector<1x1xf32>
    %630 = vector.broadcast %629 : vector<1x1xf32> to vector<1x2xf32>
    %631 = arith.subf %627, %630 : vector<1x2xf32>
    %632 = math.exp %631 : vector<1x2xf32>
    %cst_140 = arith.constant dense<0.000000e+00> : vector<1xf32>
    %633 = vector.multi_reduction <add>, %632, %cst_140 [1] : vector<1x2xf32> to vector<1xf32>
    %634 = vector.shape_cast %633 : vector<1xf32> to vector<1x1xf32>
    %635 = tpu.reciprocal %634 {approx = true} : vector<1x1xf32> -> vector<1x1xf32>
    %636 = vector.broadcast %635 : vector<1x1xf32> to vector<1x2xf32>
    %637 = arith.mulf %632, %636 : vector<1x2xf32>
    %c0_141 = arith.constant 0 : index
    %c0_142 = arith.constant 0 : index
    %c0_143 = arith.constant 0 : index
    %638 = vector.load %arg13[%c0_141, %c0_142, %c0_143] : memref<1x1x2xf32, #tpu.memory_space<vmem>>, vector<1x1x2xf32>
    %639 = vector.shape_cast %638 : vector<1x1x2xf32> to vector<1x2xf32>
    %640 = vector.shape_cast %637 : vector<1x2xf32> to vector<1x1x2xf32>
    tpu.vector_store %arg13[%c0_141, %c0_142, %c0_143], %640 {strides = array<i32>} : memref<1x1x2xf32, #tpu.memory_space<vmem>>, vector<1x1x2xf32>,
    return
  }
  func.func @transform_0(%arg0: i32, %arg1: memref<2x2xi32, #tpu.memory_space<smem>>, %arg2: memref<2x2xi32, #tpu.memory_space<smem>>) -> (i32, i32, i32) {
    %c0_i32 = arith.constant 0 : i32
    %c0_i32_0 = arith.constant 0 : i32
    %c0_i32_1 = arith.constant 0 : i32
    return %arg0, %c0_i32, %c0_i32_0 : i32, i32, i32
  }
  func.func @transform_1(%arg0: i32, %arg1: memref<2x2xi32, #tpu.memory_space<smem>>, %arg2: memref<2x2xi32, #tpu.memory_space<smem>>) -> (i32, i32, i32) {
    %c0_i32 = arith.constant 0 : i32
    %c0_i32_0 = arith.constant 0 : i32
    %c0_i32_1 = arith.constant 0 : i32
    return %arg0, %c0_i32, %c0_i32_0 : i32, i32, i32
  }
  func.func @transform_2(%arg0: i32, %arg1: memref<2x2xi32, #tpu.memory_space<smem>>, %arg2: memref<2x2xi32, #tpu.memory_space<smem>>) -> (i32, i32) {
    %c0_i32 = arith.constant 0 : i32
    %c0_i32_0 = arith.constant 0 : i32
    %c0_i32_1 = arith.constant 0 : i32
    return %c0_i32, %c0_i32_0 : i32, i32
  }
  func.func @transform_3(%arg0: i32, %arg1: memref<2x2xi32, #tpu.memory_space<smem>>, %arg2: memref<2x2xi32, #tpu.memory_space<smem>>) -> (i32, i32) {
    %c0_i32 = arith.constant 0 : i32
    %c0_i32_0 = arith.constant 0 : i32
    %c0_i32_1 = arith.constant 0 : i32
    return %c0_i32, %c0_i32_0 : i32, i32
  }
  func.func @transform_4(%arg0: i32, %arg1: memref<2x2xi32, #tpu.memory_space<smem>>, %arg2: memref<2x2xi32, #tpu.memory_space<smem>>) -> (i32, i32) {
    %c0_i32 = arith.constant 0 : i32
    %c0_i32_0 = arith.constant 0 : i32
    %c0_i32_1 = arith.constant 0 : i32
    return %c0_i32, %c0_i32_0 : i32, i32
  }
  func.func @transform_5(%arg0: i32, %arg1: memref<2x2xi32, #tpu.memory_space<smem>>, %arg2: memref<2x2xi32, #tpu.memory_space<smem>>) -> (i32, i32) {
    %c0_i32 = arith.constant 0 : i32
    %c0_i32_0 = arith.constant 0 : i32
    %c0_i32_1 = arith.constant 0 : i32
    return %c0_i32, %c0_i32_0 : i32, i32
  }
  func.func @transform_6(%arg0: i32, %arg1: memref<2x2xi32, #tpu.memory_space<smem>>, %arg2: memref<2x2xi32, #tpu.memory_space<smem>>) -> (i32, i32) {
    %c0_i32 = arith.constant 0 : i32
    %c0_i32_0 = arith.constant 0 : i32
    %c0_i32_1 = arith.constant 0 : i32
    return %c0_i32, %c0_i32_0 : i32, i32
  }
  func.func @transform_7(%arg0: i32, %arg1: memref<2x2xi32, #tpu.memory_space<smem>>, %arg2: memref<2x2xi32, #tpu.memory_space<smem>>) -> (i32, i32) {
    %c0_i32 = arith.constant 0 : i32
    %c0_i32_0 = arith.constant 0 : i32
    %c0_i32_1 = arith.constant 0 : i32
    return %c0_i32, %c0_i32_0 : i32, i32
  }
  func.func @transform_8(%arg0: i32, %arg1: memref<2x2xi32, #tpu.memory_space<smem>>, %arg2: memref<2x2xi32, #tpu.memory_space<smem>>) -> (i32, i32) {
    %c0_i32 = arith.constant 0 : i32
    %c0_i32_0 = arith.constant 0 : i32
    %c0_i32_1 = arith.constant 0 : i32
    return %c0_i32, %c0_i32_0 : i32, i32
  }
  func.func @transform_9(%arg0: i32, %arg1: memref<2x2xi32, #tpu.memory_space<smem>>, %arg2: memref<2x2xi32, #tpu.memory_space<smem>>) -> (i32, i32) {
    %c0_i32 = arith.constant 0 : i32
    %c0_i32_0 = arith.constant 0 : i32
    %c0_i32_1 = arith.constant 0 : i32
    return %c0_i32, %c0_i32_0 : i32, i32
  }
  func.func @transform_10(%arg0: i32, %arg1: memref<2x2xi32, #tpu.memory_space<smem>>, %arg2: memref<2x2xi32, #tpu.memory_space<smem>>) -> (i32, i32, i32) {
    %c0_i32 = arith.constant 0 : i32
    %c0_i32_0 = arith.constant 0 : i32
    %c0_i32_1 = arith.constant 0 : i32
    return %arg0, %c0_i32, %c0_i32_0 : i32, i32, i32
  }
  func.func @transform_11(%arg0: i32, %arg1: memref<2x2xi32, #tpu.memory_space<smem>>, %arg2: memref<2x2xi32, #tpu.memory_space<smem>>) -> (i32, i32, i32) {
    %c0_i32 = arith.constant 0 : i32
    %c0_i32_0 = arith.constant 0 : i32
    %c0_i32_1 = arith.constant 0 : i32
    return %arg0, %c0_i32, %c0_i32_0 : i32, i32, i32
  }
}

</mosaic_0001>

<bundles_post_ra>
// kernel: xss_bert_forward.5
= control target key start
LH: loop header
LB: loop body
LE: loop exit
PB: predicated region body
PF: predicated region fallthrough
CT: control target
= control target key end

     0   :  { %vm61_vm0 = vcmask 261120   ;;  %vm622_vm1 = vcmask 7168   ;;  %v965_v20 = vmov 0   ;;  %vm737_vm2 = vcmask 1041409   ;;  %s1202_s4 = inlined_call_operand.vmem [shape: f32[32,32], index: 4, kind: input, shape index: {}]   ;;  %s1203_s0 = inlined_call_operand.vmem [shape: f32[2,16,32], index: 0, kind: input, shape index: {}]   ;;  %s1204_s6 = inlined_call_operand.vmem [shape: f32[32,32], index: 6, kind: input, shape index: {}]   ;;  %s1205_s2 = inlined_call_operand.vmem [shape: f32[2,16,32], index: 2, kind: input, shape index: {}]   ;;  %s1206_s1 = inlined_call_operand.vmem [shape: f32[2,16,1], index: 1, kind: input, shape index: {}]   ;;  %s1207_s3 = inlined_call_operand.vmem [shape: f32[2,16,1], index: 3, kind: input, shape index: {}]   ;;  %s1208_s5 = inlined_call_operand.vmem [shape: f32[1,32], index: 5, kind: input, shape index: {}]   ;;  %s1209_s7 = inlined_call_operand.vmem [shape: f32[1,32], index: 7, kind: input, shape index: {}]   ;;  %s1210_s8 = inlined_call_operand.vmem [shape: f32[2,1], index: 8, kind: output, shape index: {}]  }
   0x1   :  { %v29_v0 = vld [vmem:[%s1202_s4] sm:$0xff]  ;;  %v30_v1 = vld [vmem:[%s1202_s4 + $0x8] sm:$0xff]  ;;  %v31_v2 = vld [vmem:[%s1202_s4 + $0x10] sm:$0xff]  ;;  %926 = vset.pattern.permute.xlu1 %v965_v20  ;;  %925 = vset.pattern.permute.xlu0 %v965_v20  ;;  %vm740_vm3 = vcmask 254976   ;;  %vm780_vm8 = vcmask 1024  }
   0x2   :  { %v892_v3 = vpack.c.bf16 %v30_v1, %v29_v0  ;;  %v32_v4 = vld [vmem:[%s1202_s4 + $0x18] sm:$0xff]  ;;  %v1026_v5 = vld [vmem:[%s1203_s0] sm:$0xff]  ;;  %v35_v8 = vld [vmem:[%s1204_s6 + $0x8] sm:$0xff] }
   0x3   :  { %v896_v6 = vpack.c.bf16 %v32_v4, %v31_v2  ;;  %844 = vmatprep.mubr.msk.f32.mxu0 %vm61_vm0, %v1026_v5  ;;  %v34_v7 = vld [vmem:[%s1204_s6] sm:$0xff]  ;;  %v1042_v10 = vld [vmem:[%s1203_s0 + $0x8] sm:$0xff]  ;;  %v1048_v11 = vld [vmem:[%s1203_s0 + $0x10] sm:$0xff] }
   0x4   :  { %893 = vmatprep.subr.bf16.mxu0 %v892_v3  ;;  %v1036_v9 = vpack.c.bf16 %v35_v8, %v34_v7  ;;  %v1057_v12 = vld [vmem:[%s1203_s0 + $0x18] sm:$0xff]  ;;  %v1062_v13 = vld [vmem:[%s1205_s2] sm:$0xff]  ;;  %v1071_v14 = vld [vmem:[%s1205_s2 + $0x8] sm:$0xff] }
   0x5   :  { %895 = vmatpush3.bf16.msra.mxu0 %v892_v3  ;;  %v1076_v15 = vld [vmem:[%s1205_s2 + $0x10] sm:$0xff]  ;;  %v1085_v16 = vld [vmem:[%s1205_s2 + $0x18] sm:$0xff]  ;;  %v47_v22 = vld [vmem:[%s1206_s1] sm:$0xff] }
   0x6   :  { %897 = vmatprep.subr.bf16.mxu0 %v896_v6  ;;  %901 = vmatprep.subr.bf16.mxu1 %v1036_v9  ;;  %v36_v17 = vld [vmem:[%s1204_s6 + $0x10] sm:$0xff]  ;;  %v37_v18 = vld [vmem:[%s1204_s6 + $0x18] sm:$0xff]  ;;  %v623_v25 = vsel %vm622_vm1, %v47_v22, 0.0  ;;  %v48_v27 = vld [vmem:[%s1206_s1 + $0x8] sm:$0xff] }
   0x7   :  { %903 = vmatpush3.bf16.msra.mxu1 %v1036_v9  ;;  %v1095_v19 = vpack.c.bf16 %v37_v18, %v36_v17  ;;  %v49_v21 = vld [vmem:[%s1206_s1 + $0x10] sm:$0xff]  ;;  %v50_v23 = vld [vmem:[%s1206_s1 + $0x18] sm:$0xff]  ;;  %582 = vperm.xlu0 %925, %v47_v22   ;;  %v52_v28 = vld [vmem:[%s1207_s3 + $0x8] sm:$0xff]  ;;  %v624_v31 = vsel %vm622_vm1, %v48_v27, 0.0 }
   0x8   :  { %592 = vperm.xlu1 %926, %v49_v21   ;;  %v632_v24 = vsel %vm622_vm1, %v49_v21, 0.0  ;;  %v633_v26 = vsel %vm622_vm1, %v50_v23, 0.0  ;;  %v51_v29 = vld [vmem:[%s1207_s3] sm:$0xff]  ;;  %v700_v32 = vsel %vm622_vm1, %v52_v28, 0.0  ;;  %v54_v34 = vld [vmem:[%s1207_s3 + $0x18] sm:$0xff]  ;;  %v53_v35 = vld [vmem:[%s1207_s3 + $0x10] sm:$0xff]  ;;  %v625_v36 = vadd.f32 %v624_v31, %v623_v25 }
   0x9   :  { %899 = vmatpush3.bf16.msra.mxu0 %v896_v6  ;;  %905 = vmatprep.subr.bf16.mxu1 %v1095_v19  ;;  %v634_v30 = vadd.f32 %v633_v26, %v632_v24  ;;  %v699_v33 = vsel %vm622_vm1, %v51_v29, 0.0  ;;  %v709_v38 = vsel %vm622_vm1, %v54_v34, 0.0  ;;  %v708_v39 = vsel %vm622_vm1, %v53_v35, 0.0 }
   0xa   :  { %909 = vmatprep.subr.bf16.mxu0 %v892_v3  ;;  %v701_v37 = vadd.f32 %v700_v32, %v699_v33  ;;  %v710_v41 = vadd.f32 %v709_v38, %v708_v39  ;;  %v626_v42 = vrot.slane %v625_v36, 4  ;;  %v791_v39 = vld [vmem:[%s1209_s7] ss:$0 sm:$0xff] }
   0xb   :  { %907 = vmatpush3.bf16.msra.mxu1 %v1095_v19  ;;  %v635_v40 = vrot.slane %v634_v30, 4  ;;  %587 = vperm.xlu0 %925, %v48_v27  }
   0xc   :  { %845 = vmatmul.mubr.msk.f32.vlgmr.msra.gmra.mrb[0].mxu0 %vm61_vm0, %v1042_v10  ;;  %917 = vmatprep.subr.bf16.mxu1 %v1036_v9  ;;  %v702_v43 = vrot.slane %v701_v37, 4  ;;  %v711_v45 = vrot.slane %v710_v41, 4  ;;  %v627_v46 = vadd.f32 %v626_v42, %v625_v36 }
   0xd   :  { %911 = vmatpush3.bf16.msra.mxu0 %v892_v3  ;;  %847 = vmatprep.mubr.msk.f32.mxu0 %vm61_vm0, %v1048_v11  ;;  %v636_v44 = vadd.f32 %v635_v40, %v634_v30 }
   0xe   :  { %913 = vmatprep.subr.bf16.mxu0 %v896_v6  ;;  %597 = vperm.xlu1 %926, %v50_v23   ;;  %v703_v47 = vadd.f32 %v702_v43, %v701_v37  ;;  %v712_v49 = vadd.f32 %v711_v45, %v710_v41  ;;  %v628_v50 = vrot.slane %v627_v46, 2 }
   0xf   :  { %v637_v48 = vrot.slane %v636_v44, 2  ;;  %659 = vperm.xlu0 %925, %v51_v29  }
  0x10   :  { %848 = vmatmul.mubr.msk.f32.gmra.mrb[2].mxu0 %vm61_vm0, %v1057_v12  ;;  %v704_v51 = vrot.slane %v703_v47, 2  ;;  %v713_v52 = vrot.slane %v712_v49, 2  ;;  %v629_v54 = vadd.f32 %v628_v50, %v627_v46 }
  0x11   :  { %915 = vmatpush3.bf16.msra.mxu0 %v896_v6  ;;  %872 = vmatprep.mubr.msk.f32.mxu0 %vm61_vm0, %v1062_v13  ;;  %v638_v53 = vadd.f32 %v637_v48, %v636_v44  ;;  %v786_v6 = vld [vmem:[%s1208_s5] ss:$0 sm:$0xff] }
  0x12   :  { %664 = vperm.xlu1 %926, %v52_v28   ;;  %v705_v55 = vadd.f32 %v704_v51, %v703_v47  ;;  %v714_v57 = vadd.f32 %v713_v52, %v712_v49  ;;  %v630_v58 = vrot.slane %v629_v54, 1 }
  0x13   :  { %v639_v56 = vrot.slane %v638_v53, 1  ;;  %669 = vperm.xlu0 %925, %v53_v35  }
  0x14   :  { %873 = vmatmul.mubr.msk.f32.vlgmr.msra.gmra.mrb[4].mxu0 %vm61_vm0, %v1071_v14  ;;  %v706_v59 = vrot.slane %v705_v55, 1  ;;  %v715_v61 = vrot.slane %v714_v57, 1  ;;  %v631_v62 = vadd.f32 %v630_v58, %v629_v54 }
  0x15   :  { %875 = vmatprep.mubr.msk.f32.mxu0 %vm61_vm0, %v1076_v15  ;;  %v640_v60 = vadd.f32 %v639_v56, %v638_v53 }
  0x16   :  { %674 = vperm.xlu1 %926, %v54_v34   ;;  %v707_v63 = vadd.f32 %v706_v59, %v705_v55  ;;  %v716_v1 = vadd.f32 %v715_v61, %v714_v57  ;;  %v641_v2 = vmax.f32 %v631_v62, 1e-09 }
  0x17   :  { %v642_v0 = vmax.f32 %v640_v60, 1e-09 }
  0x18   :  { %876 = vmatmul.mubr.msk.f32.gmra.mrb[6].mxu0 %vm61_vm0, %v1085_v16  ;;  %v718_v3 = vmax.f32 %v716_v1, 1e-09  ;;  %645 = vperm.xlu0 %925, %v641_v2   ;;  %v717_v4 = vmax.f32 %v707_v63, 1e-09 }
  0x1a   :  { %650 = vperm.xlu1 %926, %v642_v0  }
  0x1c   :  { %721 = vperm.xlu0 %925, %v717_v4  }
  0x1e   :  { %726 = vperm.xlu1 %926, %v718_v3  }
  0xdf   :  { %v846_v7 = vpop.f32.mrb[0].mxu0 }
  0xe0   :  { %v146_v8 = vadd.f32 %v846_v7, %v786_v6  ;;  %v140_v17 = vpop.f32.mrb[1].mxu0 }
  0xe1   :  { %v141_v18 = vadd.f32 %v786_v6, %v140_v17 }
  0xe2   :  { %v160_v22 = vmax.f32 %v146_v8, 0.0 }
  0xe3   :  { %v159_v20 = vmax.f32 %v141_v18, 0.0  ;;  %v849_v21 = vpop.f32.mrb[2].mxu0 }
  0xe4   :  { %v156_v23 = vadd.f32 %v849_v21, %v786_v6  ;;  %v150_v24 = vpop.f32.mrb[3].mxu0 }
  0xe5   :  { %v151_v25 = vadd.f32 %v786_v6, %v150_v24  ;;  %858 = vmatprep.mubr.msk.f32.mxu1 %vm61_vm0, %v159_v20 }
  0xe6   :  { %859 = vmatmul.mubr.msk.f32.vlgmr.msra.gmra.mrb[0].mxu1 %vm61_vm0, %v160_v22  ;;  %v162_v28 = vmax.f32 %v156_v23, 0.0 }
  0xe7   :  { %v161_v26 = vmax.f32 %v151_v25, 0.0  ;;  %v874_v27 = vpop.f32.mrb[4].mxu0  ;;  %919 = vmatpush3.bf16.msra.mxu1 %v1036_v9 }
  0xe8   :  { %v408_v29 = vadd.f32 %v874_v27, %v786_v6  ;;  %v402_v30 = vpop.f32.mrb[5].mxu0  ;;  %921 = vmatprep.subr.bf16.mxu1 %v1095_v19 }
  0xe9   :  { %v403_v31 = vadd.f32 %v786_v6, %v402_v30  ;;  %861 = vmatprep.mubr.msk.f32.mxu1 %vm61_vm0, %v161_v26 }
  0xea   :  { %862 = vmatmul.mubr.msk.f32.gmra.mrb[2].mxu1 %vm61_vm0, %v162_v28  ;;  %v422_v34 = vmax.f32 %v408_v29, 0.0 }
  0xeb   :  { %v421_v32 = vmax.f32 %v403_v31, 0.0  ;;  %v877_v33 = vpop.f32.mrb[6].mxu0  ;;  %923 = vmatpush3.bf16.msra.mxu1 %v1095_v19 }
  0xec   :  { %v418_v35 = vadd.f32 %v877_v33, %v786_v6  ;;  %v412_v36 = vpop.f32.mrb[7].mxu0 }
  0xed   :  { %v413_v37 = vadd.f32 %v786_v6, %v412_v36  ;;  %886 = vmatprep.mubr.msk.f32.mxu1 %vm61_vm0, %v421_v32 }
  0xee   :  { %887 = vmatmul.mubr.msk.f32.vlgmr.msra.gmra.mrb[4].mxu1 %vm61_vm0, %v422_v34  ;;  %v424_v38 = vmax.f32 %v418_v35, 0.0 }
  0xef   :  { %v423_v9 = vmax.f32 %v413_v37, 0.0 }
  0xf1   :  { %889 = vmatprep.mubr.msk.f32.mxu1 %vm61_vm0, %v423_v9 }
  0xf2   :  { %890 = vmatmul.mubr.msk.f32.gmra.mrb[6].mxu1 %vm61_vm0, %v424_v38 }
 0x1b9   :  { %v860_v40 = vpop.f32.mrb[0].mxu1 }
 0x1ba   :  { %v253_v19 = vadd.f32 %v860_v40, %v791_v39  ;;  %v247_v41 = vpop.f32.mrb[1].mxu1 }
 0x1bb   :  { %v248_v42 = vadd.f32 %v791_v39, %v247_v41 }
 0x1bc   :  { %v267_v43 = vsel %vm61_vm0, %v253_v19, -inf }
 0x1bd   :  { %v266_v44 = vsel %vm61_vm0, %v248_v42, -inf  ;;  %v863_v45 = vpop.f32.mrb[2].mxu1 }
 0x1be   :  { %v268_v46 = vmax.f32 %v266_v44, %v267_v43  ;;  %v263_v47 = vadd.f32 %v863_v45, %v791_v39  ;;  %v257_v48 = vpop.f32.mrb[3].mxu1 }
 0x1bf   :  { %v258_v49 = vadd.f32 %v791_v39, %v257_v48 }
 0x1c0   :  { %v269_v50 = vrot.slane %v268_v46, 4  ;;  %v276_v51 = vsel %vm61_vm0, %v263_v47, -inf }
 0x1c1   :  { %v275_v52 = vsel %vm61_vm0, %v258_v49, -inf  ;;  %v888_v53 = vpop.f32.mrb[4].mxu1 }
 0x1c2   :  { %v270_v54 = vmax.f32 %v268_v46, %v269_v50  ;;  %v277_v55 = vmax.f32 %v275_v52, %v276_v51  ;;  %v509_v56 = vadd.f32 %v888_v53, %v791_v39  ;;  %v503_v57 = vpop.f32.mrb[5].mxu1 }
 0x1c3   :  { %v504_v58 = vadd.f32 %v791_v39, %v503_v57 }
 0x1c4   :  { %v271_v59 = vrot.slane %v270_v54, 2  ;;  %v278_v60 = vrot.slane %v277_v55, 4  ;;  %v523_v61 = vsel %vm61_vm0, %v509_v56, -inf }
 0x1c5   :  { %v522_v62 = vsel %vm61_vm0, %v504_v58, -inf  ;;  %v891_v63 = vpop.f32.mrb[6].mxu1 }
 0x1c6   :  { %v272_v0 = vmax.f32 %v270_v54, %v271_v59  ;;  %v279_v1 = vmax.f32 %v277_v55, %v278_v60  ;;  %v524_v2 = vmax.f32 %v522_v62, %v523_v61  ;;  %v519_v3 = vadd.f32 %v891_v63, %v791_v39  ;;  %v513_v4 = vpop.f32.mrb[7].mxu1 }
 0x1c7   :  { %v514_v6 = vadd.f32 %v791_v39, %v513_v4 }
 0x1c8   :  { %v273_v7 = vrot.slane %v272_v0, 1  ;;  %v280_v8 = vrot.slane %v279_v1, 2  ;;  %v525_v17 = vrot.slane %v524_v2, 4  ;;  %v532_v18 = vsel %vm61_vm0, %v519_v3, -inf }
 0x1c9   :  { %v531_v20 = vsel %vm61_vm0, %v514_v6, -inf }
 0x1ca   :  { %v274_v21 = vmax.f32 %v272_v0, %v273_v7  ;;  %v281_v22 = vmax.f32 %v279_v1, %v280_v8  ;;  %v526_v23 = vmax.f32 %v524_v2, %v525_v17  ;;  %v533_v24 = vmax.f32 %v531_v20, %v532_v18 }
 0x1cc   :  { %v284_v25 = vsub.f32 %v248_v42, %v274_v21  ;;  %v285_v26 = vsub.f32 %v253_v19, %v274_v21  ;;  %v282_v27 = vrot.slane %v281_v22, 1  ;;  %v527_v28 = vrot.slane %v526_v23, 2  ;;  %v583_v21 = vpop.permute.xlu0 %582 }
 0x1cd   :  { %v534_v29 = vrot.slane %v533_v24, 4 }
 0x1ce   :  { %v288_v30 = vmul.f32 1.442695, %v284_v25  ;;  %v290_v31 = vmul.f32 1.442695, %v285_v26  ;;  %v283_v32 = vmax.f32 %v281_v22, %v282_v27  ;;  %v528_v33 = vmax.f32 %v526_v23, %v527_v28 }
 0x1cf   :  { %v535_v34 = vmax.f32 %v533_v24, %v534_v29 }
 0x1d0   :  { %927 = vpow2.f32 %v288_v30  ;;  %v286_v35 = vsub.f32 %v258_v49, %v283_v32  ;;  %v287_v36 = vsub.f32 %v263_v47, %v283_v32  ;;  %v529_v37 = vrot.slane %v528_v33, 1 }
 0x1d1   :  { %929 = vpow2.f32 %v290_v31  ;;  %v536_v9 = vrot.slane %v535_v34, 2  ;;  %v593_v31 = vpop.permute.xlu1 %592 }
 0x1d2   :  { %v292_v38 = vmul.f32 1.442695, %v286_v35  ;;  %v294_v39 = vmul.f32 1.442695, %v287_v36  ;;  %v530_v40 = vmax.f32 %v528_v33, %v529_v37  ;;  %v588_v35 = vpop.permute.xlu0 %587 }
 0x1d3   :  { %v537_v41 = vmax.f32 %v535_v34, %v536_v9 }
 0x1d4   :  { %931 = vpow2.f32 %v292_v38  ;;  %v540_v19 = vsub.f32 %v504_v58, %v530_v40  ;;  %v541_v42 = vsub.f32 %v509_v56, %v530_v40 }
 0x1d5   :  { %933 = vpow2.f32 %v294_v39  ;;  %v538_v43 = vrot.slane %v537_v41, 1  ;;  %v598_v39 = vpop.permute.xlu1 %597 }
 0x1d6   :  { %v544_v44 = vmul.f32 1.442695, %v540_v19  ;;  %v546_v45 = vmul.f32 1.442695, %v541_v42  ;;  %v660_v19 = vpop.permute.xlu0 %659 }
 0x1d7   :  { %v539_v46 = vmax.f32 %v537_v41, %v538_v43 }
 0x1d8   :  { %935 = vpow2.f32 %v544_v44 }
 0x1d9   :  { %937 = vpow2.f32 %v546_v45  ;;  %v542_v48 = vsub.f32 %v514_v6, %v539_v46  ;;  %v543_v49 = vsub.f32 %v519_v3, %v539_v46 }
 0x1da   :  { %v928_v47 = vpop.eup %927 }
 0x1db   :  { %v930_v50 = vpop.eup %929  ;;  %v296_v51 = vsel %vm61_vm0, %v928_v47, 0.0  ;;  %v548_v52 = vmul.f32 1.442695, %v542_v48  ;;  %v550_v53 = vmul.f32 1.442695, %v543_v49  ;;  %v665_v48 = vpop.permute.xlu1 %664 }
 0x1dc   :  { %v297_v54 = vsel %vm61_vm0, %v930_v50, 0.0 }
 0x1dd   :  { %v298_v55 = vadd.f32 %v297_v54, %v296_v51  ;;  %939 = vpow2.f32 %v548_v52 }
 0x1de   :  { %v932_v56 = vpop.eup %931  ;;  %941 = vpow2.f32 %v550_v53  ;;  %v670_v53 = vpop.permute.xlu0 %669 }
 0x1df   :  { %v934_v57 = vpop.eup %933  ;;  %v299_v58 = vrot.slane %v298_v55, 4  ;;  %v305_v59 = vsel %vm61_vm0, %v932_v56, 0.0 }
 0x1e0   :  { %v306_v60 = vsel %vm61_vm0, %v934_v57, 0.0 }
 0x1e1   :  { %v300_v61 = vadd.f32 %v299_v58, %v298_v55  ;;  %v307_v62 = vadd.f32 %v306_v60, %v305_v59 }
 0x1e2   :  { %v1161_v63 = vpop.eup %935 }
 0x1e3   :  { %v938_v0 = vpop.eup %937  ;;  %v301_v1 = vrot.slane %v300_v61, 2  ;;  %v308_v2 = vrot.slane %v307_v62, 4  ;;  %v552_v3 = vsel %vm61_vm0, %v1161_v63, 0.0 }
 0x1e4   :  { %v553_v4 = vsel %vm61_vm0, %v938_v0, 0.0 }
 0x1e5   :  { %v309_v6 = vadd.f32 %v308_v2, %v307_v62  ;;  %v554_v7 = vadd.f32 %v553_v4, %v552_v3  ;;  %v302_v8 = vadd.f32 %v301_v1, %v300_v61 }
 0x1e7   :  { %v1166_v17 = vpop.eup %939  ;;  %v310_v18 = vrot.slane %v309_v6, 2  ;;  %v555_v20 = vrot.slane %v554_v7, 4  ;;  %v303_v22 = vrot.slane %v302_v8, 1 }
 0x1e8   :  { %v1168_v23 = vpop.eup %941  ;;  %v561_v24 = vsel %vm61_vm0, %v1166_v17, 0.0 }
 0x1e9   :  { %v556_v25 = vadd.f32 %v555_v20, %v554_v7  ;;  %v562_v26 = vsel %vm61_vm0, %v1168_v23, 0.0  ;;  %v311_v27 = vadd.f32 %v310_v18, %v309_v6  ;;  %v304_v28 = vadd.f32 %v303_v22, %v302_v8  ;;  %v646_v6 = vpop.permute.xlu0 %645 }
 0x1ea   :  { %v563_v29 = vadd.f32 %v562_v26, %v561_v24 }
 0x1eb   :  { %v557_v30 = vrot.slane %v556_v25, 2  ;;  %v312_v32 = vrot.slane %v311_v27, 1  ;;  %943 = vrcp.f32 %v304_v28 }
 0x1ec   :  { %v564_v33 = vrot.slane %v563_v29, 4 }
 0x1ed   :  { %v313_v34 = vadd.f32 %v312_v32, %v311_v27  ;;  %v558_v36 = vadd.f32 %v557_v30, %v556_v25 }
 0x1ee   :  { %v565_v37 = vadd.f32 %v564_v33, %v563_v29 }
 0x1ef   :  { %945 = vrcp.f32 %v313_v34  ;;  %v559_v9 = vrot.slane %v558_v36, 1 }
 0x1f0   :  { %v566_v38 = vrot.slane %v565_v37, 2 }
 0x1f1   :  { %v560_v40 = vadd.f32 %v559_v9, %v558_v36 }
 0x1f2   :  { %v567_v41 = vadd.f32 %v566_v38, %v565_v37 }
 0x1f3   :  { %947 = vrcp.f32 %v560_v40 }
 0x1f4   :  { %v568_v42 = vrot.slane %v567_v41, 1 }
 0x1f5   :  { %v944_v43 = vpop.eup %943 }
 0x1f6   :  { %v316_v44 = vmul.f32 %v944_v43, %v928_v47  ;;  %v317_v45 = vmul.f32 %v944_v43, %v930_v50  ;;  %v569_v46 = vadd.f32 %v568_v42, %v567_v41 }
 0x1f8   :  { %v320_v49 = vmul.f32 %v316_v44, %v1026_v5  ;;  %v321_v51 = vmul.f32 %v317_v45, %v1042_v10  ;;  %949 = vrcp.f32 %v569_v46  ;;  %v675_v5 = vpop.permute.xlu1 %674 }
 0x1f9   :  { %v946_v52 = vpop.eup %945  ;;  %951 = vrcp.f32 %v646_v6 }
 0x1fa   :  { %v318_v54 = vmul.f32 %v946_v52, %v932_v56  ;;  %v600_v55 = vmul.f32 %v583_v21, %v320_v49  ;;  %v319_v58 = vmul.f32 %v946_v52, %v934_v57  ;;  %v601_v59 = vmul.f32 %v588_v35, %v321_v51 }
 0x1fc   :  { %v322_v60 = vmul.f32 %v318_v54, %v1048_v11  ;;  %v604_v61 = vsel %vm61_vm0, %v600_v55, 0.0  ;;  %v323_v47 = vmul.f32 %v319_v58, %v1057_v12  ;;  %v605_v50 = vsel %vm61_vm0, %v601_v59, 0.0  ;;  %v651_v26 = vpop.permute.xlu1 %650 }
 0x1fd   :  { %v948_v62 = vpop.eup %947  ;;  %v606_v1 = vadd.f32 %v605_v50, %v604_v61  ;;  %953 = vrcp.f32 %v651_v26 }
 0x1fe   :  { %v602_v2 = vmul.f32 %v593_v31, %v322_v60  ;;  %v603_v10 = vmul.f32 %v598_v39, %v323_v47  ;;  %v573_v3 = vmul.f32 %v948_v62, %v938_v0  ;;  %v572_v4 = vmul.f32 %v948_v62, %v1161_v63  ;;  %v722_v31 = vpop.permute.xlu0 %721 }
 0x1ff   :  { %v607_v56 = vrot.slane %v606_v1, 4  ;;  %955 = vrcp.f32 %v722_v31 }
 0x200   :  { %v613_v57 = vsel %vm61_vm0, %v602_v2, 0.0  ;;  %v614_v11 = vsel %vm61_vm0, %v603_v10, 0.0  ;;  %v577_v7 = vmul.f32 %v573_v3, %v1071_v14  ;;  %v576_v12 = vmul.f32 %v572_v4, %v1062_v13 }
 0x201   :  { %v615_v8 = vadd.f32 %v614_v11, %v613_v57  ;;  %v608_v18 = vadd.f32 %v607_v56, %v606_v1 }
 0x202   :  { %v950_v20 = vpop.eup %949  ;;  %v678_v21 = vmul.f32 %v665_v48, %v577_v7  ;;  %v677_v22 = vmul.f32 %v660_v19, %v576_v12 }
 0x203   :  { %v616_v24 = vrot.slane %v615_v8, 4  ;;  %v609_v0 = vrot.slane %v608_v18, 2  ;;  %v575_v63 = vmul.f32 %v950_v20, %v1168_v23  ;;  %v574_v25 = vmul.f32 %v950_v20, %v1166_v17  ;;  %v952_v42 = vpop.eup %951 }
 0x204   :  { %v682_v27 = vsel %vm61_vm0, %v678_v21, 0.0  ;;  %v681_v28 = vsel %vm61_vm0, %v677_v22, 0.0 }
 0x205   :  { %v617_v14 = vadd.f32 %v616_v24, %v615_v8  ;;  %v610_v13 = vadd.f32 %v609_v0, %v608_v18  ;;  %v683_v29 = vadd.f32 %v682_v27, %v681_v28  ;;  %v579_v30 = vmul.f32 %v575_v63, %v1085_v16  ;;  %v727_v16 = vpop.permute.xlu1 %726 }
 0x206   :  { %v578_v32 = vmul.f32 %v574_v25, %v1076_v15  ;;  %957 = vrcp.f32 %v727_v16 }
 0x207   :  { %v618_v33 = vrot.slane %v617_v14, 2  ;;  %v611_v34 = vrot.slane %v610_v13, 1  ;;  %v684_v35 = vrot.slane %v683_v29, 4  ;;  %v680_v23 = vmul.f32 %v675_v5, %v579_v30  ;;  %v954_v46 = vpop.eup %953 }
 0x208   :  { %v679_v36 = vmul.f32 %v670_v53, %v578_v32 }
 0x209   :  { %v619_v17 = vadd.f32 %v618_v33, %v617_v14  ;;  %v612_v37 = vadd.f32 %v611_v34, %v610_v13  ;;  %v685_v9 = vadd.f32 %v684_v35, %v683_v29  ;;  %v691_v38 = vsel %vm61_vm0, %v680_v23, 0.0  ;;  %v956_v58 = vpop.eup %955 }
 0x20a   :  { %v690_v39 = vsel %vm61_vm0, %v679_v36, 0.0 }
 0x20b   :  { %v620_v40 = vrot.slane %v619_v17, 1  ;;  %v686_v41 = vrot.slane %v685_v9, 2  ;;  %v692_v19 = vadd.f32 %v691_v38, %v690_v39  ;;  %v654_v45 = vmul.f32 %v952_v42, %v612_v37 }
 0x20d   :  { %v621_v43 = vadd.f32 %v620_v40, %v619_v17  ;;  %v687_v15 = vadd.f32 %v686_v41, %v685_v9  ;;  %v693_v44 = vrot.slane %v692_v19, 4  ;;  %v744_v54 = vmul.f32 %v654_v45, %v654_v45 }
 0x20f   :  { %v688_v48 = vrot.slane %v687_v15, 1  ;;  %v694_v49 = vadd.f32 %v693_v44, %v692_v19  ;;  %v656_v51 = vmul.f32 %v954_v46, %v621_v43 }
 0x210   :  { %v958_v5 = vpop.eup %957 }
 0x211   :  { %v689_v52 = vadd.f32 %v688_v48, %v687_v15  ;;  %v695_v53 = vrot.slane %v694_v49, 2  ;;  %v745_v55 = vmul.f32 %v656_v51, %v656_v51 }
 0x213   :  { %v696_v59 = vadd.f32 %v695_v53, %v694_v49  ;;  %v748_v60 = vsel %vm737_vm2, %v745_v55, %v744_v54  ;;  %v730_v61 = vmul.f32 %v956_v58, %v689_v52 }
 0x214   :  { %v750_v47 = vsel %vm740_vm3, %v748_v60, 0.0 }
 0x215   :  { %v697_v50 = vrot.slane %v696_v59, 1  ;;  %751 = vadd.xlane.f32.xlu0 %v750_v47  ;;  %v733_v62 = vmul.f32 %v730_v61, %v654_v45  ;;  %v760_v10 = vmul.f32 %v730_v61, %v730_v61 }
 0x217   :  { %v698_v1 = vadd.f32 %v697_v50, %v696_v59 }
 0x219   :  { %v732_v2 = vmul.f32 %v958_v5, %v698_v1 }
 0x21b   :  { %v761_v3 = vmul.f32 %v732_v2, %v732_v2  ;;  %v734_v4 = vmul.f32 %v732_v2, %v656_v51 }
 0x21d   :  { %v764_v56 = vsel %vm737_vm2, %v761_v3, %v760_v10  ;;  %v738_v6 = vsel %vm737_vm2, %v734_v4, %v733_v62 }
 0x21e   :  { %v766_v57 = vsel %vm740_vm3, %v764_v56, 0.0  ;;  %v741_v11 = vsel %vm740_vm3, %v738_v6, 0.0 }
 0x21f   :  { %767 = vadd.xlane.f32.xlu1 %v766_v57  ;;  %742 = vadd.xlane.f32.xlu0 %v741_v11 }
 0x2a2   :  { %v752_v7 = vpop.xlane.xlu0 %751 }
 0x2a3   :  { %959 = vrsqrt.f32 %v752_v7  ;;  %vm755_vm4 = vcmp.eq.f32.partialorder %v752_v7, inf  ;;  %v758_v24 = vand.u32 2147483648, %v752_v7  ;;  %vm757_vm6 = vcmp.eq.f32.partialorder %v752_v7, 0.0 }
 0x2ac   :  { %v768_v12 = vpop.xlane.xlu1 %767  ;;  %v743_v13 = vpop.xlane.xlu0 %742 }
 0x2ad   :  { %961 = vrsqrt.f32 %v768_v12  ;;  %v960_v8 = vpop.eup %959  ;;  %vm771_vm5 = vcmp.eq.f32.partialorder %v768_v12, inf  ;;  %v774_v0 = vand.u32 2147483648, %v768_v12  ;;  %vm773_vm7 = vcmp.eq.f32.partialorder %v768_v12, 0.0 }
 0x2ae   :  { %v754_v18 = vmul.f32 %v960_v8, %v752_v7 }
 0x2b0   :  { %v756_v21 = vsel %vm755_vm4, %v752_v7, %v754_v18 }
 0x2b1   :  { %v759_v25 = vsel %vm757_vm6, %v758_v24, %v756_v21 }
 0x2b7   :  { %v962_v20 = vpop.eup %961 }
 0x2b8   :  { %v770_v22 = vmul.f32 %v962_v20, %v768_v12 }
 0x2ba   :  { %v772_v63 = vsel %vm771_vm5, %v768_v12, %v770_v22 }
 0x2bb   :  { %v775_v26 = vsel %vm773_vm7, %v774_v0, %v772_v63 }
 0x2bc   :  { %v776_v27 = vmul.f32 %v775_v26, %v759_v25 }
 0x2be   :  { %v777_v28 = vmax.f32 %v776_v27, 1e-08 }
 0x2c0   :  { %963 = vrcp.f32 %v777_v28 }
 0x2ca   :  { %v964_v14 = vpop.eup %963 }
 0x2cb   :  { %v779_v29 = vmul.f32 %v964_v14, %v743_v13 }
 0x2cd   :  { %781 = vst.msk [vmem:[%s1210_s8] sm:$0x3] %vm780_vm8, %v779_v29 }

// kernel: xss_bert_forward.3
= control target key start
LH: loop header
LB: loop body
LE: loop exit
PB: predicated region body
PF: predicated region fallthrough
CT: control target
= control target key end

     0   :  { %s2498_s25 = smov 0   ;;  %s2945_s0 = inlined_call_operand.vmem [shape: f32[2,32,32], index: 0, kind: input, shape index: {}]   ;;  %s2946_s1 = inlined_call_operand.vmem [shape: f32[2,1,32], index: 1, kind: input, shape index: {}]   ;;  %s2947_s2 = inlined_call_operand.vmem [shape: f32[2,1,32], index: 2, kind: input, shape index: {}]   ;;  %s2948_s3 = inlined_call_operand.vmem [shape: f32[6,32], index: 3, kind: input, shape index: {}]   ;;  %s2949_s4 = inlined_call_operand.vmem [shape: f32[32,96], index: 4, kind: input, shape index: {}]   ;;  %s2950_s5 = inlined_call_operand.vmem [shape: f32[1,96], index: 5, kind: input, shape index: {}]   ;;  %s2951_s6 = inlined_call_operand.vmem [shape: f32[32,32], index: 6, kind: input, shape index: {}]   ;;  %s2952_s7 = inlined_call_operand.vmem [shape: f32[1,32], index: 7, kind: input, shape index: {}]   ;;  %s2953_s8 = inlined_call_operand.vmem [shape: f32[32,128], index: 8, kind: input, shape index: {}]   ;;  %s2954_s9 = inlined_call_operand.vmem [shape: f32[1,128], index: 9, kind: input, shape index: {}]   ;;  %s2955_s10 = inlined_call_operand.vmem [shape: f32[128,32], index: 10, kind: input, shape index: {}]   ;;  %s2956_s11 = inlined_call_operand.vmem [shape: f32[1,32], index: 11, kind: input, shape index: {}]   ;;  %s2957_s12 = inlined_call_operand.vmem [shape: f32[2,32,32], index: 12, kind: output, shape index: {0}]   ;;  %s2958_s13 = inlined_call_operand.vmem [shape: f32[2,2,16,2], index: 13, kind: output, shape index: {1}]  }
   0x1 LB: > { %s1926_s26 = sadd.s32 4294967295, %s2419_s25   ;;  %p1930_p0 = scmp.ge.s32.totalorder %s2419_s25, 1  ;;  %s2419_s25 = sphi %s2498_s25, %s24_s25  }
   0x2   : > { %p406_p1 = scmp.lt.s32.totalorder %s2419_s25, 3 }
   0x4   : > { %p407_p2 = pnand %p1930_p0, %p406_p1 }
   0x5   : > { %p461_p3 = scmp.lt.s32.totalorder (!%p407_p2), %s1926_s26, 1  ;;  %vm487_vm0 = vcmask (!%p407_p2), 261120   ;;  %v557_v28 = vld [vmem:[%s2949_s4] sm:$0xff] (!%p407_p2)  ;;  %v558_v29 = vld [vmem:[%s2949_s4 + $0x8] sm:$0xff] (!%p407_p2)  ;;  %v559_v30 = vld [vmem:[%s2949_s4 + $0x10] sm:$0xff] (!%p407_p2)  ;;  %v541_v33 = vlaneseq (!%p407_p2)  ;;  %v2421_v38 = vmov (!%p407_p2), 0  }
   0x6   : > { %410 = sbr.rel (%p407_p2) target bundleno = 3466 (0xd8a), region = 68  ;;  %v2197_v31 = vpack.c.bf16 (!%p407_p2), %v558_v29, %v557_v28  ;;  %v560_v32 = vld [vmem:[%s2949_s4 + $0x18] sm:$0xff] (!%p407_p2)  ;;  %v2555_v53 = vld [vmem:[%s2948_s3] sm:$0x3f] (!%p407_p2)  ;;  %vm679_vm2 = vcmask (!%p407_p2), 130048   ;;  %s2422_s15 = smov (!%p407_p2), 96  }
   0x7   : > { %v2201_v34 = vpack.c.bf16 (!%p407_p2), %v560_v32, %v559_v30  ;;  %v2547_v36 = vshrl.u32 (!%p407_p2), %v541_v33, 7  ;;  %vm2603_vm3 = vmpackc.low (!%p407_p2), %vm679_vm2, %vm679_vm2  ;;  %s2424_s19 = smov (!%p407_p2), 80   ;;  %s2425_s20 = smov (!%p407_p2), 112   ;;  %vm979_vm5 = vcmask (!%p407_p2), 7168   ;;  %vm982_vm6 = vcmask (!%p407_p2), 15360  }
   0x8   : > { %2198 = vmatprep.subr.bf16.mxu0 (!%p407_p2), %v2197_v31  ;;  %s2426_s21 = smov (!%p407_p2), 48   ;;  %s2427_s16 = smov (!%p407_p2), 16  }
   0x9   : > { %2200 = vmatpush3.bf16.msra.mxu0 (!%p407_p2), %v2197_v31  ;;  %v543_v37 = vsub.s32 (!%p407_p2), 0, %v2547_v36  ;;  %v551_v54 = vsub.s32 (!%p407_p2), 1, %v2547_v36 }
   0xa   : > { %2202 = vmatprep.subr.bf16.mxu0 (!%p407_p2), %v2201_v34 }
   0xb   : > { %v544_v55 = vrot.slane (!%p407_p2), %v2555_v53, %v543_v37  ;;  %v552_v58 = vrot.slane (!%p407_p2), %v2555_v53, %v551_v54 }
   0xd   : > { %s2962_s26 = smov (!%p461_p3, %s1926_s26), 1  ;;  %2204 = vmatpush3.bf16.msra.mxu0 %v2201_v34 }
   0xe   : > { %s2509_s27 = sshll.u32 %s2962_s26, 5  ;;  %s471_s22 = scalar_lea.vmem %s2947_s2, %s2962_s26 }
   0xf   : > { %s465_s30 = scalar_lea.vmem %s2945_s0, %s2509_s27  ;;  %v666_v35 = vld [vmem:[%s471_s22] sm:$0x1]  ;;  %s468_s18 = scalar_lea.vmem %s2946_s1, %s2962_s26 }
  0x10   : > { %v482_v0 = vld [vmem:[%s465_s30] sm:$0xff]  ;;  %v484_v1 = vld [vmem:[%s465_s30 + $0x10] sm:$0xff]  ;;  %v483_v4 = vld [vmem:[%s465_s30 + $0x8] sm:$0xff]  ;;  %vm948_vm1 = vcmp.gt.f32.partialorder %v666_v35, 0.0  ;;  %s2423_s26 = smov 64   ;;  %s2911_s22 = scalar_lea.vmem %s2958_s13, %s2509_s27 }
  0x11   : > { %v488_v2 = vsel %vm487_vm0, %v482_v0, 0.0  ;;  %v494_v3 = vsel %vm487_vm0, %v484_v1, 0.0  ;;  %v485_v5 = vld [vmem:[%s465_s30 + $0x18] sm:$0xff]  ;;  %v491_v6 = vsel %vm487_vm0, %v483_v4, 0.0  ;;  %v949_v39 = vsel %vm948_vm1, 1, %v2421_v38  ;;  %s476_s30 = scalar_lea.vmem %s2957_s12, %s2509_s27 }
  0x12   : > { %489 = vadd.xlane.f32.xlu0 %v488_v2  ;;  %495 = vadd.xlane.f32.xlu1 %v494_v3  ;;  %v497_v7 = vsel %vm487_vm0, %v485_v5, 0.0  ;;  %v2550_v40 = vrot.slane %v949_v39, %v543_v37  ;;  %v2625_v29 = vld [vmem:[%s468_s18] ss:$0 sm:$0xff] }
  0x14   : > { %vm954_vm4 = vcmp.eq.s32.totalorder %v2550_v40, 1 }
  0x16   : > { %492 = vadd.xlane.f32.xlu0 %v491_v6  ;;  %498 = vadd.xlane.f32.xlu1 %v497_v7 }
  0x9f   : > { %v490_v8 = vpop.xlane.xlu0 %489  ;;  %v496_v9 = vpop.xlane.xlu1 %495 }
  0xa0   : > { %v501_v10 = vmul.f32 0.03125, %v490_v8  ;;  %v503_v11 = vmul.f32 0.03125, %v496_v9  ;;  %v1937_v9 = vld [vmem:[%s2950_s5] ss:$0 sm:$0xff] }
  0xa2   : > { %v505_v12 = vsub.f32 %v482_v0, %v501_v10  ;;  %v2519_v13 = vsub.f32 %v484_v1, %v503_v11 }
  0xa3   : > { %v493_v14 = vpop.xlane.xlu0 %492  ;;  %v499_v15 = vpop.xlane.xlu1 %498 }
  0xa4   : > { %v502_v16 = vmul.f32 0.03125, %v493_v14  ;;  %v504_v17 = vmul.f32 0.03125, %v499_v15  ;;  %v509_v18 = vmul.f32 %v505_v12, %v505_v12  ;;  %v511_v19 = vmul.f32 %v2519_v13, %v2519_v13 }
  0xa6   : > { %v506_v20 = vsub.f32 %v483_v4, %v502_v16  ;;  %v2523_v21 = vsub.f32 %v485_v5, %v504_v17  ;;  %v513_v22 = vsel %vm487_vm0, %v509_v18, 0.0  ;;  %v519_v23 = vsel %vm487_vm0, %v511_v19, 0.0 }
  0xa7   : > { %514 = vadd.xlane.f32.xlu0 %v513_v22 }
  0xa8   : > { %v510_v24 = vmul.f32 %v506_v20, %v506_v20  ;;  %v512_v25 = vmul.f32 %v2523_v21, %v2523_v21 }
  0xaa   : > { %v516_v26 = vsel %vm487_vm0, %v510_v24, 0.0  ;;  %v522_v27 = vsel %vm487_vm0, %v512_v25, 0.0 }
  0xab   : > { %520 = vadd.xlane.f32.xlu0 %v519_v23  ;;  %517 = vadd.xlane.f32.xlu1 %v516_v26 }
  0xaf   : > { %523 = vadd.xlane.f32.xlu1 %v522_v27 }
 0x134   : > { %v515_v41 = vpop.xlane.xlu0 %514 }
 0x135   : > { %v525_v42 = vmul.f32 0.03125, %v515_v41 }
 0x137   : > { %v529_v43 = vadd.f32 1e-12, %v525_v42 }
 0x138   : > { %v518_v44 = vpop.xlane.xlu1 %517  ;;  %v521_v45 = vpop.xlane.xlu0 %520 }
 0x139   : > { %2348 = vrsqrt.f32 %v529_v43  ;;  %v526_v46 = vmul.f32 0.03125, %v518_v44  ;;  %v527_v47 = vmul.f32 0.03125, %v521_v45 }
 0x13b   : > { %v530_v48 = vadd.f32 1e-12, %v526_v46  ;;  %v531_v49 = vadd.f32 1e-12, %v527_v47 }
 0x13c   : > { %v524_v50 = vpop.xlane.xlu1 %523 }
 0x13d   : > { %2350 = vrsqrt.f32 %v530_v48  ;;  %v528_v51 = vmul.f32 0.03125, %v524_v50 }
 0x13e   : > { %2352 = vrsqrt.f32 %v531_v49 }
 0x13f   : > { %v532_v52 = vadd.f32 1e-12, %v528_v51 }
 0x141   : > { %2354 = vrsqrt.f32 %v532_v52 }
 0x143   : > { %v2349_v56 = vpop.eup %2348 }
 0x144   : > { %v537_v57 = vmul.f32 %v2349_v56, %v505_v12 }
 0x146   : > { %v545_v59 = vmul.f32 %v544_v55, %v537_v57 }
 0x147   : > { %v2351_v60 = vpop.eup %2350 }
 0x148   : > { %v2353_v61 = vpop.eup %2352  ;;  %v2560_v62 = vadd.f32 %v552_v58, %v545_v59  ;;  %v538_v63 = vmul.f32 %v2351_v60, %v506_v20 }
 0x149   : > { %v539_v0 = vmul.f32 %v2353_v61, %v2519_v13 }
 0x14a   : > { %2069 = vmatprep.mubr.msk.f32.mxu0 %vm487_vm0, %v2560_v62  ;;  %v546_v1 = vmul.f32 %v544_v55, %v538_v63 }
 0x14b   : > { %v2355_v2 = vpop.eup %2354  ;;  %v547_v3 = vmul.f32 %v544_v55, %v539_v0 }
 0x14c   : > { %v2565_v4 = vadd.f32 %v552_v58, %v546_v1  ;;  %v540_v5 = vmul.f32 %v2355_v2, %v2523_v21 }
 0x14d   : > { %v2568_v6 = vadd.f32 %v552_v58, %v547_v3 }
 0x14e   : > { %2070 = vmatmul.mubr.msk.f32.vlgmr.msra.gmra.mrb[0].mxu0 %vm487_vm0, %v2565_v4  ;;  %v548_v7 = vmul.f32 %v544_v55, %v540_v5 }
 0x14f   : > { %2072 = vmatprep.mubr.msk.f32.mxu0 %vm487_vm0, %v2568_v6 }
 0x150   : > { %v2574_v8 = vadd.f32 %v552_v58, %v548_v7 }
 0x152   : > { %2073 = vmatmul.mubr.msk.f32.gmra.mrb[2].mxu0 %vm487_vm0, %v2574_v8 }
 0x221   : > { %v2071_v10 = vpop.f32.mrb[0].mxu0 }
 0x222   : > { %v2581_v11 = vadd.f32 %v2071_v10, %v1937_v9  ;;  %v646_v12 = vpop.f32.mrb[1].mxu0 }
 0x223   : > { %v2583_v13 = vadd.f32 %v1937_v9, %v646_v12 }
 0x225   : > { %v2074_v14 = vpop.f32.mrb[2].mxu0  ;;  %2083 = vmatprep.mubr.msk.f32.mxu0 %vm679_vm2, %v2583_v13  ;;  %v2589_v15 = vpack.i.bf16 %v2581_v11, %v2583_v13 }
 0x226   : > { %v2591_v16 = vadd.f32 %v2074_v14, %v1937_v9  ;;  %v656_v17 = vpop.f32.mrb[3].mxu0 }
 0x227   : > { %v2593_v18 = vadd.f32 %v1937_v9, %v656_v17  ;;  %2309 = vrot.lane.b32.xlu0 %v2589_v15, %s2422_s15 }
 0x229   : > { %v2598_v19 = vpack.i.bf16 %v2591_v16, %v2593_v18 }
 0x22b   : > { %2314 = vrot.lane.b32.xlu1 %v2598_v19, %s2422_s15 }
 0x299   : > { %v2310_v20 = vpop.permute.xlu0 %2309 }
 0x29a   : > { %v2312_v21 = vunpack.i.h.bf16 %v2310_v20  ;;  %v2311_v22 = vunpack.i.l.bf16 %v2310_v20 }
 0x29c   : > { %v2205_v24 = vpack.c.bf16 %v2312_v21, %v2311_v22 }
 0x29d   : > { %v2315_v25 = vpop.permute.xlu1 %2314 }
 0x29e   : > { %v2317_v26 = vunpack.i.h.bf16 %v2315_v25  ;;  %v2316_v27 = vunpack.i.l.bf16 %v2315_v25  ;;  %2207 = vmatprep.subr.msk.bf16.mxu0 %vm2603_vm3, %v2205_v24 }
 0x29f   : > { %2210 = vmatpush3.bf16.xpose.msk.msra.mxu0 %vm2603_vm3, %v2205_v24 }
 0x2a0   : > { %v2211_v28 = vpack.c.bf16 %v2317_v26, %v2316_v27 }
 0x2a2   : > { %2213 = vmatprep.subr.msk.bf16.mxu0 %vm2603_vm3, %v2211_v28 }
 0x2a7   : > { %2216 = vmatpush3.bf16.xpose.msk.msra.mxu0 %vm2603_vm3, %v2211_v28 }
 0x2ae   : > { %2084 = vmatmul.mubr.msk.f32.vlgmr.msra.gmra.mrb[4].mxu0 %vm679_vm2, %v2581_v11 }
 0x2af   : > { %2086 = vmatprep.mubr.msk.f32.mxu0 %vm679_vm2, %v2593_v18 }
 0x2b2   : > { %2087 = vmatmul.mubr.msk.f32.gmra.mrb[6].mxu0 %vm679_vm2, %v2591_v16 }
 0x381   : > { %v2085_v30 = vpop.f32.mrb[4].mxu0 }
 0x382   : > { %v782_v31 = vmul.f32 0.25, %v2085_v30  ;;  %v762_v32 = vpop.f32.mrb[5].mxu0 }
 0x383   : > { %v781_v33 = vmul.f32 0.25, %v762_v32 }
 0x384   : > { %v792_v34 = vadd.f32 %v2625_v29, %v782_v31 }
 0x385   : > { %v2088_v35 = vpop.f32.mrb[6].mxu0  ;;  %v791_v37 = vadd.f32 %v2625_v29, %v781_v33 }
 0x386   : > { %v784_v38 = vmul.f32 0.25, %v2088_v35  ;;  %v772_v39 = vpop.f32.mrb[7].mxu0  ;;  %v798_v41 = vsel %vm487_vm0, %v792_v34, -inf }
 0x387   : > { %v783_v42 = vmul.f32 0.25, %v772_v39  ;;  %799 = vmax.xlane.f32.xlu0 %v798_v41  ;;  %v795_v43 = vsel %vm487_vm0, %v791_v37, -inf }
 0x388   : > { %796 = vmax.xlane.f32.xlu1 %v795_v43  ;;  %v794_v44 = vadd.f32 %v2625_v29, %v784_v38 }
 0x389   : > { %v793_v45 = vadd.f32 %v2625_v29, %v783_v42 }
 0x38a   : > { %v804_v46 = vsel %vm487_vm0, %v794_v44, -inf }
 0x38b   : > { %v801_v47 = vsel %vm487_vm0, %v793_v45, -inf }
 0x38c   : > { %805 = vmax.xlane.f32.xlu1 %v804_v46  ;;  %802 = vmax.xlane.f32.xlu0 %v801_v47 }
 0x414   : > { %v800_v48 = vpop.xlane.xlu0 %799 }
 0x415   : > { %v808_v49 = vsub.f32 %v792_v34, %v800_v48  ;;  %v797_v50 = vpop.xlane.xlu1 %796 }
 0x416   : > { %v807_v51 = vsub.f32 %v791_v37, %v797_v50 }
 0x417   : > { %v813_v52 = vmul.f32 1.442695, %v808_v49 }
 0x418   : > { %v811_v54 = vmul.f32 1.442695, %v807_v51 }
 0x419   : > { %2356 = vpow2.f32 %v813_v52  ;;  %v803_v59 = vpop.xlane.xlu0 %802  ;;  %v806_v61 = vpop.xlane.xlu1 %805 }
 0x41a   : > { %2358 = vpow2.f32 %v811_v54  ;;  %v809_v60 = vsub.f32 %v793_v45, %v803_v59  ;;  %v810_v0 = vsub.f32 %v794_v44, %v806_v61 }
 0x41c   : > { %v815_v63 = vmul.f32 1.442695, %v809_v60  ;;  %v817_v1 = vmul.f32 1.442695, %v810_v0 }
 0x41e   : > { %2360 = vpow2.f32 %v815_v63 }
 0x41f   : > { %2362 = vpow2.f32 %v817_v1 }
 0x423   : > { %v2357_v55 = vpop.eup %2356 }
 0x424   : > { %v2359_v56 = vpop.eup %2358  ;;  %v822_v57 = vsel %vm487_vm0, %v2357_v55, 0.0 }
 0x425   : > { %823 = vadd.xlane.f32.xlu1 %v822_v57  ;;  %v819_v58 = vsel %vm487_vm0, %v2359_v56, 0.0 }
 0x426   : > { %820 = vadd.xlane.f32.xlu0 %v819_v58 }
 0x428   : > { %v2361_v2 = vpop.eup %2360 }
 0x429   : > { %v825_v3 = vsel %vm487_vm0, %v2361_v2, 0.0  ;;  %v2363_v5 = vpop.eup %2362 }
 0x42a   : > { %v828_v7 = vsel %vm487_vm0, %v2363_v5, 0.0 }
 0x436   : > { %2324 = vrot.lane.b32.xlu1 %v2598_v19, %s2423_s26 }
 0x43a   : > { %2329 = vrot.lane.b32.xlu1 %v2589_v15, %s2424_s19 }
 0x43c   : > { %2319 = vrot.lane.b32.xlu0 %v2589_v15, %s2423_s26 }
 0x43e   : > { %2334 = vrot.lane.b32.xlu1 %v2598_v19, %s2424_s19 }
 0x45b   : > { %826 = vadd.xlane.f32.xlu0 %v825_v3 }
 0x462   : > { %829 = vadd.xlane.f32.xlu1 %v828_v7 }
 0x471   : > { %985 = vrot.lane.b32.xlu0 %v2583_v13, %s2425_s20 }
 0x473   : > { %987 = vrot.lane.b32.xlu1 %v2581_v11, %s2425_s20 }
 0x475   : > { %989 = vrot.lane.b32.xlu0 %v2593_v18, %s2425_s20 }
 0x477   : > { %991 = vrot.lane.b32.xlu1 %v2591_v16, %s2425_s20 }
 0x4b2   : > { %v824_v9 = vpop.xlane.xlu1 %823 }
 0x4b3   : > { %v821_v10 = vpop.xlane.xlu0 %820 }
 0x4b4   : > { %2364 = vrcp.f32 %v821_v10 }
 0x4b5   : > { %2366 = vrcp.f32 %v824_v9 }
 0x4b6   : > { %v2325_v12 = vpop.permute.xlu1 %2324 }
 0x4b7   : > { %v2320_v14 = vpop.permute.xlu0 %2319  ;;  %v2327_v17 = vunpack.i.h.bf16 %v2325_v12  ;;  %v2326_v20 = vunpack.i.l.bf16 %v2325_v12 }
 0x4b8   : > { %v2322_v21 = vunpack.i.h.bf16 %v2320_v14  ;;  %v2321_v22 = vunpack.i.l.bf16 %v2320_v14 }
 0x4b9   : > { %v2221_v25 = vpack.c.bf16 %v2327_v17, %v2326_v20 }
 0x4ba   : > { %v2217_v13 = vpack.c.bf16 %v2322_v21, %v2321_v22  ;;  %v2330_v24 = vpop.permute.xlu1 %2329 }
 0x4bb   : > { %v2332_v11 = vunpack.i.h.bf16 %v2330_v24  ;;  %v2331_v26 = vunpack.i.l.bf16 %v2330_v24 }
 0x4bc   : > { %2218 = vmatprep.subr.bf16.mxu0 %v2217_v13 }
 0x4bd   : > { %2220 = vmatpush3.bf16.msra.mxu0 %v2217_v13  ;;  %v2225_v28 = vpack.c.bf16 %v2332_v11, %v2331_v26 }
 0x4be   : > { %v2365_v18 = vpop.eup %2364  ;;  %2222 = vmatprep.subr.bf16.mxu0 %v2221_v25  ;;  %v2335_v31 = vpop.permute.xlu1 %2334 }
 0x4bf   : > { %v2367_v16 = vpop.eup %2366  ;;  %v2651_v27 = vmul.f32 %v2365_v18, %v2359_v56  ;;  %v2337_v32 = vunpack.i.h.bf16 %v2335_v31  ;;  %v2336_v33 = vunpack.i.l.bf16 %v2335_v31 }
 0x4c0   : > { %v2655_v30 = vmul.f32 %v2367_v16, %v2357_v55 }
 0x4c1   : > { %2224 = vmatpush3.bf16.msra.mxu0 %v2221_v25  ;;  %2097 = vmatprep.mubr.msk.f32.mxu0 %vm487_vm0, %v2651_v27  ;;  %v2231_v34 = vpack.c.bf16 %v2337_v32, %v2336_v33 }
 0x4c2   : > { %2227 = vmatprep.subr.msk.bf16.mxu0 %vm2603_vm3, %v2225_v28 }
 0x4c4   : > { %2098 = vmatmul.mubr.msk.f32.vlgmr.msra.gmra.mrb[8].mxu0 %vm487_vm0, %v2655_v30 }
 0x4ca   : > { %2230 = vmatpush3.bf16.xpose.msk.msra.mxu0 %vm2603_vm3, %v2225_v28 }
 0x4cb   : > { %2233 = vmatprep.subr.msk.bf16.mxu0 %vm2603_vm3, %v2231_v34 }
 0x4d2   : > { %2236 = vmatpush3.bf16.xpose.msk.msra.mxu0 %vm2603_vm3, %v2231_v34 }
 0x4e8   : > { %v827_v35 = vpop.xlane.xlu0 %826 }
 0x4e9   : > { %2368 = vrcp.f32 %v827_v35 }
 0x4ec   : > { %v986_v42 = vpop.permute.xlu0 %985 }
 0x4ef   : > { %v830_v37 = vpop.xlane.xlu1 %829 }
 0x4f0   : > { %2370 = vrcp.f32 %v830_v37  ;;  %v990_v23 = vpop.permute.xlu0 %989 }
 0x4f3   : > { %v2369_v38 = vpop.eup %2368  ;;  %v988_v44 = vpop.permute.xlu1 %987 }
 0x4f4   : > { %v2667_v39 = vmul.f32 %v2369_v38, %v2361_v2 }
 0x4f6   : > { %2100 = vmatprep.mubr.msk.f32.mxu0 %vm487_vm0, %v2667_v39 }
 0x4f7   : > { %v992_v45 = vpop.permute.xlu1 %991 }
 0x4fa   : > { %v2371_v41 = vpop.eup %2370 }
 0x4fb   : > { %v2671_v43 = vmul.f32 %v2371_v41, %v2363_v5 }
 0x4fd   : > { %2101 = vmatmul.mubr.msk.f32.gmra.mrb[10].mxu0 %vm487_vm0, %v2671_v43 }
 0x4fe   : > { %2111 = vmatprep.mubr.msk.f32.mxu0 %vm679_vm2, %v986_v42 }
 0x501   : > { %2112 = vmatmul.mubr.msk.f32.vlgmr.msra.gmra.mrb[12].mxu0 %vm679_vm2, %v988_v44 }
 0x502   : > { %2114 = vmatprep.mubr.msk.f32.mxu0 %vm679_vm2, %v990_v23 }
 0x505   : > { %2115 = vmatmul.mubr.msk.f32.gmra.mrb[14].mxu0 %vm679_vm2, %v992_v45 }
 0x597   : > { %v2679_v46 = vpop.f32.mrb[8].mxu0 }
 0x598   : > { %v2681_v47 = vpop.f32.mrb[9].mxu0 }
 0x5d0   : > { %v2683_v48 = vpop.f32.mrb[10].mxu0 }
 0x5d1   : > { %v2685_v49 = vpop.f32.mrb[11].mxu0 }
 0x5d4   : > { %v2113_v50 = vpop.f32.mrb[12].mxu0 }
 0x5d5   : > { %v1103_v51 = vmul.f32 0.25, %v2113_v50  ;;  %v1083_v52 = vpop.f32.mrb[13].mxu0 }
 0x5d6   : > { %v1102_v54 = vmul.f32 0.25, %v1083_v52 }
 0x5d7   : > { %v1107_v55 = vadd.f32 %v2625_v29, %v1103_v51 }
 0x5d8   : > { %v2116_v56 = vpop.f32.mrb[14].mxu0  ;;  %v1106_v57 = vadd.f32 %v2625_v29, %v1102_v54 }
 0x5d9   : > { %v1093_v58 = vpop.f32.mrb[15].mxu0  ;;  %v1113_v59 = vsel %vm487_vm0, %v1107_v55, -inf  ;;  %v1105_v60 = vmul.f32 0.25, %v2116_v56 }
 0x5da   : > { %v1104_v61 = vmul.f32 0.25, %v1093_v58  ;;  %1114 = vmax.xlane.f32.xlu1 %v1113_v59  ;;  %v1110_v63 = vsel %vm487_vm0, %v1106_v57, -inf  ;;  %v1312_v58 = vld [vmem:[%s2951_s6] sm:$0xff]  ;;  %v1313_v59 = vld [vmem:[%s2951_s6 + $0x8] sm:$0xff] }
 0x5db   : > { %1111 = vmax.xlane.f32.xlu0 %v1110_v63  ;;  %v1109_v2 = vadd.f32 %v2625_v29, %v1105_v60  ;;  %v2245_v60 = vpack.c.bf16 %v1313_v59, %v1312_v58  ;;  %v1315_v63 = vld [vmem:[%s2951_s6 + $0x18] sm:$0xff] }
 0x5dc   : > { %v1108_v0 = vadd.f32 %v2625_v29, %v1104_v61  ;;  %v1314_v61 = vld [vmem:[%s2951_s6 + $0x10] sm:$0xff] }
 0x5dd   : > { %v1119_v3 = vsel %vm487_vm0, %v1109_v2, -inf }
 0x5de   : > { %v1116_v1 = vsel %vm487_vm0, %v1108_v0, -inf }
 0x5df   : > { %1117 = vmax.xlane.f32.xlu0 %v1116_v1 }
 0x5e3   : > { %1120 = vmax.xlane.f32.xlu0 %v1119_v3 }
 0x667   : > { %v1115_v5 = vpop.xlane.xlu1 %1114 }
 0x668   : > { %v1123_v7 = vsub.f32 %v1107_v55, %v1115_v5  ;;  %v1112_v9 = vpop.xlane.xlu0 %1111 }
 0x669   : > { %v1122_v10 = vsub.f32 %v1106_v57, %v1112_v9 }
 0x66a   : > { %v1128_v12 = vmul.f32 1.442695, %v1123_v7 }
 0x66b   : > { %v1126_v14 = vmul.f32 1.442695, %v1122_v10 }
 0x66c   : > { %2372 = vpow2.f32 %v1128_v12  ;;  %v1118_v17 = vpop.xlane.xlu0 %1117 }
 0x66d   : > { %2374 = vpow2.f32 %v1126_v14  ;;  %v1124_v20 = vsub.f32 %v1108_v0, %v1118_v17  ;;  %v2249_v0 = vpack.c.bf16 %v1315_v63, %v1314_v61  ;;  %v1493_v61 = vld [vmem:[%s2953_s8 + $0x8] sm:$0xff] }
 0x66f   : > { %v1130_v21 = vmul.f32 1.442695, %v1124_v20 }
 0x670   : > { %v1121_v22 = vpop.xlane.xlu0 %1120 }
 0x671   : > { %2376 = vpow2.f32 %v1130_v21  ;;  %v1125_v13 = vsub.f32 %v1109_v2, %v1121_v22 }
 0x673   : > { %v1132_v24 = vmul.f32 1.442695, %v1125_v13 }
 0x675   : > { %2378 = vpow2.f32 %v1132_v24 }
 0x676   : > { %v2373_v29 = vpop.eup %2372 }
 0x677   : > { %v2375_v25 = vpop.eup %2374  ;;  %v1137_v11 = vsel %vm487_vm0, %v2373_v29, 0.0 }
 0x678   : > { %1138 = vadd.xlane.f32.xlu1 %v1137_v11  ;;  %v1134_v26 = vsel %vm487_vm0, %v2375_v25, 0.0 }
 0x679   : > { %1135 = vadd.xlane.f32.xlu0 %v1134_v26 }
 0x67b   : > { %v2377_v18 = vpop.eup %2376 }
 0x67c   : > { %v1140_v16 = vsel %vm487_vm0, %v2377_v18, 0.0 }
 0x67d   : > { %1141 = vadd.xlane.f32.xlu0 %v1140_v16 }
 0x67f   : > { %v2379_v28 = vpop.eup %2378 }
 0x680   : > { %v1143_v31 = vsel %vm487_vm0, %v2379_v28, 0.0 }
 0x681   : > { %1144 = vadd.xlane.f32.xlu1 %v1143_v31 }
 0x692   : > { %2344 = vrot.lane.b32.xlu1 %v2598_v19, %s2426_s21 }
 0x693   : > { %2339 = vrot.lane.b32.xlu0 %v2589_v15, %s2426_s21 }
 0x705   : > { %v1139_v33 = vpop.xlane.xlu1 %1138 }
 0x706   : > { %v1136_v32 = vpop.xlane.xlu0 %1135 }
 0x707   : > { %2380 = vrcp.f32 %v1136_v32 }
 0x708   : > { %2382 = vrcp.f32 %v1139_v33 }
 0x70a   : > { %v1142_v34 = vpop.xlane.xlu0 %1141 }
 0x70b   : > { %2384 = vrcp.f32 %v1142_v34 }
 0x70e   : > { %v1145_v35 = vpop.xlane.xlu1 %1144  ;;  %v2340_v37 = vpop.permute.xlu0 %2339 }
 0x70f   : > { %v2342_v38 = vunpack.i.h.bf16 %v2340_v37  ;;  %v2341_v41 = vunpack.i.l.bf16 %v2340_v37  ;;  %2386 = vrcp.f32 %v1145_v35 }
 0x711   : > { %v2381_v42 = vpop.eup %2380  ;;  %v2237_v44 = vpack.c.bf16 %v2342_v38, %v2341_v41 }
 0x712   : > { %v2345_v23 = vpop.permute.xlu1 %2344  ;;  %v2701_v45 = vmul.f32 %v2381_v42, %v2375_v25  ;;  %v2383_v51 = vpop.eup %2382 }
 0x713   : > { %v2347_v50 = vunpack.i.h.bf16 %v2345_v23  ;;  %v2346_v19 = vunpack.i.l.bf16 %v2345_v23  ;;  %2238 = vmatprep.subr.bf16.mxu1 %v2237_v44  ;;  %v2705_v54 = vmul.f32 %v2383_v51, %v2373_v29 }
 0x714   : > { %2240 = vmatpush3.bf16.msra.mxu1 %v2237_v44  ;;  %2125 = vmatprep.mubr.msk.f32.mxu1 %vm487_vm0, %v2701_v45 }
 0x715   : > { %v2241_v15 = vpack.c.bf16 %v2347_v50, %v2346_v19  ;;  %v2385_v52 = vpop.eup %2384 }
 0x716   : > { %v2707_v56 = vmul.f32 %v2385_v52, %v2377_v18 }
 0x717   : > { %2242 = vmatprep.subr.bf16.mxu1 %v2241_v15 }
 0x718   : > { %2244 = vmatpush3.bf16.msra.mxu1 %v2241_v15 }
 0x719   : > { %v2387_v55 = vpop.eup %2386  ;;  %2246 = vmatprep.subr.bf16.mxu1 %v2245_v60 }
 0x71a   : > { %v2713_v57 = vmul.f32 %v2387_v55, %v2379_v28 }
 0x71b   : > { %2126 = vmatmul.mubr.msk.f32.vlgmr.msra.gmra.mrb[0].mxu1 %vm487_vm0, %v2705_v54 }
 0x71c   : > { %2128 = vmatprep.mubr.msk.f32.mxu1 %vm487_vm0, %v2707_v56  ;;  %2248 = vmatpush3.bf16.msra.mxu1 %v2245_v60  ;;  %v1492_v60 = vld [vmem:[%s2953_s8] sm:$0xff] }
 0x71d   : > { %2250 = vmatprep.subr.bf16.mxu1 %v2249_v0  ;;  %v2253_v63 = vpack.c.bf16 %v1493_v61, %v1492_v60  ;;  %v1647_v60 = vld [vmem:[%s2955_s10 + $0x58] sm:$0xff] }
 0x71f   : > { %2129 = vmatmul.mubr.msk.f32.gmra.mrb[2].mxu1 %vm487_vm0, %v2713_v57  ;;  %2254 = vmatprep.subr.bf16.mxu0 %v2253_v63 }
 0x720   : > { %2252 = vmatpush3.bf16.msra.mxu1 %v2249_v0  ;;  %2256 = vmatpush3.bf16.msra.mxu0 %v2253_v63  ;;  %v1494_v0 = vld [vmem:[%s2953_s8 + $0x10] sm:$0xff]  ;;  %v1648_v63 = vld [vmem:[%s2955_s10 + $0x60] sm:$0xff] }
 0x7ee   : > { %v2127_v1 = vpop.f32.mrb[0].mxu1 }
 0x7ef   : > { %v1244_v2 = vpop.f32.mrb[1].mxu1 }
 0x7f0   : > { %1296 = vrot.lane.b32.xlu1 %v1244_v2, %s2427_s16 }
 0x7f2   : > { %v2130_v3 = vpop.f32.mrb[2].mxu1 }
 0x7f3   : > { %v1254_v5 = vpop.f32.mrb[3].mxu1 }
 0x7f4   : > { %1298 = vrot.lane.b32.xlu1 %v2127_v1, %s2427_s16  ;;  %1300 = vrot.lane.b32.xlu0 %v1254_v5, %s2427_s16  ;;  %v1495_v1 = vld [vmem:[%s2953_s8 + $0x18] sm:$0xff]  ;;  %v1637_v5 = vld [vmem:[%s2955_s10 + $0x8] sm:$0xff] }
 0x7f5   : > { %v2257_v2 = vpack.c.bf16 %v1495_v1, %v1494_v0  ;;  %v1649_v0 = vld [vmem:[%s2955_s10 + $0x68] sm:$0xff] }
 0x7f6   : > { %v2285_v1 = vpack.c.bf16 %v1649_v0, %v1648_v63  ;;  %v1979_v0 = vld [vmem:[%s2956_s11] ss:$0 sm:$0xff] }
 0x7f7   : > { %2258 = vmatprep.subr.bf16.mxu0 %v2257_v2 }
 0x7f8   : > { %1302 = vrot.lane.b32.xlu1 %v2130_v3, %s2427_s16  ;;  %2260 = vmatpush3.bf16.msra.mxu0 %v2257_v2  ;;  %v1636_v3 = vld [vmem:[%s2955_s10] sm:$0xff]  ;;  %v1650_v2 = vld [vmem:[%s2955_s10 + $0x70] sm:$0xff] }
 0x862   : > { %v1297_v7 = vpop.permute.xlu1 %1296 }
 0x863   : > { %v1308_v9 = vsel %vm679_vm2, %v2681_v47, %v1297_v7  ;;  %v1969_v47 = vld [vmem:[%s2952_s7] ss:$0 sm:$0xff]  ;;  %v2261_v7 = vpack.c.bf16 %v1637_v5, %v1636_v3  ;;  %v1651_v3 = vld [vmem:[%s2955_s10 + $0x78] sm:$0xff] }
 0x864   : > { %2139 = vmatprep.mubr.msk.f32.mxu1 %vm487_vm0, %v1308_v9  ;;  %v2289_v5 = vpack.c.bf16 %v1651_v3, %v1650_v2 }
 0x865   : > { %2262 = vmatprep.subr.bf16.mxu1 %v2261_v7 }
 0x866   : > { %v1299_v10 = vpop.permute.xlu1 %1298  ;;  %v1301_v12 = vpop.permute.xlu0 %1300 }
 0x867   : > { %v1309_v14 = vsel %vm679_vm2, %v2679_v46, %v1299_v10  ;;  %v1310_v17 = vsel %vm679_vm2, %v2685_v49, %v1301_v12 }
 0x868   : > { %2140 = vmatmul.mubr.msk.f32.vlgmr.msra.gmra.mrb[4].mxu1 %vm487_vm0, %v1309_v14 }
 0x869   : > { %2142 = vmatprep.mubr.msk.f32.mxu1 %vm487_vm0, %v1310_v17  ;;  %2264 = vmatpush3.bf16.msra.mxu1 %v2261_v7  ;;  %v1974_v7 = vld [vmem:[%s2954_s9] ss:$0 sm:$0xff] }
 0x86a   : > { %v1303_v20 = vpop.permute.xlu1 %1302 }
 0x86b   : > { %v1311_v21 = vsel %vm679_vm2, %v2683_v48, %v1303_v20 }
 0x86c   : > { %2143 = vmatmul.mubr.msk.f32.gmra.mrb[6].mxu1 %vm487_vm0, %v1311_v21 }
 0x93b   : > { %v2141_v22 = vpop.f32.mrb[4].mxu1 }
 0x93c   : > { %v1407_v13 = vadd.f32 %v2141_v22, %v1969_v47  ;;  %v1401_v46 = vpop.f32.mrb[5].mxu1 }
 0x93d   : > { %v1402_v24 = vadd.f32 %v1969_v47, %v1401_v46  ;;  %v1478_v46 = vsub.s32 2, %v2547_v36 }
 0x93e   : > { %v1421_v49 = vadd.f32 %v1407_v13, %v2565_v4 }
 0x93f   : > { %v2144_v29 = vpop.f32.mrb[6].mxu1  ;;  %v1420_v25 = vadd.f32 %v1402_v24, %v2560_v62 }
 0x940   : > { %v1411_v11 = vpop.f32.mrb[7].mxu1  ;;  %v1427_v26 = vsel %vm487_vm0, %v1421_v49, 0.0  ;;  %v1417_v18 = vadd.f32 %v2144_v29, %v1969_v47  ;;  %v1486_v29 = vsub.s32 3, %v2547_v36 }
 0x941   : > { %v1412_v48 = vadd.f32 %v1969_v47, %v1411_v11  ;;  %1428 = vadd.xlane.f32.xlu1 %v1427_v26  ;;  %v1424_v16 = vsel %vm487_vm0, %v1420_v25, 0.0 }
 0x942   : > { %1425 = vadd.xlane.f32.xlu0 %v1424_v16  ;;  %v1423_v32 = vadd.f32 %v1417_v18, %v2574_v8  ;;  %v1487_v16 = vrot.slane %v2555_v53, %v1486_v29 }
 0x943   : > { %v1422_v28 = vadd.f32 %v1412_v48, %v2568_v6 }
 0x944   : > { %v1433_v4 = vsel %vm487_vm0, %v1423_v32, 0.0 }
 0x945   : > { %v1430_v31 = vsel %vm487_vm0, %v1422_v28, 0.0 }
 0x946   : > { %1431 = vadd.xlane.f32.xlu0 %v1430_v31 }
 0x94a   : > { %1434 = vadd.xlane.f32.xlu0 %v1433_v4 }
 0x9ce   : > { %v1429_v62 = vpop.xlane.xlu1 %1428 }
 0x9cf   : > { %v1437_v33 = vmul.f32 0.03125, %v1429_v62  ;;  %v1426_v34 = vpop.xlane.xlu0 %1425 }
 0x9d0   : > { %v1436_v35 = vmul.f32 0.03125, %v1426_v34 }
 0x9d1   : > { %v1441_v37 = vsub.f32 %v1421_v49, %v1437_v33 }
 0x9d2   : > { %v1440_v38 = vsub.f32 %v1420_v25, %v1436_v35  ;;  %v1479_v25 = vrot.slane %v2555_v53, %v1478_v46 }
 0x9d3   : > { %v1432_v41 = vpop.xlane.xlu0 %1431  ;;  %v1445_v42 = vmul.f32 %v1441_v37, %v1441_v37 }
 0x9d4   : > { %v1438_v44 = vmul.f32 0.03125, %v1432_v41  ;;  %v1444_v23 = vmul.f32 %v1440_v38, %v1440_v38 }
 0x9d5   : > { %v1451_v6 = vsel %vm487_vm0, %v1445_v42, 0.0  ;;  %v1638_v42 = vld [vmem:[%s2955_s10 + $0x10] sm:$0xff] }
 0x9d6   : > { %v1442_v50 = vsub.f32 %v1422_v28, %v1438_v44  ;;  %1452 = vadd.xlane.f32.xlu1 %v1451_v6  ;;  %v1448_v8 = vsel %vm487_vm0, %v1444_v23, 0.0  ;;  %v1639_v44 = vld [vmem:[%s2955_s10 + $0x18] sm:$0xff]  ;;  %v1640_v6 = vld [vmem:[%s2955_s10 + $0x20] sm:$0xff] }
 0x9d7   : > { %1449 = vadd.xlane.f32.xlu0 %v1448_v8  ;;  %v1435_v19 = vpop.xlane.xlu0 %1434  ;;  %v2265_v23 = vpack.c.bf16 %v1639_v44, %v1638_v42 }
 0x9d8   : > { %v1439_v15 = vmul.f32 0.03125, %v1435_v19  ;;  %v1446_v51 = vmul.f32 %v1442_v50, %v1442_v50  ;;  %v1642_v19 = vld [vmem:[%s2955_s10 + $0x30] sm:$0xff] }
 0x9d9   : > { %2266 = vmatprep.subr.bf16.mxu1 %v2265_v23 }
 0x9da   : > { %v1443_v52 = vsub.f32 %v1423_v32, %v1439_v15  ;;  %v1454_v55 = vsel %vm487_vm0, %v1446_v51, 0.0  ;;  %2268 = vmatpush3.bf16.msra.mxu1 %v2265_v23  ;;  %v1643_v15 = vld [vmem:[%s2955_s10 + $0x38] sm:$0xff] }
 0x9db   : > { %1455 = vadd.xlane.f32.xlu0 %v1454_v55  ;;  %v2273_v51 = vpack.c.bf16 %v1643_v15, %v1642_v19  ;;  %v1645_v55 = vld [vmem:[%s2955_s10 + $0x48] sm:$0xff] }
 0x9dc   : > { %v1447_v58 = vmul.f32 %v1443_v52, %v1443_v52 }
 0x9de   : > { %v1457_v59 = vsel %vm487_vm0, %v1447_v58, 0.0 }
 0x9df   : > { %1458 = vadd.xlane.f32.xlu1 %v1457_v59  ;;  %v1646_v59 = vld [vmem:[%s2955_s10 + $0x50] sm:$0xff] }
 0x9e0   : > { %v2281_v61 = vpack.c.bf16 %v1647_v60, %v1646_v59 }
 0xa63   : > { %v1453_v9 = vpop.xlane.xlu1 %1452 }
 0xa64   : > { %v1461_v10 = vmul.f32 0.03125, %v1453_v9  ;;  %v1450_v12 = vpop.xlane.xlu0 %1449 }
 0xa65   : > { %v1460_v14 = vmul.f32 0.03125, %v1450_v12 }
 0xa66   : > { %v1465_v17 = vadd.f32 1e-12, %v1461_v10 }
 0xa67   : > { %v1464_v20 = vadd.f32 1e-12, %v1460_v14 }
 0xa68   : > { %2388 = vrsqrt.f32 %v1465_v17  ;;  %v1456_v21 = vpop.xlane.xlu0 %1455 }
 0xa69   : > { %2390 = vrsqrt.f32 %v1464_v20  ;;  %v1462_v47 = vmul.f32 0.03125, %v1456_v21 }
 0xa6b   : > { %v1466_v22 = vadd.f32 1e-12, %v1462_v47 }
 0xa6c   : > { %v1459_v13 = vpop.xlane.xlu1 %1458 }
 0xa6d   : > { %2392 = vrsqrt.f32 %v1466_v22  ;;  %v1463_v24 = vmul.f32 0.03125, %v1459_v13 }
 0xa6f   : > { %v1467_v49 = vadd.f32 1e-12, %v1463_v24 }
 0xa71   : > { %2394 = vrsqrt.f32 %v1467_v49 }
 0xa72   : > { %v2389_v11 = vpop.eup %2388 }
 0xa73   : > { %v2391_v26 = vpop.eup %2390  ;;  %v1473_v18 = vmul.f32 %v2389_v11, %v1441_v37 }
 0xa74   : > { %v1472_v48 = vmul.f32 %v2391_v26, %v1440_v38 }
 0xa75   : > { %v1481_v28 = vmul.f32 %v1479_v25, %v1473_v18 }
 0xa76   : > { %v1480_v31 = vmul.f32 %v1479_v25, %v1472_v48 }
 0xa77   : > { %v2393_v32 = vpop.eup %2392  ;;  %v2780_v33 = vadd.f32 %v1487_v16, %v1481_v28 }
 0xa78   : > { %v2778_v4 = vadd.f32 %v1487_v16, %v1480_v31  ;;  %v1474_v62 = vmul.f32 %v2393_v32, %v1442_v50  ;;  %v1641_v50 = vld [vmem:[%s2955_s10 + $0x28] sm:$0xff] }
 0xa79   : > { %v2269_v8 = vpack.c.bf16 %v1641_v50, %v1640_v6 }
 0xa7a   : > { %2153 = vmatprep.mubr.msk.f32.mxu0 %vm487_vm0, %v2778_v4  ;;  %v1482_v34 = vmul.f32 %v1479_v25, %v1474_v62 }
 0xa7b   : > { %v2395_v35 = vpop.eup %2394  ;;  %2154 = vmatmul.mubr.msk.f32.vlgmr.msra.gmra.mrb[16].mxu0 %vm487_vm0, %v2780_v33  ;;  %2270 = vmatprep.subr.bf16.mxu1 %v2269_v8 }
 0xa7c   : > { %v2786_v37 = vadd.f32 %v1487_v16, %v1482_v34  ;;  %v1475_v38 = vmul.f32 %v2395_v35, %v1443_v52  ;;  %2272 = vmatpush3.bf16.msra.mxu1 %v2269_v8  ;;  %v1644_v52 = vld [vmem:[%s2955_s10 + $0x40] sm:$0xff] }
 0xa7d   : > { %2274 = vmatprep.subr.bf16.mxu1 %v2273_v51  ;;  %v2277_v58 = vpack.c.bf16 %v1645_v55, %v1644_v52 }
 0xa7e   : > { %2156 = vmatprep.mubr.msk.f32.mxu0 %vm487_vm0, %v2786_v37  ;;  %v1483_v53 = vmul.f32 %v1479_v25, %v1475_v38 }
 0xa80   : > { %v2790_v41 = vadd.f32 %v1487_v16, %v1483_v53  ;;  %2276 = vmatpush3.bf16.msra.mxu1 %v2273_v51 }
 0xa81   : > { %2278 = vmatprep.subr.bf16.mxu1 %v2277_v58 }
 0xa82   : > { %2157 = vmatmul.mubr.msk.f32.gmra.mrb[18].mxu0 %vm487_vm0, %v2790_v41 }
 0xa84   : > { %2280 = vmatpush3.bf16.msra.mxu1 %v2277_v58 }
 0xa85   : > { %2282 = vmatprep.subr.bf16.mxu1 %v2281_v61 }
 0xa88   : > { %2284 = vmatpush3.bf16.msra.mxu1 %v2281_v61 }
 0xa89   : > { %2286 = vmatprep.subr.bf16.mxu1 %v2285_v1 }
 0xa8c   : > { %2288 = vmatpush3.bf16.msra.mxu1 %v2285_v1 }
 0xa8d   : > { %2290 = vmatprep.subr.bf16.mxu1 %v2289_v5 }
 0xa90   : > { %2292 = vmatpush3.bf16.msra.mxu1 %v2289_v5 }
 0xb4e   : > { %v2155_v9 = vpop.f32.mrb[16].mxu0 }
 0xb4f   : > { %v1587_v10 = vadd.f32 %v2155_v9, %v1974_v7  ;;  %v1581_v12 = vpop.f32.mrb[17].mxu0 }
 0xb50   : > { %v1582_v14 = vadd.f32 %v1974_v7, %v1581_v12 }
 0xb51   : > { %v1605_v17 = vmul.f32 0.044715, %v1587_v10  ;;  %v1601_v8 = vmul.f32 0.5, %v1587_v10 }
 0xb52   : > { %v1604_v20 = vmul.f32 0.044715, %v1582_v14  ;;  %v1600_v6 = vmul.f32 0.5, %v1582_v14 }
 0xb53   : > { %v1609_v21 = vmul.f32 %v1605_v17, %v1587_v10 }
 0xb54   : > { %v1608_v47 = vmul.f32 %v1604_v20, %v1582_v14 }
 0xb55   : > { %v1613_v22 = vmul.f32 %v1609_v21, %v1587_v10  ;;  %v2158_v13 = vpop.f32.mrb[18].mxu0 }
 0xb56   : > { %v1597_v46 = vadd.f32 %v2158_v13, %v1974_v7  ;;  %v1591_v24 = vpop.f32.mrb[19].mxu0  ;;  %v1612_v49 = vmul.f32 %v1608_v47, %v1582_v14 }
 0xb57   : > { %v1617_v29 = vadd.f32 %v1613_v22, %v1587_v10  ;;  %v1592_v25 = vadd.f32 %v1974_v7, %v1591_v24 }
 0xb58   : > { %v1607_v11 = vmul.f32 0.044715, %v1597_v46  ;;  %v1616_v26 = vadd.f32 %v1612_v49, %v1582_v14  ;;  %v1603_v60 = vmul.f32 0.5, %v1597_v46 }
 0xb59   : > { %v1621_v18 = vmul.f32 0.7978846, %v1617_v29  ;;  %v1606_v48 = vmul.f32 0.044715, %v1592_v25  ;;  %v1602_v58 = vmul.f32 0.5, %v1592_v25 }
 0xb5a   : > { %v1611_v16 = vmul.f32 %v1607_v11, %v1597_v46  ;;  %v1620_v28 = vmul.f32 0.7978846, %v1616_v26 }
 0xb5b   : > { %2396 = vtanh.f32 %v1621_v18  ;;  %v1610_v31 = vmul.f32 %v1606_v48, %v1592_v25 }
 0xb5c   : > { %2398 = vtanh.f32 %v1620_v28  ;;  %v1615_v32 = vmul.f32 %v1611_v16, %v1597_v46 }
 0xb5d   : > { %v1614_v62 = vmul.f32 %v1610_v31, %v1592_v25 }
 0xb5e   : > { %v1619_v34 = vadd.f32 %v1615_v32, %v1597_v46  ;;  %v1266_v46 = vsel %vm954_vm4, 1e-09, %v2713_v57  ;;  %v956_v32 = vsel %vm954_vm4, 1e-09, %v2655_v30 }
 0xb5f   : > { %v1618_v35 = vadd.f32 %v1614_v62, %v1592_v25 }
 0xb60   : > { %v1623_v38 = vmul.f32 0.7978846, %v1619_v34 }
 0xb61   : > { %v1622_v53 = vmul.f32 0.7978846, %v1618_v35 }
 0xb62   : > { %2400 = vtanh.f32 %v1623_v38  ;;  %v962_v38 = vsel %vm679_vm2, %v956_v32, 0.0 }
 0xb63   : > { %2402 = vtanh.f32 %v1622_v53 }
 0xb65   : > { %v2397_v42 = vpop.eup %2396 }
 0xb66   : > { %v2399_v44 = vpop.eup %2398  ;;  %v1629_v23 = vadd.f32 1.0, %v2397_v42 }
 0xb67   : > { %v1628_v50 = vadd.f32 1.0, %v2399_v44 }
 0xb68   : > { %v1633_v15 = vmul.f32 %v1629_v23, %v1601_v8 }
 0xb69   : > { %v1632_v19 = vmul.f32 %v1628_v50, %v1600_v6  ;;  %v1264_v6 = vsel %vm954_vm4, 1e-09, %v2705_v54 }
 0xb6b   : > { %2191 = vmatprep.mubr.f32.mxu1 %v1632_v19  ;;  %v1270_v19 = vsel %vm679_vm2, %v1264_v6, 0.0 }
 0xb6c   : > { %v2401_v51 = vpop.eup %2400  ;;  %2192 = vmatmul.mubr.f32.vlgmr.msra.gmra.mrb[8].mxu1 %v1633_v15 }
 0xb6d   : > { %v2403_v52 = vpop.eup %2402  ;;  %v1631_v55 = vadd.f32 1.0, %v2401_v51 }
 0xb6e   : > { %v1630_v59 = vadd.f32 1.0, %v2403_v52 }
 0xb6f   : > { %v1635_v63 = vmul.f32 %v1631_v55, %v1603_v60  ;;  %v1263_v55 = vsel %vm954_vm4, 1e-09, %v2701_v45 }
 0xb70   : > { %v1634_v61 = vmul.f32 %v1630_v59, %v1602_v58  ;;  %v1267_v54 = vsel %vm679_vm2, %v1263_v55, 0.0 }
 0xb72   : > { %2194 = vmatprep.mubr.f32.mxu1 %v1634_v61 }
 0xb73   : > { %2195 = vmatmul.mubr.f32.gmra.mrb[10].mxu1 %v1635_v63 }
 0xc3f   : > { %v2193_v1 = vpop.f32.mrb[8].mxu1 }
 0xc40   : > { %v1731_v2 = vadd.f32 %v2193_v1, %v1979_v0  ;;  %v1725_v3 = vpop.f32.mrb[9].mxu1 }
 0xc41   : > { %v1726_v5 = vadd.f32 %v1979_v0, %v1725_v3 }
 0xc42   : > { %v1745_v7 = vadd.f32 %v1731_v2, %v2780_v33 }
 0xc43   : > { %v1744_v9 = vadd.f32 %v1726_v5, %v2778_v4  ;;  %v958_v4 = vsel %vm954_vm4, 1e-09, %v2671_v43  ;;  %v955_v43 = vsel %vm954_vm4, 1e-09, %v2651_v27 }
 0xc44   : > { %v1751_v10 = vsel %vm487_vm0, %v1745_v7, 0.0 }
 0xc45   : > { %1752 = vadd.xlane.f32.xlu1 %v1751_v10  ;;  %v1748_v12 = vsel %vm487_vm0, %v1744_v9, 0.0 }
 0xc46   : > { %1749 = vadd.xlane.f32.xlu0 %v1748_v12  ;;  %v2196_v14 = vpop.f32.mrb[10].mxu1  ;;  %v1810_v12 = vsub.s32 5, %v2547_v36 }
 0xc47   : > { %v1741_v17 = vadd.f32 %v2196_v14, %v1979_v0  ;;  %v1735_v20 = vpop.f32.mrb[11].mxu1 }
 0xc48   : > { %v1736_v21 = vadd.f32 %v1979_v0, %v1735_v20 }
 0xc49   : > { %v1747_v47 = vadd.f32 %v1741_v17, %v2790_v41  ;;  %v1265_v41 = vsel %vm954_vm4, 1e-09, %v2707_v56  ;;  %v959_v56 = vsel %vm679_vm2, %v955_v43, 0.0 }
 0xc4a   : > { %v1746_v22 = vadd.f32 %v1736_v21, %v2786_v37  ;;  %v957_v37 = vsel %vm954_vm4, 1e-09, %v2667_v39  ;;  %v2412_v21 = vld [vmem:[%s2948_s3] sm:$0x3f] }
 0xc4b   : > { %v1757_v13 = vsel %vm487_vm0, %v1747_v47, 0.0 }
 0xc4c   : > { %1758 = vadd.xlane.f32.xlu1 %v1757_v13  ;;  %v1754_v33 = vsel %vm487_vm0, %v1746_v22, 0.0 }
 0xc4d   : > { %1755 = vadd.xlane.f32.xlu0 %v1754_v33 }
 0xc5d   : > { %969 = vrot.lane.b32.xlu1 %v958_v4, %s2425_s20  ;;  %v1811_v4 = vrot.slane %v2412_v21, %v1810_v12 }
 0xc61   : > { %1275 = vrot.lane.b32.xlu1 %v1265_v41, %s2425_s20 }
 0xc63   : > { %967 = vrot.lane.b32.xlu0 %v957_v37, %s2425_s20 }
 0xc65   : > { %1277 = vrot.lane.b32.xlu1 %v1266_v46, %s2425_s20 }
 0xc82   : > { %960 = vadd.xlane.f32.xlu0 %v959_v56 }
 0xcd2   : > { %v1753_v24 = vpop.xlane.xlu1 %1752 }
 0xcd3   : > { %v1761_v49 = vmul.f32 0.03125, %v1753_v24  ;;  %v1750_v29 = vpop.xlane.xlu0 %1749 }
 0xcd4   : > { %v1760_v25 = vmul.f32 0.03125, %v1750_v29 }
 0xcd5   : > { %v2871_v39 = vsub.f32 %v1745_v7, %v1761_v49  ;;  %v1802_v7 = vsub.s32 4, %v2547_v36 }
 0xcd6   : > { %v2873_v11 = vsub.f32 %v1744_v9, %v1760_v25 }
 0xcd7   : > { %v1769_v57 = vmul.f32 %v2871_v39, %v2871_v39 }
 0xcd8   : > { %v1768_v26 = vmul.f32 %v2873_v11, %v2873_v11 }
 0xcd9   : > { %v1759_v18 = vpop.xlane.xlu1 %1758  ;;  %v1775_v27 = vsel %vm487_vm0, %v1769_v57, 0.0 }
 0xcda   : > { %v1763_v48 = vmul.f32 0.03125, %v1759_v18  ;;  %1776 = vadd.xlane.f32.xlu0 %v1775_v27  ;;  %v1756_v16 = vpop.xlane.xlu0 %1755  ;;  %v1772_v28 = vsel %vm487_vm0, %v1768_v26, 0.0 }
 0xcdb   : > { %v1762_v31 = vmul.f32 0.03125, %v1756_v16  ;;  %1773 = vadd.xlane.f32.xlu1 %v1772_v28 }
 0xcdc   : > { %v2884_v62 = vsub.f32 %v1747_v47, %v1763_v48  ;;  %v1803_v47 = vrot.slane %v2412_v21, %v1802_v7 }
 0xcdd   : > { %v2886_v34 = vsub.f32 %v1746_v22, %v1762_v31  ;;  %v970_v35 = vpop.permute.xlu1 %969 }
 0xcde   : > { %v1771_v23 = vmul.f32 %v2884_v62, %v2884_v62  ;;  %v976_v30 = vsel %vm679_vm2, %v970_v35, 0.0  ;;  %v968_v8 = vpop.permute.xlu0 %967 }
 0xcdf   : > { %963 = vadd.xlane.f32.xlu1 %v962_v38  ;;  %v1770_v53 = vmul.f32 %v2886_v34, %v2886_v34  ;;  %v973_v51 = vsel %vm679_vm2, %v968_v8, 0.0 }
 0xce0   : > { %v1781_v50 = vsel %vm487_vm0, %v1771_v23, 0.0 }
 0xce1   : > { %v1276_v42 = vpop.permute.xlu1 %1275  ;;  %v1778_v44 = vsel %vm487_vm0, %v1770_v53, 0.0 }
 0xce2   : > { %1779 = vadd.xlane.f32.xlu0 %v1778_v44  ;;  %v1281_v58 = vsel %vm679_vm2, %v1276_v42, 0.0 }
 0xce3   : > { %977 = vadd.xlane.f32.xlu1 %v976_v30 }
 0xce5   : > { %v1278_v15 = vpop.permute.xlu1 %1277 }
 0xce6   : > { %1782 = vadd.xlane.f32.xlu0 %v1781_v50  ;;  %v1284_v52 = vsel %vm679_vm2, %v1278_v15, 0.0 }
 0xce7   : > { %1271 = vadd.xlane.f32.xlu1 %v1270_v19 }
 0xcea   : > { %974 = vadd.xlane.f32.xlu0 %v973_v51 }
 0xceb   : > { %1285 = vadd.xlane.f32.xlu1 %v1284_v52 }
 0xcee   : > { %1268 = vadd.xlane.f32.xlu0 %v1267_v54 }
 0xcf2   : > { %1282 = vadd.xlane.f32.xlu0 %v1281_v58 }
 0xd0f   : > { %v961_v59 = vpop.xlane.xlu0 %960 }
 0xd67   : > { %v1777_v60 = vpop.xlane.xlu0 %1776 }
 0xd68   : > { %v1785_v61 = vmul.f32 0.03125, %v1777_v60  ;;  %v1774_v63 = vpop.xlane.xlu1 %1773 }
 0xd69   : > { %v1784_v0 = vmul.f32 0.03125, %v1774_v63 }
 0xd6a   : > { %v1789_v1 = vadd.f32 1e-12, %v1785_v61 }
 0xd6b   : > { %v1788_v2 = vadd.f32 1e-12, %v1784_v0 }
 0xd6c   : > { %2404 = vrsqrt.f32 %v1789_v1  ;;  %v964_v3 = vpop.xlane.xlu1 %963 }
 0xd6d   : > { %2406 = vrsqrt.f32 %v1788_v2 }
 0xd6f   : > { %v1780_v40 = vpop.xlane.xlu0 %1779 }
 0xd70   : > { %v1786_v45 = vmul.f32 0.03125, %v1780_v40  ;;  %v978_v5 = vpop.xlane.xlu1 %977 }
 0xd71   : > { %v981_v9 = vsel %vm979_vm5, %v964_v3, %v978_v5 }
 0xd72   : > { %v1790_v10 = vadd.f32 1e-12, %v1786_v45  ;;  %984 = vst.msk [vmem:[%s2911_s22 + $0x8] sm:$0xff] %vm982_vm6, %v981_v9 }
 0xd73   : > { %v1783_v14 = vpop.xlane.xlu0 %1782 }
 0xd74   : > { %2408 = vrsqrt.f32 %v1790_v10  ;;  %v1787_v17 = vmul.f32 0.03125, %v1783_v14  ;;  %v1272_v20 = vpop.xlane.xlu1 %1271 }
 0xd76   : > { %v2405_v22 = vpop.eup %2404  ;;  %v1791_v13 = vadd.f32 1e-12, %v1787_v17 }
 0xd77   : > { %v2407_v33 = vpop.eup %2406  ;;  %v1797_v41 = vmul.f32 %v2405_v22, %v2871_v39  ;;  %v975_v37 = vpop.xlane.xlu0 %974 }
 0xd78   : > { %v1796_v36 = vmul.f32 %v2407_v33, %v2873_v11  ;;  %2410 = vrsqrt.f32 %v1791_v13  ;;  %v980_v46 = vsel %vm979_vm5, %v961_v59, %v975_v37  ;;  %v1286_v43 = vpop.xlane.xlu1 %1285 }
 0xd79   : > { %v1805_v56 = vmul.f32 %v1803_v47, %v1797_v41  ;;  %983 = vst.msk [vmem:[%s2911_s22] sm:$0xff] %vm982_vm6, %v980_v46  ;;  %v1288_v24 = vsel %vm979_vm5, %v1272_v20, %v1286_v43 }
 0xd7a   : > { %v1804_v49 = vmul.f32 %v1803_v47, %v1796_v36  ;;  %1968 = vst.msk [vmem:[%s2911_s22 + $0x18] sm:$0xff] %vm982_vm6, %v1288_v24 }
 0xd7b   : > { %v1813_v29 = vadd.f32 %v1811_v4, %v1805_v56  ;;  %v1269_v25 = vpop.xlane.xlu0 %1268 }
 0xd7c   : > { %v1812_v39 = vadd.f32 %v1811_v4, %v1804_v49 }
 0xd7d   : > { %1817 = vst.msk [vmem:[%s476_s30 + $0x8] sm:$0xff] %vm487_vm0, %v1813_v29 }
 0xd7e   : > { %v2409_v11 = vpop.eup %2408  ;;  %1816 = vst.msk [vmem:[%s476_s30] sm:$0xff] %vm487_vm0, %v1812_v39 }
 0xd7f   : > { %v1798_v57 = vmul.f32 %v2409_v11, %v2886_v34  ;;  %v1283_v26 = vpop.xlane.xlu0 %1282 }
 0xd80   : > { %v1287_v18 = vsel %vm979_vm5, %v1269_v25, %v1283_v26 }
 0xd81   : > { %v1806_v27 = vmul.f32 %v1803_v47, %v1798_v57  ;;  %1967 = vst.msk [vmem:[%s2911_s22 + $0x10] sm:$0xff] %vm982_vm6, %v1287_v18 }
 0xd82   : > { %v2411_v48 = vpop.eup %2410 }
 0xd83   : > { %v1814_v16 = vadd.f32 %v1811_v4, %v1806_v27  ;;  %v1799_v28 = vmul.f32 %v2411_v48, %v2884_v62 }
 0xd85   : > { %1818 = vst.msk [vmem:[%s476_s30 + $0x10] sm:$0xff] %vm487_vm0, %v1814_v16  ;;  %v1807_v31 = vmul.f32 %v1803_v47, %v1799_v28 }
 0xd87   : > { %v1815_v32 = vadd.f32 %v1811_v4, %v1807_v31 }
 0xd89   : > { %1819 = vst.msk [vmem:[%s476_s30 + $0x18] sm:$0xff] %vm487_vm0, %v1815_v32 }
 0xd8a PF: > { %s24_s25 = sadd.s32 1, %s2419_s25  }
 0xd8b   : > { %p21_p4 = scmp.ge.s32.totalorder %s24_s25, 4  }
 0xd8d   :  { %23 = sbr.rel (!%p21_p4) target bundleno = 1 (0x1), region = 117 }

// kernel: xss_bert_forward.4
= control target key start
LH: loop header
LB: loop body
LE: loop exit
PB: predicated region body
PF: predicated region fallthrough
CT: control target
= control target key end

     0   :  { %s4928_s0 = inlined_call_operand.vmem [shape: s32[2,2], index: 0, kind: input, shape index: {}]   ;;  %s4929_s2 = inlined_call_operand.vmem [shape: f32[2,32,32], index: 2, kind: input, shape index: {}]   ;;  %s4930_s3 = inlined_call_operand.vmem [shape: f32[2,32,1], index: 3, kind: input, shape index: {}]   ;;  %s4931_s4 = inlined_call_operand.vmem [shape: f32[64,64], index: 4, kind: input, shape index: {}]   ;;  %s4932_s5 = inlined_call_operand.vmem [shape: f32[16,64], index: 5, kind: input, shape index: {}]   ;;  %s4933_s6 = inlined_call_operand.vmem [shape: f32[1,64], index: 6, kind: input, shape index: {}]   ;;  %s4934_s7 = inlined_call_operand.vmem [shape: f32[64,64], index: 7, kind: input, shape index: {}]   ;;  %s4935_s8 = inlined_call_operand.vmem [shape: f32[16,64], index: 8, kind: input, shape index: {}]   ;;  %s4936_s9 = inlined_call_operand.vmem [shape: f32[1,64], index: 9, kind: input, shape index: {}]   ;;  %s4937_s10 = inlined_call_operand.vmem [shape: f32[96,2], index: 10, kind: input, shape index: {}]   ;;  %s4938_s11 = inlined_call_operand.vmem [shape: f32[1,2], index: 11, kind: input, shape index: {}]   ;;  %s4939_s12 = inlined_call_operand.vmem [shape: f32[2,1,2], index: 12, kind: output, shape index: {0}]   ;;  %s4940_s13 = inlined_call_operand.vmem [shape: f32[2,32,32], index: 13, kind: output, shape index: {1}]   ;;  %s4941_s1 = inlined_call_operand.vmem [shape: s32[2,2], index: 1, kind: input, shape index: {}]  }
   0x1   :  { %s19_s27 = sshll.u32 %s4928_s0, 4  ;;  %s23_s30 = sshll.u32 %s4941_s1, 4  ;;  %s20_s27 = int_to_ptr.vmem [resolvable:$true] %s19_s27  ;;  %s24_s30 = int_to_ptr.vmem [resolvable:$true] %s23_s30 }
   0x2   :  { %s4066_s14 = scalar_lea.vmem %s20_s27, 32  ;;  %p4071_p1 = scmp.lt.s32.totalorder %s20_s27, %s20_s27 }
   0x3   :  { %p4067_p0 = scmp.ne.s32.totalorder %s20_s27, %s4066_s14  ;;  %p4072_p2 = scmp.lt.s32.totalorder %s4066_s14, %s4066_s14 }
   0x5   :  { %p4073_p3 = por %p4072_p2, %p4071_p1 }
   0x7   :  { %p4074_p4 = pnand %p4073_p3, %p4067_p0 }
   0x9   :  { %4077 = shalt.err (!%p4074_p4)  }
   0xa   :  { %s4100_s15 = smov [#allocation3]   ;;  %s4078_s16 = scalar_lea.vmem %s24_s30, 32 }
   0xb   :  { %22 = dma.vmem_to_smem %s20_s27, 32, %s4100_s15, [#allocation2] }
   0xc   :  { %p4079_p5 = scmp.ne.s32.totalorder %s24_s30, %s4078_s16  ;;  %p4083_p6 = scmp.lt.s32.totalorder %s24_s30, %s24_s30 }
   0xd   :  { %p4084_p7 = scmp.lt.s32.totalorder %s4078_s16, %s4078_s16 }
   0xf   :  { %p4085_p8 = por %p4084_p7, %p4083_p6 }
  0x11   :  { %p4086_p9 = pnand %p4085_p8, %p4079_p5 }
  0x13   :  { %4089 = shalt.err (!%p4086_p9)  }
  0x14   :  { %s4101_s0 = smov [#allocation4]  }
  0x15   :  { %26 = dma.vmem_to_smem %s24_s30, 32, %s4101_s0, [#allocation2] }
  0x16   :  { %4094 = dma.done.wait [#allocation2], 64 }
  0x17   :  { %4095 = vsyncadd [#allocation2], 4294967232 }
  0x18   :  { %28 = sfence }
  0x19   :  { %s4187_s1 = smov 0  }
  0x1a LB: > { %s3355_s17 = sadd.s32 4294967295, %s4098_s1   ;;  %p3359_p10 = scmp.ge.s32.totalorder %s4098_s1, 1  ;;  %s4098_s1 = sphi %s4187_s1, %s34_s1  }
  0x1b   : > { %p362_p11 = scmp.lt.s32.totalorder %s4098_s1, 3 }
  0x1d   : > { %p363_p12 = pnand %p3359_p10, %p362_p11 }
  0x1e   : > { %p410_p13 = scmp.lt.s32.totalorder (!%p363_p12), %s3355_s17, 1  ;;  %s3366_s18 = sshll.u32 (!%p363_p12), %s3355_s17, 7  ;;  %v4102_v0 = vmov (!%p363_p12), 0   ;;  %v635_v9 = vld [vmem:[%s4931_s4] sm:$0xff] (!%p363_p12)  ;;  %v636_v10 = vld [vmem:[%s4931_s4 + $0x8] sm:$0xff] (!%p363_p12)  ;;  %v637_v11 = vld [vmem:[%s4931_s4 + $0x10] sm:$0xff] (!%p363_p12) }
  0x1f   : > { %366 = sbr.rel (%p363_p12) target bundleno = 10862 (0x2a6e), region = 60  ;;  %3804 = vset.pattern.permute.xlu0 (!%p363_p12), %v4102_v0  ;;  %s4196_s19 = sld [smem:[#allocation4 + %s3366_s18]] (!%p363_p12)  ;;  %3805 = vset.pattern.permute.xlu1 (!%p363_p12), %v4102_v0  ;;  %v3687_v12 = vpack.c.bf16 (!%p363_p12), %v636_v10, %v635_v9  ;;  %v638_v13 = vld [vmem:[%s4931_s4 + $0x18] sm:$0xff] (!%p363_p12)  ;;  %v639_v15 = vld [vmem:[%s4931_s4 + $0x20] sm:$0xff] (!%p363_p12)  ;;  %v640_v16 = vld [vmem:[%s4931_s4 + $0x28] sm:$0xff] (!%p363_p12)  ;;  %v4103_v24 = vmov (!%p363_p12), 0.0|0.0  }
  0x20   : > { %s515_s20 = sadd.s32 (!%p363_p12), 1, %s3366_s18  ;;  %s4203_s22 = sld [smem:[#allocation3 + %s3366_s18]] (!%p363_p12)  ;;  %v3691_v14 = vpack.c.bf16 (!%p363_p12), %v638_v13, %v637_v11  ;;  %v3695_v17 = vpack.c.bf16 (!%p363_p12), %v640_v16, %v639_v15  ;;  %v641_v18 = vld [vmem:[%s4931_s4 + $0x30] sm:$0xff] (!%p363_p12)  ;;  %v642_v19 = vld [vmem:[%s4931_s4 + $0x38] sm:$0xff] (!%p363_p12)  ;;  %v822_v21 = vld [vmem:[%s4932_s5] sm:$0xff] (!%p363_p12)  ;;  %3719 = vmatprep.subr.bf16.mxu0 (!%p363_p12), %v4103_v24  ;;  %vm4104_vm4 = vmmov (!%p363_p12), 0  }
  0x21   : > { %s4201_s21 = sld [smem:[#allocation4 + %s515_s20]] (!%p363_p12)  ;;  %3688 = vmatprep.subr.bf16.mxu1 (!%p363_p12), %v3687_v12  ;;  %v3699_v20 = vpack.c.bf16 (!%p363_p12), %v642_v19, %v641_v18  ;;  %v823_v22 = vld [vmem:[%s4932_s5 + $0x8] sm:$0xff] (!%p363_p12)  ;;  %v732_v25 = vld [vmem:[%s4934_s7] sm:$0xff] (!%p363_p12)  ;;  %v4105_v27 = vmov (!%p363_p12), 0.0   ;;  %vm4944_vm8 = vcmask (!%p363_p12), 261120   ;;  %vm4942_vm9 = vcmask (!%p363_p12), 523264  }
  0x22   : > { %s4208_s24 = sld [smem:[#allocation3 + %s515_s20]] (!%p363_p12)  ;;  %3690 = vmatpush3.bf16.msra.mxu1 (!%p363_p12), %v3687_v12  ;;  %v4258_v23 = vpack.c.bf16 (!%p363_p12), %v823_v22, %v822_v21  ;;  %v733_v26 = vld [vmem:[%s4934_s7 + $0x8] sm:$0xff] (!%p363_p12)  ;;  %3552 = vmatprep.mubr.msk.f32.mxu0 (!%p363_p12), %vm4104_vm4, %v4105_v27  ;;  %v734_v42 = vld [vmem:[%s4934_s7 + $0x10] sm:$0xff] (!%p363_p12)  ;;  %v735_v43 = vld [vmem:[%s4934_s7 + $0x18] sm:$0xff] (!%p363_p12)  ;;  %vm4945_vm11 = vcmask (!%p363_p12), 1041409   ;;  %vm4943_vm12 = vcmask (!%p363_p12), 130048  }
  0x23   : > { %3692 = vmatprep.subr.bf16.mxu1 (!%p363_p12), %v3691_v14  ;;  %v3703_v28 = vpack.c.bf16 (!%p363_p12), %v733_v26, %v732_v25  ;;  %v3707_v46 = vpack.c.bf16 (!%p363_p12), %v735_v43, %v734_v42  ;;  %v736_v48 = vld [vmem:[%s4934_s7 + $0x20] sm:$0xff] (!%p363_p12)  ;;  %v737_v49 = vld [vmem:[%s4934_s7 + $0x28] sm:$0xff] (!%p363_p12)  ;;  %v738_v51 = vld [vmem:[%s4934_s7 + $0x30] sm:$0xff] (!%p363_p12)  ;;  %s4110_s16 = smov (!%p363_p12), 64  }
  0x24   : > { %3721 = vmatpush3.bf16.msra.mxu0 (!%p363_p12), %v4258_v23  ;;  %v3711_v50 = vpack.c.bf16 (!%p363_p12), %v737_v49, %v736_v48  ;;  %v739_v52 = vld [vmem:[%s4934_s7 + $0x38] sm:$0xff] (!%p363_p12)  ;;  %v3371_v56 = vld [vmem:[%s4933_s6] ss:$0 sm:$0xff] (!%p363_p12) }
  0x25   : > { %3722 = vmatprep.subr.bf16.mxu0 (!%p363_p12), %v4103_v24  ;;  %v3715_v53 = vpack.c.bf16 (!%p363_p12), %v739_v52, %v738_v51  ;;  %s473_s15 = sadd.s32 (!%p363_p12), 24, %s4196_s19 }
  0x26   : > { %s5000_s17 = smov (!%p410_p13, %s3355_s17), 1  ;;  %3694 = vmatpush3.bf16.msra.mxu1 %v3691_v14 }
  0x27   : > { %s4206_s23 = sshll.u32 %s5000_s17, 5  ;;  %3696 = vmatprep.subr.bf16.mxu1 %v3695_v17  ;;  %3553 = vmatmul.mubr.f32.vlgmr.msra.gmra.mrb[0].mxu0 %v4105_v27 }
  0x28   : > { %s4214_s27 = scalar_lea.vmem %s4930_s3, %s4206_s23  ;;  %s4275_s20 = scalar_lea.vmem %s4929_s2, %s4206_s23  ;;  %3724 = vmatpush3.bf16.msra.mxu0 %v4258_v23  ;;  %3559 = vmatprep.mubr.msk.f32.mxu0 %vm4104_vm4, %v4105_v27 }
  0x29   : > { %s3306_s28 = scalar_lea.vmem %s4214_s27, %s4196_s19  ;;  %s3312_s29 = scalar_lea.vmem %s4214_s27, %s4201_s21  ;;  %3725 = vmatprep.subr.bf16.mxu0 %v4103_v24 }
  0x2a   : > { %v3368_v1 = vld [vmem:[%s3306_s28 + $0x10] sm:$0xff]  ;;  %s489_s30 = scalar_lea.vmem %s4214_s27, %s4203_s22  ;;  %s559_s14 = scalar_lea.vmem %s4214_s27, %s4208_s24  ;;  %3698 = vmatpush3.bf16.msra.mxu1 %v3695_v17 }
  0x2b   : > { %vm502_vm0 = vcmp.eq.f32.partialorder %v3368_v1, 0.0  ;;  %v3370_v3 = vld [vmem:[%s3312_s29 + $0x10] sm:$0xff]  ;;  %v490_v4 = vld [vmem:[%s489_s30] sm:$0xff]  ;;  %3700 = vmatprep.subr.bf16.mxu1 %v3699_v20  ;;  %s3304_s25 = scalar_lea.vmem %s4275_s20, %s4196_s19  ;;  %s3310_s26 = scalar_lea.vmem %s4275_s20, %s4201_s21 }
  0x2c   : > { %v503_v2 = vsel %vm502_vm0, 1, %v4102_v0  ;;  %vm572_vm1 = vcmp.eq.f32.partialorder %v3370_v3, 0.0  ;;  %vm491_vm2 = vcmp.eq.f32.partialorder %v490_v4, 0.0  ;;  %v560_v5 = vld [vmem:[%s559_s14] sm:$0xff]  ;;  %v3367_v29 = vld [vmem:[%s3304_s25 + $0x10] sm:$0xff]  ;;  %s4106_s28 = smov 32   ;;  %s487_s29 = scalar_lea.vmem %s4275_s20, %s4203_s22 }
  0x2d   : > { %505 = vperm.xlu0 %3804, %v503_v2   ;;  %v573_v6 = vsel %vm572_vm1, 1, %v4102_v0  ;;  %v492_v7 = vsel %vm491_vm2, 1, %v4102_v0  ;;  %vm561_vm3 = vcmp.eq.f32.partialorder %v560_v5, 0.0  ;;  %v3369_v32 = vld [vmem:[%s3310_s26 + $0x10] sm:$0xff]  ;;  %v488_v36 = vld [vmem:[%s487_s29] sm:$0xff]  ;;  %s557_s30 = scalar_lea.vmem %s4275_s20, %s4208_s24  ;;  %s4107_s25 = smov 96  }
  0x2e   : > { %494 = vperm.xlu1 %3805, %v492_v7   ;;  %v562_v8 = vsel %vm561_vm3, 1, %v4102_v0  ;;  %3702 = vmatpush3.bf16.msra.mxu1 %v3699_v20  ;;  %v558_v40 = vld [vmem:[%s557_s30] sm:$0xff]  ;;  %s4108_s26 = smov 16   ;;  %s4109_s29 = smov 80  }
  0x2f   : > { %3704 = vmatprep.subr.bf16.mxu1 %v3703_v28  ;;  %s453_s30 = sadd.s32 8, %s4203_s22  ;;  %s467_s14 = sadd.s32 16, %s4196_s19 }
  0x30   : > { %s537_s19 = sadd.s32 16, %s4201_s21 }
  0x31   : > { %575 = vperm.xlu0 %3804, %v573_v6  }
  0x32   : > { %564 = vperm.xlu1 %3805, %v562_v8  }
  0xac   : > { %v506_v30 = vpop.permute.xlu0 %505 }
  0xad   : > { %vm507_vm5 = vcmp.eq.s32.totalorder %v506_v30, 1  ;;  %v495_v35 = vpop.permute.xlu1 %494 }
  0xae   : > { %v508_v31 = vsel %vm507_vm5, 1e-09, %v3367_v29  ;;  %vm496_vm7 = vcmp.eq.s32.totalorder %v495_v35, 1 }
  0xaf   : > { %510 = vrot.lane.b32.xlu0 %v508_v31, %s4106_s28  ;;  %v497_v39 = vsel %vm496_vm7, 1e-09, %v488_v36 }
  0xb0   : > { %v576_v33 = vpop.permute.xlu0 %575 }
  0xb1   : > { %vm577_vm6 = vcmp.eq.s32.totalorder %v576_v33, 1  ;;  %v565_v37 = vpop.permute.xlu1 %564 }
  0xb2   : > { %v578_v34 = vsel %vm577_vm6, 1e-09, %v3369_v32  ;;  %vm566_vm10 = vcmp.eq.s32.totalorder %v565_v37, 1 }
  0xb3   : > { %580 = vrot.lane.b32.xlu1 %v578_v34, %s4106_s28  ;;  %v567_v44 = vsel %vm566_vm10, 1e-09, %v558_v40 }
  0xfa   : > { %v896_v54 = vpop.f32.mrb[0].mxu0 }
  0xfb   : > { %v3554_v55 = vpop.f32.mrb[1].mxu0  ;;  %v901_v57 = vrot.slane %v896_v54, 1 }
 0x121   : > { %v511_v38 = vpop.permute.xlu0 %510 }
 0x122   : > { %v514_v41 = vsel %vm4944_vm8, %v497_v39, %v511_v38 }
 0x123   : > { %3526 = vmatprep.mubr.msk.f32.mxu1 %vm4942_vm9, %v514_v41 }
 0x125   : > { %v581_v45 = vpop.permute.xlu1 %580 }
 0x126   : > { %v583_v47 = vsel %vm4944_vm8, %v567_v44, %v581_v45 }
 0x127   : > { %3527 = vmatmul.mubr.msk.f32.vlgmr.msra.gmra.mrb[0].mxu1 %vm4942_vm9, %v583_v47 }
 0x128   : > { %3706 = vmatpush3.bf16.msra.mxu1 %v3703_v28  ;;  %3545 = vmatprep.mubr.msk.f32.mxu1 %vm4942_vm9, %v514_v41 }
 0x129   : > { %3708 = vmatprep.subr.bf16.mxu1 %v3707_v46 }
 0x12c   : > { %3710 = vmatpush3.bf16.msra.mxu1 %v3707_v46 }
 0x12d   : > { %3712 = vmatprep.subr.bf16.mxu1 %v3711_v50 }
 0x130   : > { %3714 = vmatpush3.bf16.msra.mxu1 %v3711_v50 }
 0x131   : > { %3716 = vmatprep.subr.bf16.mxu1 %v3715_v53 }
 0x134   : > { %3718 = vmatpush3.bf16.msra.mxu1 %v3715_v53 }
 0x135   : > { %3728 = vmatprep.subr.bf16.mxu1 %v4103_v24 }
 0x137   : > { %3546 = vmatmul.mubr.msk.f32.vlgmr.msra.gmra.mrb[2].mxu1 %vm4942_vm9, %v583_v47 }
 0x138   : > { %3730 = vmatpush3.bf16.msra.mxu1 %v4258_v23  ;;  %3573 = vmatprep.mubr.msk.f32.mxu1 %vm4104_vm4, %v4105_v27 }
 0x139   : > { %3734 = vmatprep.subr.bf16.mxu1 %v4103_v24 }
 0x1fa   : > { %v3528_v58 = vpop.f32.mrb[0].mxu1 }
 0x1fb   : > { %v4324_v59 = vadd.f32 %v3528_v58, %v3371_v56  ;;  %v723_v60 = vpop.f32.mrb[1].mxu1 }
 0x1fc   : > { %v4326_v61 = vadd.f32 %v3371_v56, %v723_v60 }
 0x1fd   : > { %v905_v62 = vadd.f32 %v901_v57, %v4324_v59 }
 0x1fe   : > { %v904_v63 = vadd.f32 %v896_v54, %v4326_v61 }
 0x1ff   : > { %3806 = vtanh.f32 %v905_v62  ;;  %v3378_v5 = vmul.f32 -1.442695, %v905_v62 }
 0x200   : > { %3808 = vtanh.f32 %v904_v63  ;;  %v3377_v6 = vmul.f32 -1.442695, %v904_v63 }
 0x201   : > { %3810 = vpow2.f32 %v3378_v5 }
 0x202   : > { %3812 = vpow2.f32 %v3377_v6 }
 0x209   : > { %v3807_v1 = vpop.eup %3806 }
 0x20a   : > { %v3809_v2 = vpop.eup %3808  ;;  %v4330_v3 = vpop.f32.mrb[2].mxu1  ;;  %926 = vrot.lane.b32.xlu0 %v3807_v1, %s4107_s25 }
 0x20b   : > { %v4333_v4 = vpop.f32.mrb[3].mxu1  ;;  %924 = vrot.lane.b32.xlu1 %v3809_v2, %s4107_s25  ;;  %v3811_v7 = vpop.eup %3810 }
 0x20c   : > { %v3813_v8 = vpop.eup %3812  ;;  %v913_v9 = vadd.f32 1.0, %v3811_v7 }
 0x20d   : > { %v912_v10 = vadd.f32 1.0, %v3813_v8 }
 0x20e   : > { %3814 = vrcp.f32 %v913_v9 }
 0x20f   : > { %3816 = vrcp.f32 %v912_v10 }
 0x218   : > { %v3815_v11 = vpop.eup %3814 }
 0x219   : > { %v3817_v13 = vpop.eup %3816  ;;  %v921_v17 = vmul.f32 0.0, %v3815_v11 }
 0x21a   : > { %v920_v19 = vmul.f32 0.0, %v3817_v13 }
 0x27c   : > { %v927_v12 = vpop.permute.xlu0 %926 }
 0x27d   : > { %v931_v14 = vmul.f32 %v3815_v11, %v927_v12  ;;  %v925_v15 = vpop.permute.xlu1 %924 }
 0x27e   : > { %v930_v16 = vmul.f32 %v3817_v13, %v925_v15 }
 0x27f   : > { %936 = vrot.lane.b32.xlu0 %v931_v14, %s4108_s26 }
 0x280   : > { %934 = vrot.lane.b32.xlu1 %v930_v16, %s4108_s26 }
 0x2f1   : > { %v937_v18 = vpop.permute.xlu0 %936 }
 0x2f2   : > { %v941_v20 = vadd.f32 %v937_v18, %v921_v17  ;;  %v935_v21 = vpop.permute.xlu1 %934 }
 0x2f3   : > { %v940_v22 = vadd.f32 %v935_v21, %v920_v19 }
 0x2f4   : > { %3818 = vtanh.f32 %v941_v20  ;;  %v1058_v54 = vrot.slane %v941_v20, 7 }
 0x2f5   : > { %3820 = vtanh.f32 %v940_v22  ;;  %v1057_v56 = vrot.slane %v940_v22, 7 }
 0x2fe   : > { %v3819_v25 = vpop.eup %3818 }
 0x2ff   : > { %v3821_v26 = vpop.eup %3820  ;;  %948 = vrot.lane.b32.xlu0 %v3819_v25, %s4106_s28 }
 0x300   : > { %946 = vrot.lane.b32.xlu1 %v3821_v26, %s4106_s28 }
 0x371   : > { %v949_v28 = vpop.permute.xlu0 %948 }
 0x372   : > { %v4340_v29 = vmul.f32 %v3815_v11, %v949_v28  ;;  %v947_v30 = vpop.permute.xlu1 %946 }
 0x373   : > { %v4342_v31 = vmul.f32 %v3817_v13, %v947_v30 }
 0x374   : > { %v958_v32 = vrot.slane %v4340_v29, 7 }
 0x376   : > { %v960_v33 = vsel %vm4945_vm11, %v958_v32, %v4342_v31 }
 0x377   : > { %961 = vrot.lane.b32.xlu0 %v960_v33, %s4109_s29 }
 0x3e9   : > { %v962_v34 = vpop.permute.xlu0 %961 }
 0x3ea   : > { %3560 = vmatmul.mubr.msk.f32.vlgmr.msra.gmra.mrb[2].mxu0 %vm4943_vm12, %v962_v34 }
 0x3eb   : > { %3727 = vmatpush3.bf16.msra.mxu0 %v4258_v23  ;;  %3566 = vmatprep.mubr.msk.f32.mxu0 %vm4104_vm4, %v4105_v27 }
 0x3ec   : > { %3731 = vmatprep.subr.bf16.mxu0 %v4103_v24 }
 0x4bd   : > { %v1031_v35 = vpop.f32.mrb[2].mxu0 }
 0x4be   : > { %v1036_v36 = vrot.slane %v1031_v35, 7  ;;  %v1040_v37 = vadd.f32 %v1031_v35, %v4324_v59  ;;  %v3561_v38 = vpop.f32.mrb[3].mxu0 }
 0x4c0   : > { %v1039_v39 = vadd.f32 %v1036_v36, %v4326_v61  ;;  %3822 = vtanh.f32 %v1040_v37  ;;  %v3381_v42 = vmul.f32 -1.442695, %v1040_v37 }
 0x4c2   : > { %3824 = vtanh.f32 %v1039_v39  ;;  %v3380_v43 = vmul.f32 -1.442695, %v1039_v39 }
 0x4c3   : > { %3826 = vpow2.f32 %v3381_v42 }
 0x4c4   : > { %3828 = vpow2.f32 %v3380_v43 }
 0x4ca   : > { %v3823_v40 = vpop.eup %3822 }
 0x4cb   : > { %1067 = vrot.lane.b32.xlu0 %v3823_v40, %s4107_s25 }
 0x4cc   : > { %v3825_v41 = vpop.eup %3824 }
 0x4cd   : > { %1065 = vrot.lane.b32.xlu1 %v3825_v41, %s4107_s25  ;;  %v3827_v44 = vpop.eup %3826 }
 0x4ce   : > { %v3829_v45 = vpop.eup %3828  ;;  %v1048_v46 = vadd.f32 1.0, %v3827_v44 }
 0x4cf   : > { %v1047_v47 = vadd.f32 1.0, %v3829_v45 }
 0x4d0   : > { %3830 = vrcp.f32 %v1048_v46 }
 0x4d1   : > { %3832 = vrcp.f32 %v1047_v47 }
 0x4da   : > { %v3831_v48 = vpop.eup %3830 }
 0x4db   : > { %v3833_v51 = vpop.eup %3832  ;;  %v1062_v55 = vmul.f32 %v3831_v48, %v1058_v54 }
 0x4dc   : > { %v1061_v60 = vmul.f32 %v3833_v51, %v1057_v56 }
 0x53d   : > { %v1068_v49 = vpop.permute.xlu0 %1067 }
 0x53e   : > { %v1072_v50 = vmul.f32 %v3831_v48, %v1068_v49 }
 0x53f   : > { %v1066_v52 = vpop.permute.xlu1 %1065 }
 0x540   : > { %1077 = vrot.lane.b32.xlu0 %v1072_v50, %s4108_s26  ;;  %v1071_v53 = vmul.f32 %v3833_v51, %v1066_v52 }
 0x542   : > { %1075 = vrot.lane.b32.xlu1 %v1071_v53, %s4108_s26 }
 0x5b2   : > { %v1078_v57 = vpop.permute.xlu0 %1077 }
 0x5b3   : > { %v1082_v58 = vadd.f32 %v1078_v57, %v1062_v55 }
 0x5b4   : > { %v1076_v62 = vpop.permute.xlu1 %1075 }
 0x5b5   : > { %3834 = vtanh.f32 %v1082_v58  ;;  %v1081_v63 = vadd.f32 %v1076_v62, %v1061_v60  ;;  %v1202_v38 = vrot.slane %v1082_v58, 7 }
 0x5b7   : > { %3836 = vtanh.f32 %v1081_v63  ;;  %v1201_v37 = vrot.slane %v1081_v63, 7 }
 0x5bf   : > { %v3835_v1 = vpop.eup %3834 }
 0x5c0   : > { %1089 = vrot.lane.b32.xlu0 %v3835_v1, %s4106_s28 }
 0x5c1   : > { %v3837_v2 = vpop.eup %3836 }
 0x5c2   : > { %1087 = vrot.lane.b32.xlu1 %v3837_v2, %s4106_s28 }
 0x632   : > { %v1090_v5 = vpop.permute.xlu0 %1089 }
 0x633   : > { %v1094_v8 = vmul.f32 %v3831_v48, %v1090_v5 }
 0x634   : > { %v1088_v6 = vpop.permute.xlu1 %1087 }
 0x635   : > { %v1093_v7 = vmul.f32 %v3833_v51, %v1088_v6  ;;  %v1098_v47 = vrot.slane %v1094_v8, 1 }
 0x637   : > { %v1097_v9 = vrot.slane %v1093_v7, 1  ;;  %v1102_v54 = vadd.f32 %v1098_v47, %v4340_v29 }
 0x639   : > { %v1103_v10 = vsel %vm4945_vm11, %v1094_v8, %v1097_v9  ;;  %v1101_v52 = vadd.f32 %v1097_v9, %v4342_v31 }
 0x63a   : > { %1104 = vrot.lane.b32.xlu1 %v1103_v10, %s4109_s29 }
 0x6ac   : > { %v1105_v11 = vpop.permute.xlu1 %1104 }
 0x6ad   : > { %3567 = vmatmul.mubr.msk.f32.vlgmr.msra.gmra.mrb[4].mxu0 %vm4943_vm12, %v1105_v11 }
 0x6ae   : > { %3733 = vmatpush3.bf16.msra.mxu0 %v4258_v23  ;;  %3580 = vmatprep.mubr.msk.f32.mxu0 %vm4104_vm4, %v4105_v27 }
 0x6af   : > { %3737 = vmatprep.subr.bf16.mxu0 %v4103_v24 }
 0x780   : > { %v1174_v12 = vpop.f32.mrb[4].mxu0 }
 0x781   : > { %v1179_v13 = vrot.slane %v1174_v12, 6  ;;  %v1180_v14 = vrot.slane %v1174_v12, 7  ;;  %v3568_v15 = vpop.f32.mrb[5].mxu0 }
 0x783   : > { %v1183_v16 = vadd.f32 %v1179_v13, %v4326_v61  ;;  %v1184_v17 = vadd.f32 %v1180_v14, %v4324_v59 }
 0x785   : > { %3838 = vtanh.f32 %v1183_v16  ;;  %v3383_v20 = vmul.f32 -1.442695, %v1183_v16  ;;  %v3384_v21 = vmul.f32 -1.442695, %v1184_v17 }
 0x786   : > { %3840 = vtanh.f32 %v1184_v17 }
 0x787   : > { %3842 = vpow2.f32 %v3383_v20 }
 0x788   : > { %3844 = vpow2.f32 %v3384_v21 }
 0x78f   : > { %v3839_v18 = vpop.eup %3838 }
 0x790   : > { %v3841_v19 = vpop.eup %3840  ;;  %1209 = vrot.lane.b32.xlu0 %v3839_v18, %s4107_s25 }
 0x791   : > { %1211 = vrot.lane.b32.xlu1 %v3841_v19, %s4107_s25  ;;  %v3843_v22 = vpop.eup %3842 }
 0x792   : > { %v3845_v25 = vpop.eup %3844  ;;  %v1191_v26 = vadd.f32 1.0, %v3843_v22 }
 0x793   : > { %v1192_v28 = vadd.f32 1.0, %v3845_v25 }
 0x794   : > { %3846 = vrcp.f32 %v1191_v26 }
 0x795   : > { %3848 = vrcp.f32 %v1192_v28 }
 0x79e   : > { %v3847_v30 = vpop.eup %3846 }
 0x79f   : > { %v3849_v33 = vpop.eup %3848  ;;  %v1205_v39 = vmul.f32 %v3847_v30, %v1201_v37 }
 0x7a0   : > { %v1206_v40 = vmul.f32 %v3849_v33, %v1202_v38 }
 0x802   : > { %v1210_v32 = vpop.permute.xlu0 %1209 }
 0x803   : > { %v1212_v34 = vpop.permute.xlu1 %1211  ;;  %v1215_v35 = vmul.f32 %v3847_v30, %v1210_v32 }
 0x804   : > { %v1216_v36 = vmul.f32 %v3849_v33, %v1212_v34 }
 0x805   : > { %1219 = vrot.lane.b32.xlu0 %v1215_v35, %s4108_s26 }
 0x806   : > { %1221 = vrot.lane.b32.xlu1 %v1216_v36, %s4108_s26 }
 0x877   : > { %v1220_v41 = vpop.permute.xlu0 %1219 }
 0x878   : > { %v1222_v42 = vpop.permute.xlu1 %1221  ;;  %v1225_v43 = vadd.f32 %v1220_v41, %v1205_v39 }
 0x879   : > { %v1226_v44 = vadd.f32 %v1222_v42, %v1206_v40 }
 0x87a   : > { %3850 = vtanh.f32 %v1225_v43  ;;  %v1346_v20 = vrot.slane %v1225_v43, 7 }
 0x87b   : > { %3852 = vtanh.f32 %v1226_v44  ;;  %v1347_v21 = vrot.slane %v1226_v44, 7 }
 0x884   : > { %v3851_v45 = vpop.eup %3850 }
 0x885   : > { %v3853_v46 = vpop.eup %3852  ;;  %1231 = vrot.lane.b32.xlu0 %v3851_v45, %s4106_s28 }
 0x886   : > { %1233 = vrot.lane.b32.xlu1 %v3853_v46, %s4106_s28 }
 0x8f7   : > { %v1232_v48 = vpop.permute.xlu0 %1231 }
 0x8f8   : > { %v1234_v49 = vpop.permute.xlu1 %1233  ;;  %v1237_v50 = vmul.f32 %v3847_v30, %v1232_v48 }
 0x8f9   : > { %v1238_v51 = vmul.f32 %v3849_v33, %v1234_v49 }
 0x8fa   : > { %v1241_v53 = vrot.slane %v1237_v50, 2 }
 0x8fb   : > { %v1242_v55 = vrot.slane %v1238_v51, 2  ;;  %v1247_v56 = vrot.slane %v1238_v51, 1 }
 0x8fc   : > { %v1245_v57 = vadd.f32 %v1241_v53, %v1101_v52 }
 0x8fd   : > { %v1246_v58 = vadd.f32 %v1242_v55, %v1102_v54  ;;  %v1248_v60 = vsel %vm4945_vm11, %v1247_v56, %v1241_v53 }
 0x8fe   : > { %1249 = vrot.lane.b32.xlu0 %v1248_v60, %s4109_s29 }
 0x970   : > { %v1250_v62 = vpop.permute.xlu0 %1249 }
 0x971   : > { %3574 = vmatmul.mubr.msk.f32.vlgmr.msra.gmra.mrb[4].mxu1 %vm4943_vm12, %v1250_v62 }
 0x972   : > { %3736 = vmatpush3.bf16.msra.mxu1 %v4258_v23  ;;  %3587 = vmatprep.mubr.msk.f32.mxu1 %vm4104_vm4, %v4105_v27 }
 0x973   : > { %3740 = vmatprep.subr.bf16.mxu1 %v4103_v24 }
 0xa44   : > { %v1319_v31 = vpop.f32.mrb[4].mxu1 }
 0xa45   : > { %v1324_v29 = vrot.slane %v1319_v31, 5  ;;  %v1325_v63 = vrot.slane %v1319_v31, 6  ;;  %v3575_v1 = vpop.f32.mrb[5].mxu1 }
 0xa47   : > { %v1328_v2 = vadd.f32 %v1324_v29, %v4326_v61  ;;  %v1329_v5 = vadd.f32 %v1325_v63, %v4324_v59 }
 0xa49   : > { %3854 = vtanh.f32 %v1328_v2  ;;  %v3386_v8 = vmul.f32 -1.442695, %v1328_v2  ;;  %v3387_v9 = vmul.f32 -1.442695, %v1329_v5 }
 0xa4a   : > { %3856 = vtanh.f32 %v1329_v5 }
 0xa4b   : > { %3858 = vpow2.f32 %v3386_v8 }
 0xa4c   : > { %3860 = vpow2.f32 %v3387_v9 }
 0xa53   : > { %v3855_v6 = vpop.eup %3854 }
 0xa54   : > { %v3857_v7 = vpop.eup %3856  ;;  %1354 = vrot.lane.b32.xlu1 %v3855_v6, %s4107_s25 }
 0xa55   : > { %1356 = vrot.lane.b32.xlu0 %v3857_v7, %s4107_s25  ;;  %v3859_v10 = vpop.eup %3858 }
 0xa56   : > { %v3861_v11 = vpop.eup %3860  ;;  %v1336_v12 = vadd.f32 1.0, %v3859_v10 }
 0xa57   : > { %v1337_v13 = vadd.f32 1.0, %v3861_v11 }
 0xa58   : > { %3862 = vrcp.f32 %v1336_v12 }
 0xa59   : > { %3864 = vrcp.f32 %v1337_v13 }
 0xa62   : > { %v3863_v14 = vpop.eup %3862 }
 0xa63   : > { %v3865_v16 = vpop.eup %3864  ;;  %v1350_v22 = vmul.f32 %v3863_v14, %v1346_v20 }
 0xa64   : > { %v1351_v25 = vmul.f32 %v3865_v16, %v1347_v21 }
 0xac6   : > { %v1355_v15 = vpop.permute.xlu1 %1354 }
 0xac7   : > { %v1357_v17 = vpop.permute.xlu0 %1356  ;;  %v1360_v18 = vmul.f32 %v3863_v14, %v1355_v15 }
 0xac8   : > { %v1361_v19 = vmul.f32 %v3865_v16, %v1357_v17 }
 0xac9   : > { %1364 = vrot.lane.b32.xlu1 %v1360_v18, %s4108_s26 }
 0xaca   : > { %1366 = vrot.lane.b32.xlu0 %v1361_v19, %s4108_s26 }
 0xb3b   : > { %v1365_v26 = vpop.permute.xlu1 %1364 }
 0xb3c   : > { %v1367_v28 = vpop.permute.xlu0 %1366  ;;  %v1370_v30 = vadd.f32 %v1365_v26, %v1350_v22 }
 0xb3d   : > { %v1371_v32 = vadd.f32 %v1367_v28, %v1351_v25 }
 0xb3e   : > { %3866 = vtanh.f32 %v1370_v30  ;;  %v1491_v5 = vrot.slane %v1370_v30, 7 }
 0xb3f   : > { %3868 = vtanh.f32 %v1371_v32  ;;  %v1492_v6 = vrot.slane %v1371_v32, 7 }
 0xb48   : > { %v3867_v33 = vpop.eup %3866 }
 0xb49   : > { %v3869_v34 = vpop.eup %3868  ;;  %1376 = vrot.lane.b32.xlu1 %v3867_v33, %s4106_s28 }
 0xb4a   : > { %1378 = vrot.lane.b32.xlu0 %v3869_v34, %s4106_s28 }
 0xbbb   : > { %v1377_v35 = vpop.permute.xlu1 %1376 }
 0xbbc   : > { %v1379_v36 = vpop.permute.xlu0 %1378  ;;  %v1382_v37 = vmul.f32 %v3863_v14, %v1377_v35 }
 0xbbd   : > { %v1383_v38 = vmul.f32 %v3865_v16, %v1379_v36 }
 0xbbe   : > { %v1386_v39 = vrot.slane %v1382_v37, 3 }
 0xbbf   : > { %v1387_v40 = vrot.slane %v1383_v38, 3  ;;  %v1392_v41 = vrot.slane %v1383_v38, 2 }
 0xbc0   : > { %v1390_v42 = vadd.f32 %v1386_v39, %v1245_v57 }
 0xbc1   : > { %v1391_v43 = vadd.f32 %v1387_v40, %v1246_v58  ;;  %v1393_v44 = vsel %vm4945_vm11, %v1392_v41, %v1386_v39 }
 0xbc2   : > { %1394 = vrot.lane.b32.xlu1 %v1393_v44, %s4109_s29 }
 0xc34   : > { %v1395_v45 = vpop.permute.xlu1 %1394 }
 0xc35   : > { %3581 = vmatmul.mubr.msk.f32.vlgmr.msra.gmra.mrb[6].mxu0 %vm4943_vm12, %v1395_v45 }
 0xc36   : > { %3739 = vmatpush3.bf16.msra.mxu0 %v4258_v23  ;;  %3594 = vmatprep.mubr.msk.f32.mxu0 %vm4104_vm4, %v4105_v27 }
 0xc37   : > { %3743 = vmatprep.subr.bf16.mxu0 %v4103_v24 }
 0xd08   : > { %v1464_v46 = vpop.f32.mrb[6].mxu0 }
 0xd09   : > { %v1469_v47 = vrot.slane %v1464_v46, 4  ;;  %v1470_v48 = vrot.slane %v1464_v46, 5  ;;  %v3582_v49 = vpop.f32.mrb[7].mxu0 }
 0xd0b   : > { %v1473_v50 = vadd.f32 %v1469_v47, %v4326_v61  ;;  %v1474_v51 = vadd.f32 %v1470_v48, %v4324_v59 }
 0xd0d   : > { %3870 = vtanh.f32 %v1473_v50  ;;  %v3389_v54 = vmul.f32 -1.442695, %v1473_v50  ;;  %v3390_v55 = vmul.f32 -1.442695, %v1474_v51 }
 0xd0e   : > { %3872 = vtanh.f32 %v1474_v51 }
 0xd0f   : > { %3874 = vpow2.f32 %v3389_v54 }
 0xd10   : > { %3876 = vpow2.f32 %v3390_v55 }
 0xd17   : > { %v3871_v52 = vpop.eup %3870 }
 0xd18   : > { %v3873_v53 = vpop.eup %3872  ;;  %1499 = vrot.lane.b32.xlu0 %v3871_v52, %s4107_s25 }
 0xd19   : > { %1501 = vrot.lane.b32.xlu1 %v3873_v53, %s4107_s25  ;;  %v3875_v56 = vpop.eup %3874 }
 0xd1a   : > { %v3877_v57 = vpop.eup %3876  ;;  %v1481_v58 = vadd.f32 1.0, %v3875_v56 }
 0xd1b   : > { %v1482_v60 = vadd.f32 1.0, %v3877_v57 }
 0xd1c   : > { %3878 = vrcp.f32 %v1481_v58 }
 0xd1d   : > { %3880 = vrcp.f32 %v1482_v60 }
 0xd26   : > { %v3879_v62 = vpop.eup %3878 }
 0xd27   : > { %v3881_v29 = vpop.eup %3880  ;;  %v1495_v7 = vmul.f32 %v3879_v62, %v1491_v5 }
 0xd28   : > { %v1496_v8 = vmul.f32 %v3881_v29, %v1492_v6 }
 0xd8a   : > { %v1500_v31 = vpop.permute.xlu0 %1499 }
 0xd8b   : > { %v1502_v63 = vpop.permute.xlu1 %1501  ;;  %v1505_v1 = vmul.f32 %v3879_v62, %v1500_v31 }
 0xd8c   : > { %v1506_v2 = vmul.f32 %v3881_v29, %v1502_v63 }
 0xd8d   : > { %1509 = vrot.lane.b32.xlu0 %v1505_v1, %s4108_s26 }
 0xd8e   : > { %1511 = vrot.lane.b32.xlu1 %v1506_v2, %s4108_s26 }
 0xdff   : > { %v1510_v9 = vpop.permute.xlu0 %1509 }
 0xe00   : > { %v1512_v10 = vpop.permute.xlu1 %1511  ;;  %v1515_v11 = vadd.f32 %v1510_v9, %v1495_v7  ;;  %v824_v9 = vld [vmem:[%s4935_s8] sm:$0xff] }
 0xe01   : > { %v1516_v12 = vadd.f32 %v1512_v10, %v1496_v8  ;;  %v825_v10 = vld [vmem:[%s4935_s8 + $0x8] sm:$0xff] }
 0xe02   : > { %3882 = vtanh.f32 %v1515_v11  ;;  %v1636_v50 = vrot.slane %v1515_v11, 7  ;;  %v4441_v11 = vpack.c.bf16 %v825_v10, %v824_v9 }
 0xe03   : > { %3884 = vtanh.f32 %v1516_v12  ;;  %v1637_v51 = vrot.slane %v1516_v12, 7 }
 0xe0c   : > { %v3883_v13 = vpop.eup %3882 }
 0xe0d   : > { %v3885_v14 = vpop.eup %3884  ;;  %1521 = vrot.lane.b32.xlu0 %v3883_v13, %s4106_s28 }
 0xe0e   : > { %1523 = vrot.lane.b32.xlu1 %v3885_v14, %s4106_s28 }
 0xe7f   : > { %v1522_v15 = vpop.permute.xlu0 %1521 }
 0xe80   : > { %v1524_v16 = vpop.permute.xlu1 %1523  ;;  %v1527_v17 = vmul.f32 %v3879_v62, %v1522_v15 }
 0xe81   : > { %v1528_v18 = vmul.f32 %v3881_v29, %v1524_v16 }
 0xe82   : > { %v1531_v19 = vrot.slane %v1527_v17, 4  ;;  %v3374_v17 = vld [vmem:[%s4936_s9] ss:$0 sm:$0xff] }
 0xe83   : > { %v1532_v20 = vrot.slane %v1528_v18, 4  ;;  %v1537_v21 = vrot.slane %v1528_v18, 3 }
 0xe84   : > { %v1535_v22 = vadd.f32 %v1531_v19, %v1390_v42 }
 0xe85   : > { %v1536_v25 = vadd.f32 %v1532_v20, %v1391_v43  ;;  %v1538_v26 = vsel %vm4945_vm11, %v1537_v21, %v1531_v19  ;;  %v4459_v21 = vadd.f32 %v3374_v17, %v4333_v4 }
 0xe86   : > { %1539 = vrot.lane.b32.xlu0 %v1538_v26, %s4109_s29  ;;  %v4462_v26 = vadd.f32 %v4330_v3, %v3374_v17 }
 0xef8   : > { %v1540_v28 = vpop.permute.xlu0 %1539 }
 0xef9   : > { %3588 = vmatmul.mubr.msk.f32.vlgmr.msra.gmra.mrb[6].mxu1 %vm4943_vm12, %v1540_v28 }
 0xefa   : > { %3742 = vmatpush3.bf16.msra.mxu1 %v4258_v23  ;;  %3601 = vmatprep.mubr.msk.f32.mxu1 %vm4104_vm4, %v4105_v27 }
 0xefb   : > { %3746 = vmatprep.subr.bf16.mxu1 %v4103_v24 }
 0xfcc   : > { %v1609_v30 = vpop.f32.mrb[6].mxu1 }
 0xfcd   : > { %v1614_v32 = vrot.slane %v1609_v30, 3  ;;  %v1615_v33 = vrot.slane %v1609_v30, 4  ;;  %v3589_v34 = vpop.f32.mrb[7].mxu1 }
 0xfcf   : > { %v1618_v35 = vadd.f32 %v1614_v32, %v4326_v61  ;;  %v1619_v36 = vadd.f32 %v1615_v33, %v4324_v59 }
 0xfd1   : > { %3886 = vtanh.f32 %v1618_v35  ;;  %v3392_v23 = vmul.f32 -1.442695, %v1618_v35  ;;  %v3393_v39 = vmul.f32 -1.442695, %v1619_v36 }
 0xfd2   : > { %3888 = vtanh.f32 %v1619_v36 }
 0xfd3   : > { %3890 = vpow2.f32 %v3392_v23 }
 0xfd4   : > { %3892 = vpow2.f32 %v3393_v39 }
 0xfdb   : > { %v3887_v37 = vpop.eup %3886 }
 0xfdc   : > { %v3889_v38 = vpop.eup %3888  ;;  %1644 = vrot.lane.b32.xlu1 %v3887_v37, %s4107_s25 }
 0xfdd   : > { %1646 = vrot.lane.b32.xlu0 %v3889_v38, %s4107_s25  ;;  %v3891_v40 = vpop.eup %3890 }
 0xfde   : > { %v3893_v41 = vpop.eup %3892  ;;  %v1626_v42 = vadd.f32 1.0, %v3891_v40 }
 0xfdf   : > { %v1627_v43 = vadd.f32 1.0, %v3893_v41 }
 0xfe0   : > { %3894 = vrcp.f32 %v1626_v42 }
 0xfe1   : > { %3896 = vrcp.f32 %v1627_v43 }
 0xfea   : > { %v3895_v44 = vpop.eup %3894 }
 0xfeb   : > { %v3897_v46 = vpop.eup %3896  ;;  %v1640_v52 = vmul.f32 %v3895_v44, %v1636_v50 }
 0xfec   : > { %v1641_v53 = vmul.f32 %v3897_v46, %v1637_v51 }
0x104e   : > { %v1645_v45 = vpop.permute.xlu1 %1644 }
0x104f   : > { %v1647_v47 = vpop.permute.xlu0 %1646  ;;  %v1650_v48 = vmul.f32 %v3895_v44, %v1645_v45 }
0x1050   : > { %v1651_v49 = vmul.f32 %v3897_v46, %v1647_v47 }
0x1051   : > { %1654 = vrot.lane.b32.xlu1 %v1650_v48, %s4108_s26 }
0x1052   : > { %1656 = vrot.lane.b32.xlu0 %v1651_v49, %s4108_s26 }
0x10c3   : > { %v1655_v54 = vpop.permute.xlu1 %1654 }
0x10c4   : > { %v1657_v55 = vpop.permute.xlu0 %1656  ;;  %v4421_v56 = vadd.f32 %v1655_v54, %v1640_v52 }
0x10c5   : > { %v4423_v57 = vadd.f32 %v1657_v55, %v1641_v53 }
0x10c6   : > { %3898 = vtanh.f32 %v4421_v56 }
0x10c7   : > { %3900 = vtanh.f32 %v4423_v57 }
0x10d0   : > { %v3899_v58 = vpop.eup %3898 }
0x10d1   : > { %v3901_v60 = vpop.eup %3900  ;;  %1666 = vrot.lane.b32.xlu1 %v3899_v58, %s4106_s28 }
0x10d2   : > { %1668 = vrot.lane.b32.xlu0 %v3901_v60, %s4106_s28 }
0x1143   : > { %v1667_v62 = vpop.permute.xlu1 %1666 }
0x1144   : > { %v1669_v31 = vpop.permute.xlu0 %1668  ;;  %v1672_v29 = vmul.f32 %v3895_v44, %v1667_v62  ;;  %v1781_v62 = vrot.slane %v4421_v56, 7 }
0x1145   : > { %v1673_v63 = vmul.f32 %v3897_v46, %v1669_v31  ;;  %v1782_v31 = vrot.slane %v4423_v57, 7 }
0x1146   : > { %v1676_v1 = vrot.slane %v1672_v29, 5 }
0x1147   : > { %v1677_v2 = vrot.slane %v1673_v63, 5  ;;  %v1682_v5 = vrot.slane %v1673_v63, 4 }
0x1148   : > { %v4429_v6 = vadd.f32 %v1676_v1, %v1535_v22 }
0x1149   : > { %v4431_v7 = vadd.f32 %v1677_v2, %v1536_v25  ;;  %v1683_v8 = vsel %vm4945_vm11, %v1682_v5, %v1676_v1 }
0x114a   : > { %1684 = vrot.lane.b32.xlu1 %v1683_v8, %s4109_s29 }
0x11bc   : > { %v1685_v12 = vpop.permute.xlu1 %1684 }
0x11bd   : > { %3595 = vmatmul.mubr.msk.f32.vlgmr.msra.gmra.mrb[8].mxu0 %vm4943_vm12, %v1685_v12 }
0x11be   : > { %3745 = vmatpush3.bf16.msra.mxu0 %v4441_v11  ;;  %3608 = vmatprep.mubr.msk.f32.mxu0 %vm4104_vm4, %v4105_v27 }
0x11bf   : > { %3749 = vmatprep.subr.bf16.mxu0 %v4103_v24 }
0x11c1   : > { %3609 = vmatmul.mubr.f32.vlgmr.msra.gmra.mrb[10].mxu0 %v4105_v27 }
0x11c2   : > { %3751 = vmatpush3.bf16.msra.mxu0 %v4441_v11  ;;  %3622 = vmatprep.mubr.msk.f32.mxu0 %vm4104_vm4, %v4105_v27 }
0x11c3   : > { %3755 = vmatprep.subr.bf16.mxu0 %v4103_v24 }
0x1290   : > { %v1754_v13 = vpop.f32.mrb[8].mxu0 }
0x1291   : > { %v1759_v14 = vrot.slane %v1754_v13, 2  ;;  %v1760_v15 = vrot.slane %v1754_v13, 3  ;;  %v3596_v16 = vpop.f32.mrb[9].mxu0 }
0x1293   : > { %v1763_v18 = vadd.f32 %v1759_v14, %v4326_v61  ;;  %v1764_v19 = vadd.f32 %v1760_v15, %v4324_v59 }
0x1294   : > { %v2040_v20 = vpop.f32.mrb[10].mxu0 }
0x1295   : > { %3902 = vtanh.f32 %v1763_v18  ;;  %v2045_v22 = vrot.slane %v2040_v20, 1  ;;  %v3610_v25 = vpop.f32.mrb[11].mxu0  ;;  %v2046_v28 = vrot.slane %v2040_v20, 2  ;;  %v3395_v3 = vmul.f32 -1.442695, %v1763_v18 }
0x1296   : > { %3904 = vtanh.f32 %v1764_v19  ;;  %v3396_v36 = vmul.f32 -1.442695, %v1764_v19 }
0x1297   : > { %v2049_v30 = vadd.f32 %v2045_v22, %v4459_v21  ;;  %v2050_v32 = vadd.f32 %v2046_v28, %v4462_v26 }
0x1299   : > { %3906 = vtanh.f32 %v2049_v30  ;;  %v3400_v37 = vmul.f32 -1.442695, %v2049_v30  ;;  %v3401_v38 = vmul.f32 -1.442695, %v2050_v32 }
0x129a   : > { %3908 = vtanh.f32 %v2050_v32 }
0x129b   : > { %3910 = vpow2.f32 %v3395_v3 }
0x129c   : > { %3912 = vpow2.f32 %v3396_v36 }
0x129d   : > { %3914 = vpow2.f32 %v3400_v37 }
0x129e   : > { %3916 = vpow2.f32 %v3401_v38 }
0x129f   : > { %v3903_v33 = vpop.eup %3902 }
0x12a0   : > { %v3905_v34 = vpop.eup %3904  ;;  %1789 = vrot.lane.b32.xlu0 %v3903_v33, %s4107_s25 }
0x12a1   : > { %1791 = vrot.lane.b32.xlu1 %v3905_v34, %s4107_s25 }
0x12a3   : > { %v3907_v4 = vpop.eup %3906 }
0x12a4   : > { %v3909_v35 = vpop.eup %3908  ;;  %2069 = vrot.lane.b32.xlu0 %v3907_v4, %s4107_s25 }
0x12a5   : > { %2071 = vrot.lane.b32.xlu1 %v3909_v35, %s4107_s25  ;;  %v3911_v23 = vpop.eup %3910 }
0x12a6   : > { %v3913_v39 = vpop.eup %3912  ;;  %v1771_v40 = vadd.f32 1.0, %v3911_v23 }
0x12a7   : > { %v3915_v41 = vpop.eup %3914  ;;  %v1772_v42 = vadd.f32 1.0, %v3913_v39 }
0x12a8   : > { %v3917_v43 = vpop.eup %3916  ;;  %3918 = vrcp.f32 %v1771_v40  ;;  %v2057_v44 = vadd.f32 1.0, %v3915_v41 }
0x12a9   : > { %3920 = vrcp.f32 %v1772_v42  ;;  %v2058_v45 = vadd.f32 1.0, %v3917_v43 }
0x12aa   : > { %3922 = vrcp.f32 %v2057_v44 }
0x12ab   : > { %3924 = vrcp.f32 %v2058_v45 }
0x12b2   : > { %v3919_v46 = vpop.eup %3918 }
0x12b3   : > { %v3921_v48 = vpop.eup %3920  ;;  %v1785_v29 = vmul.f32 %v3919_v46, %v1781_v62 }
0x12b4   : > { %v3923_v52 = vpop.eup %3922  ;;  %v1786_v63 = vmul.f32 %v3921_v48, %v1782_v31 }
0x12b5   : > { %v3925_v54 = vpop.eup %3924  ;;  %v2065_v9 = vmul.f32 0.0, %v3923_v52 }
0x12b6   : > { %v2066_v10 = vmul.f32 0.0, %v3925_v54 }
0x1312   : > { %v1790_v47 = vpop.permute.xlu0 %1789 }
0x1313   : > { %v1792_v49 = vpop.permute.xlu1 %1791  ;;  %v1795_v50 = vmul.f32 %v3919_v46, %v1790_v47 }
0x1314   : > { %v1796_v51 = vmul.f32 %v3921_v48, %v1792_v49 }
0x1315   : > { %1799 = vrot.lane.b32.xlu0 %v1795_v50, %s4108_s26 }
0x1316   : > { %1801 = vrot.lane.b32.xlu1 %v1796_v51, %s4108_s26  ;;  %v2070_v53 = vpop.permute.xlu0 %2069 }
0x1317   : > { %v2072_v55 = vpop.permute.xlu1 %2071  ;;  %v2075_v58 = vmul.f32 %v3923_v52, %v2070_v53 }
0x1318   : > { %v2076_v60 = vmul.f32 %v3925_v54, %v2072_v55 }
0x1319   : > { %2079 = vrot.lane.b32.xlu0 %v2075_v58, %s4108_s26 }
0x131a   : > { %2081 = vrot.lane.b32.xlu1 %v2076_v60, %s4108_s26 }
0x1387   : > { %v1800_v1 = vpop.permute.xlu0 %1799 }
0x1388   : > { %v1802_v2 = vpop.permute.xlu1 %1801  ;;  %v4476_v5 = vadd.f32 %v1800_v1, %v1785_v29 }
0x1389   : > { %v4478_v8 = vadd.f32 %v1802_v2, %v1786_v63 }
0x138a   : > { %3926 = vtanh.f32 %v4476_v5 }
0x138b   : > { %3928 = vtanh.f32 %v4478_v8  ;;  %v2080_v12 = vpop.permute.xlu0 %2079 }
0x138c   : > { %v2082_v13 = vpop.permute.xlu1 %2081  ;;  %v4482_v14 = vadd.f32 %v2080_v12, %v2065_v9 }
0x138d   : > { %v4484_v56 = vadd.f32 %v2082_v13, %v2066_v10 }
0x138e   : > { %3930 = vtanh.f32 %v4482_v14  ;;  %v2203_v63 = vrot.slane %v4482_v14, 1 }
0x138f   : > { %3932 = vtanh.f32 %v4484_v56  ;;  %v2204_v1 = vrot.slane %v4484_v56, 1 }
0x1394   : > { %v3927_v57 = vpop.eup %3926 }
0x1395   : > { %v3929_v15 = vpop.eup %3928  ;;  %1811 = vrot.lane.b32.xlu0 %v3927_v57, %s4106_s28 }
0x1396   : > { %1813 = vrot.lane.b32.xlu1 %v3929_v15, %s4106_s28 }
0x1398   : > { %v3931_v16 = vpop.eup %3930 }
0x1399   : > { %v3933_v17 = vpop.eup %3932  ;;  %2091 = vrot.lane.b32.xlu0 %v3931_v16, %s4106_s28 }
0x139a   : > { %2093 = vrot.lane.b32.xlu1 %v3933_v17, %s4106_s28 }
0x1407   : > { %v1812_v18 = vpop.permute.xlu0 %1811 }
0x1408   : > { %v1814_v19 = vpop.permute.xlu1 %1813  ;;  %v1817_v20 = vmul.f32 %v3919_v46, %v1812_v18 }
0x1409   : > { %v1818_v22 = vmul.f32 %v3921_v48, %v1814_v19 }
0x140a   : > { %v1821_v25 = vrot.slane %v1817_v20, 6 }
0x140b   : > { %v1822_v28 = vrot.slane %v1818_v22, 6  ;;  %v1827_v30 = vrot.slane %v1818_v22, 5  ;;  %v2092_v32 = vpop.permute.xlu0 %2091 }
0x140c   : > { %v4493_v33 = vadd.f32 %v1821_v25, %v4429_v6  ;;  %v2094_v34 = vpop.permute.xlu1 %2093  ;;  %v4495_v4 = vmul.f32 %v3923_v52, %v2092_v32 }
0x140d   : > { %v4498_v35 = vadd.f32 %v1822_v28, %v4431_v7  ;;  %v4500_v3 = vmul.f32 %v3925_v54, %v2094_v34  ;;  %v1828_v36 = vsel %vm4945_vm11, %v1827_v30, %v1821_v25 }
0x140e   : > { %v2103_v37 = vrot.slane %v4495_v4, 7  ;;  %1829 = vrot.lane.b32.xlu0 %v1828_v36, %s4109_s29 }
0x140f   : > { %v2104_v38 = vrot.slane %v4500_v3, 6 }
0x1411   : > { %v2105_v23 = vsel %vm4945_vm11, %v2104_v38, %v2103_v37 }
0x1412   : > { %2106 = vrot.lane.b32.xlu1 %v2105_v23, %s4109_s29 }
0x1480   : > { %v1830_v6 = vpop.permute.xlu0 %1829 }
0x1481   : > { %3602 = vmatmul.mubr.msk.f32.vlgmr.msra.gmra.mrb[8].mxu1 %vm4943_vm12, %v1830_v6 }
0x1482   : > { %3748 = vmatpush3.bf16.msra.mxu1 %v4441_v11  ;;  %3615 = vmatprep.mubr.msk.f32.mxu1 %vm4104_vm4, %v4105_v27 }
0x1483   : > { %3752 = vmatprep.subr.bf16.mxu1 %v4103_v24 }
0x1484   : > { %v2107_v7 = vpop.permute.xlu1 %2106 }
0x1485   : > { %3616 = vmatmul.mubr.msk.f32.vlgmr.msra.gmra.mrb[10].mxu1 %vm4943_vm12, %v2107_v7 }
0x1486   : > { %3754 = vmatpush3.bf16.msra.mxu1 %v4441_v11  ;;  %3629 = vmatprep.mubr.msk.f32.mxu1 %vm4104_vm4, %v4105_v27 }
0x1487   : > { %3758 = vmatprep.subr.bf16.mxu1 %v4103_v24 }
0x1554   : > { %v4518_v39 = vpop.f32.mrb[8].mxu1 }
0x1555   : > { %v3603_v40 = vpop.f32.mrb[9].mxu1 }
0x1558   : > { %v2176_v41 = vpop.f32.mrb[10].mxu1 }
0x1559   : > { %v2181_v42 = vrot.slane %v2176_v41, 2  ;;  %v3617_v43 = vpop.f32.mrb[11].mxu1  ;;  %v2182_v44 = vrot.slane %v2176_v41, 3 }
0x155b   : > { %v2185_v45 = vadd.f32 %v2181_v42, %v4459_v21  ;;  %v2186_v46 = vadd.f32 %v2182_v44, %v4462_v26 }
0x155d   : > { %3934 = vtanh.f32 %v2185_v45  ;;  %v3403_v49 = vmul.f32 -1.442695, %v2185_v45  ;;  %v3404_v50 = vmul.f32 -1.442695, %v2186_v46 }
0x155e   : > { %3936 = vtanh.f32 %v2186_v46 }
0x155f   : > { %3938 = vpow2.f32 %v3403_v49 }
0x1560   : > { %3940 = vpow2.f32 %v3404_v50 }
0x1567   : > { %v3935_v47 = vpop.eup %3934 }
0x1568   : > { %v3937_v48 = vpop.eup %3936  ;;  %2211 = vrot.lane.b32.xlu0 %v3935_v47, %s4107_s25 }
0x1569   : > { %2213 = vrot.lane.b32.xlu1 %v3937_v48, %s4107_s25  ;;  %v3939_v51 = vpop.eup %3938 }
0x156a   : > { %v3941_v52 = vpop.eup %3940  ;;  %v2193_v53 = vadd.f32 1.0, %v3939_v51 }
0x156b   : > { %v2194_v54 = vadd.f32 1.0, %v3941_v52 }
0x156c   : > { %3942 = vrcp.f32 %v2193_v53 }
0x156d   : > { %3944 = vrcp.f32 %v2194_v54 }
0x1576   : > { %v3943_v55 = vpop.eup %3942 }
0x1577   : > { %v3945_v60 = vpop.eup %3944  ;;  %v2207_v2 = vmul.f32 %v3943_v55, %v2203_v63 }
0x1578   : > { %v2208_v9 = vmul.f32 %v3945_v60, %v2204_v1 }
0x15da   : > { %v2212_v58 = vpop.permute.xlu0 %2211 }
0x15db   : > { %v2214_v62 = vpop.permute.xlu1 %2213  ;;  %v2217_v31 = vmul.f32 %v3943_v55, %v2212_v58 }
0x15dc   : > { %v2218_v29 = vmul.f32 %v3945_v60, %v2214_v62 }
0x15dd   : > { %2221 = vrot.lane.b32.xlu0 %v2217_v31, %s4108_s26 }
0x15de   : > { %2223 = vrot.lane.b32.xlu1 %v2218_v29, %s4108_s26 }
0x164f   : > { %v2222_v10 = vpop.permute.xlu0 %2221 }
0x1650   : > { %v2224_v12 = vpop.permute.xlu1 %2223  ;;  %v2227_v13 = vadd.f32 %v2222_v10, %v2207_v2 }
0x1651   : > { %v2228_v57 = vadd.f32 %v2224_v12, %v2208_v9 }
0x1652   : > { %3946 = vtanh.f32 %v2227_v13  ;;  %v2349_v50 = vrot.slane %v2227_v13, 1 }
0x1653   : > { %3948 = vtanh.f32 %v2228_v57  ;;  %v2350_v51 = vrot.slane %v2228_v57, 1 }
0x165c   : > { %v3947_v15 = vpop.eup %3946 }
0x165d   : > { %v3949_v16 = vpop.eup %3948  ;;  %2233 = vrot.lane.b32.xlu0 %v3947_v15, %s4106_s28 }
0x165e   : > { %2235 = vrot.lane.b32.xlu1 %v3949_v16, %s4106_s28 }
0x16cf   : > { %v2234_v17 = vpop.permute.xlu0 %2233 }
0x16d0   : > { %v2236_v18 = vpop.permute.xlu1 %2235  ;;  %v2239_v19 = vmul.f32 %v3943_v55, %v2234_v17 }
0x16d1   : > { %v4530_v14 = vmul.f32 %v3945_v60, %v2236_v18 }
0x16d2   : > { %v2249_v56 = vrot.slane %v2239_v19, 6  ;;  %v2243_v29 = vrot.slane %v2239_v19, 7 }
0x16d3   : > { %v2250_v20 = vrot.slane %v4530_v14, 5  ;;  %v2244_v63 = vrot.slane %v4530_v14, 7 }
0x16d4   : > { %v2247_v12 = vadd.f32 %v2243_v29, %v4495_v4 }
0x16d5   : > { %v2251_v22 = vsel %vm4945_vm11, %v2250_v20, %v2249_v56  ;;  %v2248_v15 = vadd.f32 %v2244_v63, %v4500_v3 }
0x16d6   : > { %2252 = vrot.lane.b32.xlu0 %v2251_v22, %s4109_s29 }
0x1748   : > { %v2253_v25 = vpop.permute.xlu0 %2252 }
0x1749   : > { %3623 = vmatmul.mubr.msk.f32.vlgmr.msra.gmra.mrb[12].mxu0 %vm4943_vm12, %v2253_v25 }
0x174a   : > { %3757 = vmatpush3.bf16.msra.mxu0 %v4441_v11  ;;  %3636 = vmatprep.mubr.msk.f32.mxu0 %vm4104_vm4, %v4105_v27 }
0x174b   : > { %3761 = vmatprep.subr.bf16.mxu0 %v4103_v24 }
0x181c   : > { %v2322_v28 = vpop.f32.mrb[12].mxu0 }
0x181d   : > { %v2327_v30 = vrot.slane %v2322_v28, 3  ;;  %v2328_v32 = vrot.slane %v2322_v28, 4  ;;  %v3624_v34 = vpop.f32.mrb[13].mxu0 }
0x181f   : > { %v2331_v36 = vadd.f32 %v2327_v30, %v4459_v21  ;;  %v2332_v37 = vadd.f32 %v2328_v32, %v4462_v26 }
0x1821   : > { %3950 = vtanh.f32 %v2331_v36  ;;  %v3406_v6 = vmul.f32 -1.442695, %v2331_v36  ;;  %v3407_v7 = vmul.f32 -1.442695, %v2332_v37 }
0x1822   : > { %3952 = vtanh.f32 %v2332_v37 }
0x1823   : > { %3954 = vpow2.f32 %v3406_v6 }
0x1824   : > { %3956 = vpow2.f32 %v3407_v7 }
0x182b   : > { %v3951_v38 = vpop.eup %3950 }
0x182c   : > { %v3953_v23 = vpop.eup %3952  ;;  %2357 = vrot.lane.b32.xlu1 %v3951_v38, %s4107_s25 }
0x182d   : > { %2359 = vrot.lane.b32.xlu0 %v3953_v23, %s4107_s25  ;;  %v3955_v40 = vpop.eup %3954 }
0x182e   : > { %v3957_v41 = vpop.eup %3956  ;;  %v2339_v42 = vadd.f32 1.0, %v3955_v40 }
0x182f   : > { %v2340_v43 = vadd.f32 1.0, %v3957_v41 }
0x1830   : > { %3958 = vrcp.f32 %v2339_v42 }
0x1831   : > { %3960 = vrcp.f32 %v2340_v43 }
0x183a   : > { %v3959_v44 = vpop.eup %3958 }
0x183b   : > { %v3961_v46 = vpop.eup %3960  ;;  %v2353_v52 = vmul.f32 %v3959_v44, %v2349_v50 }
0x183c   : > { %v2354_v53 = vmul.f32 %v3961_v46, %v2350_v51 }
0x189e   : > { %v2358_v45 = vpop.permute.xlu1 %2357 }
0x189f   : > { %v2360_v47 = vpop.permute.xlu0 %2359  ;;  %v2363_v48 = vmul.f32 %v3959_v44, %v2358_v45 }
0x18a0   : > { %v2364_v49 = vmul.f32 %v3961_v46, %v2360_v47 }
0x18a1   : > { %2367 = vrot.lane.b32.xlu1 %v2363_v48, %s4108_s26 }
0x18a2   : > { %2369 = vrot.lane.b32.xlu0 %v2364_v49, %s4108_s26 }
0x1913   : > { %v2368_v54 = vpop.permute.xlu1 %2367 }
0x1914   : > { %v2370_v55 = vpop.permute.xlu0 %2369  ;;  %v2373_v58 = vadd.f32 %v2368_v54, %v2353_v52 }
0x1915   : > { %v2374_v60 = vadd.f32 %v2370_v55, %v2354_v53 }
0x1916   : > { %3962 = vtanh.f32 %v2373_v58  ;;  %v2495_v45 = vrot.slane %v2373_v58, 1 }
0x1917   : > { %3964 = vtanh.f32 %v2374_v60 }
0x1920   : > { %v3963_v62 = vpop.eup %3962 }
0x1921   : > { %v3965_v31 = vpop.eup %3964  ;;  %2379 = vrot.lane.b32.xlu1 %v3963_v62, %s4106_s28 }
0x1922   : > { %2381 = vrot.lane.b32.xlu0 %v3965_v31, %s4106_s28 }
0x1993   : > { %v2380_v1 = vpop.permute.xlu1 %2379 }
0x1994   : > { %v2382_v2 = vpop.permute.xlu0 %2381  ;;  %v2385_v9 = vmul.f32 %v3959_v44, %v2380_v1 }
0x1995   : > { %v2386_v10 = vmul.f32 %v3961_v46, %v2382_v2  ;;  %v2496_v46 = vrot.slane %v2374_v60, 1 }
0x1996   : > { %v2389_v13 = vrot.slane %v2385_v9, 6  ;;  %v2395_v57 = vrot.slane %v2385_v9, 5 }
0x1997   : > { %v2390_v16 = vrot.slane %v2386_v10, 6  ;;  %v2396_v17 = vrot.slane %v2386_v10, 4 }
0x1998   : > { %v2393_v18 = vadd.f32 %v2389_v13, %v2247_v12 }
0x1999   : > { %v2394_v56 = vadd.f32 %v2390_v16, %v2248_v15  ;;  %v2397_v20 = vsel %vm4945_vm11, %v2396_v17, %v2395_v57 }
0x199a   : > { %2398 = vrot.lane.b32.xlu1 %v2397_v20, %s4109_s29 }
0x1a0c   : > { %v2399_v19 = vpop.permute.xlu1 %2398 }
0x1a0d   : > { %3630 = vmatmul.mubr.msk.f32.vlgmr.msra.gmra.mrb[12].mxu1 %vm4943_vm12, %v2399_v19 }
0x1a0e   : > { %3760 = vmatpush3.bf16.msra.mxu1 %v4441_v11  ;;  %3643 = vmatprep.mubr.msk.f32.mxu1 %vm4104_vm4, %v4105_v27 }
0x1a0f   : > { %3764 = vmatprep.subr.bf16.mxu1 %v4103_v24 }
0x1ae0   : > { %v2468_v4 = vpop.f32.mrb[12].mxu1 }
0x1ae1   : > { %v2473_v3 = vrot.slane %v2468_v4, 4  ;;  %v2474_v14 = vrot.slane %v2468_v4, 5  ;;  %v3631_v22 = vpop.f32.mrb[13].mxu1 }
0x1ae3   : > { %v2477_v25 = vadd.f32 %v2473_v3, %v4459_v21  ;;  %v2478_v28 = vadd.f32 %v2474_v14, %v4462_v26 }
0x1ae5   : > { %3966 = vtanh.f32 %v2477_v25  ;;  %v3409_v34 = vmul.f32 -1.442695, %v2477_v25  ;;  %v3410_v36 = vmul.f32 -1.442695, %v2478_v28 }
0x1ae6   : > { %3968 = vtanh.f32 %v2478_v28 }
0x1ae7   : > { %3970 = vpow2.f32 %v3409_v34 }
0x1ae8   : > { %3972 = vpow2.f32 %v3410_v36 }
0x1aef   : > { %v3967_v30 = vpop.eup %3966 }
0x1af0   : > { %v3969_v32 = vpop.eup %3968  ;;  %2503 = vrot.lane.b32.xlu0 %v3967_v30, %s4107_s25 }
0x1af1   : > { %2505 = vrot.lane.b32.xlu1 %v3969_v32, %s4107_s25  ;;  %v3971_v37 = vpop.eup %3970 }
0x1af2   : > { %v3973_v38 = vpop.eup %3972  ;;  %v2485_v23 = vadd.f32 1.0, %v3971_v37 }
0x1af3   : > { %v2486_v6 = vadd.f32 1.0, %v3973_v38 }
0x1af4   : > { %3974 = vrcp.f32 %v2485_v23 }
0x1af5   : > { %3976 = vrcp.f32 %v2486_v6 }
0x1afe   : > { %v3975_v7 = vpop.eup %3974 }
0x1aff   : > { %v3977_v41 = vpop.eup %3976  ;;  %v2499_v47 = vmul.f32 %v3975_v7, %v2495_v45 }
0x1b00   : > { %v2500_v48 = vmul.f32 %v3977_v41, %v2496_v46 }
0x1b62   : > { %v2504_v40 = vpop.permute.xlu0 %2503 }
0x1b63   : > { %v2506_v42 = vpop.permute.xlu1 %2505  ;;  %v2509_v43 = vmul.f32 %v3975_v7, %v2504_v40 }
0x1b64   : > { %v2510_v44 = vmul.f32 %v3977_v41, %v2506_v42 }
0x1b65   : > { %2513 = vrot.lane.b32.xlu0 %v2509_v43, %s4108_s26 }
0x1b66   : > { %2515 = vrot.lane.b32.xlu1 %v2510_v44, %s4108_s26 }
0x1bd7   : > { %v2514_v49 = vpop.permute.xlu0 %2513 }
0x1bd8   : > { %v2516_v50 = vpop.permute.xlu1 %2515  ;;  %v2519_v51 = vadd.f32 %v2514_v49, %v2499_v47 }
0x1bd9   : > { %v2520_v52 = vadd.f32 %v2516_v50, %v2500_v48 }
0x1bda   : > { %3978 = vtanh.f32 %v2519_v51  ;;  %v2641_v38 = vrot.slane %v2519_v51, 1 }
0x1bdb   : > { %3980 = vtanh.f32 %v2520_v52  ;;  %v2642_v23 = vrot.slane %v2520_v52, 1 }
0x1be4   : > { %v3979_v53 = vpop.eup %3978 }
0x1be5   : > { %v3981_v54 = vpop.eup %3980  ;;  %2525 = vrot.lane.b32.xlu0 %v3979_v53, %s4106_s28 }
0x1be6   : > { %2527 = vrot.lane.b32.xlu1 %v3981_v54, %s4106_s28 }
0x1c57   : > { %v2526_v55 = vpop.permute.xlu0 %2525 }
0x1c58   : > { %v2528_v62 = vpop.permute.xlu1 %2527  ;;  %v2531_v31 = vmul.f32 %v3975_v7, %v2526_v55 }
0x1c59   : > { %v2532_v29 = vmul.f32 %v3977_v41, %v2528_v62 }
0x1c5a   : > { %v2535_v58 = vrot.slane %v2531_v31, 5  ;;  %v2541_v60 = vrot.slane %v2531_v31, 4 }
0x1c5b   : > { %v2536_v63 = vrot.slane %v2532_v29, 5  ;;  %v2542_v1 = vrot.slane %v2532_v29, 3 }
0x1c5c   : > { %v2539_v2 = vadd.f32 %v2535_v58, %v2393_v18 }
0x1c5d   : > { %v2540_v9 = vadd.f32 %v2536_v63, %v2394_v56  ;;  %v2543_v10 = vsel %vm4945_vm11, %v2542_v1, %v2541_v60 }
0x1c5e   : > { %2544 = vrot.lane.b32.xlu0 %v2543_v10, %s4109_s29 }
0x1cd0   : > { %v2545_v12 = vpop.permute.xlu0 %2544 }
0x1cd1   : > { %3637 = vmatmul.mubr.msk.f32.vlgmr.msra.gmra.mrb[14].mxu0 %vm4943_vm12, %v2545_v12 }
0x1cd2   : > { %3763 = vmatpush3.bf16.msra.mxu0 %v4441_v11  ;;  %3650 = vmatprep.mubr.msk.f32.mxu0 %vm4104_vm4, %v4105_v27 }
0x1cd3   : > { %3767 = vmatprep.subr.bf16.mxu0 %v4103_v24 }
0x1da4   : > { %v2614_v13 = vpop.f32.mrb[14].mxu0 }
0x1da5   : > { %v2619_v57 = vrot.slane %v2614_v13, 5  ;;  %v2620_v15 = vrot.slane %v2614_v13, 6  ;;  %v3638_v16 = vpop.f32.mrb[15].mxu0 }
0x1da7   : > { %v2623_v17 = vadd.f32 %v2619_v57, %v4459_v21  ;;  %v2624_v18 = vadd.f32 %v2620_v15, %v4462_v26 }
0x1da9   : > { %3982 = vtanh.f32 %v2623_v17  ;;  %v3412_v19 = vmul.f32 -1.442695, %v2623_v17  ;;  %v3413_v4 = vmul.f32 -1.442695, %v2624_v18 }
0x1daa   : > { %3984 = vtanh.f32 %v2624_v18 }
0x1dab   : > { %3986 = vpow2.f32 %v3412_v19 }
0x1dac   : > { %3988 = vpow2.f32 %v3413_v4 }
0x1db3   : > { %v3983_v56 = vpop.eup %3982 }
0x1db4   : > { %v3985_v20 = vpop.eup %3984  ;;  %2649 = vrot.lane.b32.xlu1 %v3983_v56, %s4107_s25 }
0x1db5   : > { %2651 = vrot.lane.b32.xlu0 %v3985_v20, %s4107_s25  ;;  %v3987_v3 = vpop.eup %3986 }
0x1db6   : > { %v3989_v14 = vpop.eup %3988  ;;  %v2631_v22 = vadd.f32 1.0, %v3987_v3 }
0x1db7   : > { %v2632_v25 = vadd.f32 1.0, %v3989_v14 }
0x1db8   : > { %3990 = vrcp.f32 %v2631_v22 }
0x1db9   : > { %3992 = vrcp.f32 %v2632_v25 }
0x1dc2   : > { %v3991_v28 = vpop.eup %3990 }
0x1dc3   : > { %v3993_v32 = vpop.eup %3992  ;;  %v2645_v6 = vmul.f32 %v3991_v28, %v2641_v38 }
0x1dc4   : > { %v2646_v7 = vmul.f32 %v3993_v32, %v2642_v23 }
0x1e26   : > { %v2650_v30 = vpop.permute.xlu1 %2649 }
0x1e27   : > { %v2652_v34 = vpop.permute.xlu0 %2651  ;;  %v2655_v36 = vmul.f32 %v3991_v28, %v2650_v30 }
0x1e28   : > { %v2656_v37 = vmul.f32 %v3993_v32, %v2652_v34 }
0x1e29   : > { %2659 = vrot.lane.b32.xlu1 %v2655_v36, %s4108_s26 }
0x1e2a   : > { %2661 = vrot.lane.b32.xlu0 %v2656_v37, %s4108_s26 }
0x1e9b   : > { %v2660_v40 = vpop.permute.xlu1 %2659 }
0x1e9c   : > { %v2662_v41 = vpop.permute.xlu0 %2661  ;;  %v2665_v42 = vadd.f32 %v2660_v40, %v2645_v6 }
0x1e9d   : > { %v2666_v43 = vadd.f32 %v2662_v41, %v2646_v7 }
0x1e9e   : > { %3994 = vtanh.f32 %v2665_v42  ;;  %v2787_v3 = vrot.slane %v2665_v42, 1 }
0x1e9f   : > { %3996 = vtanh.f32 %v2666_v43  ;;  %v2788_v14 = vrot.slane %v2666_v43, 1 }
0x1ea8   : > { %v3995_v44 = vpop.eup %3994 }
0x1ea9   : > { %v3997_v45 = vpop.eup %3996  ;;  %2671 = vrot.lane.b32.xlu1 %v3995_v44, %s4106_s28 }
0x1eaa   : > { %2673 = vrot.lane.b32.xlu0 %v3997_v45, %s4106_s28 }
0x1f1b   : > { %v2672_v46 = vpop.permute.xlu1 %2671 }
0x1f1c   : > { %v2674_v47 = vpop.permute.xlu0 %2673  ;;  %v2677_v48 = vmul.f32 %v3991_v28, %v2672_v46 }
0x1f1d   : > { %v2678_v49 = vmul.f32 %v3993_v32, %v2674_v47 }
0x1f1e   : > { %v2681_v50 = vrot.slane %v2677_v48, 4  ;;  %v2687_v51 = vrot.slane %v2677_v48, 3 }
0x1f1f   : > { %v2682_v52 = vrot.slane %v2678_v49, 4  ;;  %v2688_v53 = vrot.slane %v2678_v49, 2 }
0x1f20   : > { %v2685_v54 = vadd.f32 %v2681_v50, %v2539_v2 }
0x1f21   : > { %v2686_v55 = vadd.f32 %v2682_v52, %v2540_v9  ;;  %v2689_v62 = vsel %vm4945_vm11, %v2688_v53, %v2687_v51 }
0x1f22   : > { %2690 = vrot.lane.b32.xlu1 %v2689_v62, %s4109_s29 }
0x1f94   : > { %v2691_v31 = vpop.permute.xlu1 %2690 }
0x1f95   : > { %3644 = vmatmul.mubr.msk.f32.vlgmr.msra.gmra.mrb[14].mxu1 %vm4943_vm12, %v2691_v31 }
0x1f96   : > { %3766 = vmatpush3.bf16.msra.mxu1 %v4441_v11  ;;  %3657 = vmatprep.mubr.msk.f32.mxu1 %vm4104_vm4, %v4105_v27 }
0x2068   : > { %v2760_v29 = vpop.f32.mrb[14].mxu1 }
0x2069   : > { %v2765_v58 = vrot.slane %v2760_v29, 6  ;;  %v2766_v60 = vrot.slane %v2760_v29, 7  ;;  %v3645_v63 = vpop.f32.mrb[15].mxu1 }
0x206b   : > { %v2769_v1 = vadd.f32 %v2765_v58, %v4459_v21  ;;  %v2770_v2 = vadd.f32 %v2766_v60, %v4462_v26 }
0x206d   : > { %3998 = vtanh.f32 %v2769_v1  ;;  %v3415_v11 = vmul.f32 -1.442695, %v2769_v1  ;;  %v3416_v12 = vmul.f32 -1.442695, %v2770_v2 }
0x206e   : > { %4000 = vtanh.f32 %v2770_v2 }
0x206f   : > { %4002 = vpow2.f32 %v3415_v11 }
0x2070   : > { %4004 = vpow2.f32 %v3416_v12  ;;  %v1905_v12 = vrot.slane %v4518_v39, 2 }
0x2077   : > { %v3999_v9 = vpop.eup %3998 }
0x2078   : > { %v4001_v10 = vpop.eup %4000  ;;  %2795 = vrot.lane.b32.xlu0 %v3999_v9, %s4107_s25 }
0x2079   : > { %2797 = vrot.lane.b32.xlu1 %v4001_v10, %s4107_s25  ;;  %v4003_v13 = vpop.eup %4002 }
0x207a   : > { %v4005_v57 = vpop.eup %4004  ;;  %v2777_v15 = vadd.f32 1.0, %v4003_v13 }
0x207b   : > { %v2778_v16 = vadd.f32 1.0, %v4005_v57 }
0x207c   : > { %4006 = vrcp.f32 %v2777_v15 }
0x207d   : > { %4008 = vrcp.f32 %v2778_v16 }
0x2086   : > { %v4007_v17 = vpop.eup %4006 }
0x2087   : > { %v4009_v56 = vpop.eup %4008  ;;  %v2791_v22 = vmul.f32 %v4007_v17, %v2787_v3 }
0x2088   : > { %v2792_v25 = vmul.f32 %v4009_v56, %v2788_v14 }
0x20ea   : > { %v2796_v18 = vpop.permute.xlu0 %2795 }
0x20eb   : > { %v2798_v20 = vpop.permute.xlu1 %2797  ;;  %v2801_v19 = vmul.f32 %v4007_v17, %v2796_v18  ;;  %v1909_v18 = vadd.f32 %v1905_v12, %v4324_v59 }
0x20ec   : > { %v2802_v4 = vmul.f32 %v4009_v56, %v2798_v20 }
0x20ed   : > { %2805 = vrot.lane.b32.xlu0 %v2801_v19, %s4108_s26 }
0x20ee   : > { %2807 = vrot.lane.b32.xlu1 %v2802_v4, %s4108_s26 }
0x215f   : > { %v2806_v28 = vpop.permute.xlu0 %2805 }
0x2160   : > { %v2808_v30 = vpop.permute.xlu1 %2807  ;;  %v2811_v32 = vadd.f32 %v2806_v28, %v2791_v22 }
0x2161   : > { %v2812_v34 = vadd.f32 %v2808_v30, %v2792_v25 }
0x2162   : > { %4010 = vtanh.f32 %v2811_v32  ;;  %v2932_v57 = vrot.slane %v2811_v32, 1 }
0x2163   : > { %4012 = vtanh.f32 %v2812_v34  ;;  %v2933_v11 = vrot.slane %v2812_v34, 1 }
0x216c   : > { %v4011_v36 = vpop.eup %4010 }
0x216d   : > { %v4013_v37 = vpop.eup %4012  ;;  %2817 = vrot.lane.b32.xlu0 %v4011_v36, %s4106_s28 }
0x216e   : > { %2819 = vrot.lane.b32.xlu1 %v4013_v37, %s4106_s28 }
0x21df   : > { %v2818_v38 = vpop.permute.xlu0 %2817 }
0x21e0   : > { %v2820_v23 = vpop.permute.xlu1 %2819  ;;  %v2823_v6 = vmul.f32 %v4007_v17, %v2818_v38 }
0x21e1   : > { %v2824_v7 = vmul.f32 %v4009_v56, %v2820_v23  ;;  %v3399_v23 = vmul.f32 -1.442695, %v1909_v18 }
0x21e2   : > { %v2827_v40 = vrot.slane %v2823_v6, 3  ;;  %v2833_v41 = vrot.slane %v2823_v6, 2  ;;  %v1904_v6 = vrot.slane %v4518_v39, 1 }
0x21e3   : > { %v2828_v42 = vrot.slane %v2824_v7, 3  ;;  %v2834_v43 = vrot.slane %v2824_v7, 1 }
0x21e4   : > { %v4595_v44 = vadd.f32 %v2827_v40, %v2685_v54 }
0x21e5   : > { %v2832_v45 = vadd.f32 %v2828_v42, %v2686_v55  ;;  %v2835_v46 = vsel %vm4945_vm11, %v2834_v43, %v2833_v41 }
0x21e6   : > { %2836 = vrot.lane.b32.xlu0 %v2835_v46, %s4109_s29 }
0x2258   : > { %v2837_v47 = vpop.permute.xlu0 %2836 }
0x2259   : > { %3651 = vmatmul.mubr.msk.f32.vlgmr.msra.gmra.mrb[16].mxu0 %vm4943_vm12, %v2837_v47 }
0x225a   : > { %3684 = vmatprep.mubr.msk.f32.mxu0 %vm4104_vm4, %v4105_v27 }
0x232c   : > { %v2906_v48 = vpop.f32.mrb[16].mxu0 }
0x232d   : > { %v2911_v49 = vrot.slane %v2906_v48, 7  ;;  %v2915_v50 = vadd.f32 %v2906_v48, %v4462_v26  ;;  %v3652_v51 = vpop.f32.mrb[17].mxu0 }
0x232f   : > { %v2914_v52 = vadd.f32 %v2911_v49, %v4459_v21  ;;  %4014 = vtanh.f32 %v2915_v50  ;;  %v3419_v55 = vmul.f32 -1.442695, %v2915_v50 }
0x2331   : > { %4016 = vtanh.f32 %v2914_v52  ;;  %v3418_v62 = vmul.f32 -1.442695, %v2914_v52 }
0x2332   : > { %4018 = vpow2.f32 %v3419_v55 }
0x2333   : > { %4020 = vpow2.f32 %v3418_v62 }
0x2339   : > { %v4015_v53 = vpop.eup %4014 }
0x233a   : > { %2942 = vrot.lane.b32.xlu0 %v4015_v53, %s4107_s25 }
0x233b   : > { %v4017_v54 = vpop.eup %4016 }
0x233c   : > { %2940 = vrot.lane.b32.xlu1 %v4017_v54, %s4107_s25  ;;  %v4019_v27 = vpop.eup %4018 }
0x233d   : > { %v4021_v31 = vpop.eup %4020  ;;  %v2923_v29 = vadd.f32 1.0, %v4019_v27 }
0x233e   : > { %v2922_v58 = vadd.f32 1.0, %v4021_v31 }
0x233f   : > { %4022 = vrcp.f32 %v2923_v29 }
0x2340   : > { %4024 = vrcp.f32 %v2922_v58 }
0x2349   : > { %v4023_v60 = vpop.eup %4022 }
0x234a   : > { %v4025_v2 = vpop.eup %4024  ;;  %v2937_v13 = vmul.f32 %v4023_v60, %v2933_v11 }
0x234b   : > { %v2936_v17 = vmul.f32 %v4025_v2, %v2932_v57 }
0x23ac   : > { %v2943_v63 = vpop.permute.xlu0 %2942 }
0x23ad   : > { %v2947_v1 = vmul.f32 %v4023_v60, %v2943_v63 }
0x23ae   : > { %v2941_v9 = vpop.permute.xlu1 %2940 }
0x23af   : > { %2952 = vrot.lane.b32.xlu0 %v2947_v1, %s4108_s26  ;;  %v2946_v10 = vmul.f32 %v4025_v2, %v2941_v9 }
0x23b1   : > { %2950 = vrot.lane.b32.xlu1 %v2946_v10, %s4108_s26 }
0x2421   : > { %v2953_v15 = vpop.permute.xlu0 %2952 }
0x2422   : > { %v4609_v16 = vadd.f32 %v2953_v15, %v2937_v13 }
0x2423   : > { %v2951_v56 = vpop.permute.xlu1 %2950 }
0x2424   : > { %4026 = vtanh.f32 %v4609_v16  ;;  %v4613_v20 = vadd.f32 %v2951_v56, %v2936_v17  ;;  %v4659_v56 = vstv %s453_s30 }
0x2426   : > { %4028 = vtanh.f32 %v4613_v20 }
0x2427   : > { %4030 = vtanh.f32 %v1909_v18  ;;  %v4657_v18 = vstv %s4203_s22  ;;  %s543_s22 = sadd.s32 24, %s4201_s21 }
0x2428   : > { %4032 = vpow2.f32 %v3399_v23  ;;  %v3076_v23 = vrot.slane %v4613_v20, 1  ;;  %v4960_v20 = vmov 0 }
0x242e   : > { %v4027_v19 = vpop.eup %4026 }
0x242f   : > { %2964 = vrot.lane.b32.xlu0 %v4027_v19, %s4106_s28  ;;  %v4661_v19 = vstv %s467_s14 }
0x2430   : > { %v4029_v4 = vpop.eup %4028 }
0x2431   : > { %v4031_v3 = vpop.eup %4030  ;;  %2962 = vrot.lane.b32.xlu1 %v4029_v4, %s4106_s28  ;;  %v4663_v4 = vstv %s473_s15 }
0x2432   : > { %v4033_v40 = vpop.eup %4032 }
0x2433   : > { %1936 = vrot.lane.b32.xlu0 %v4031_v3, %s4107_s25  ;;  %v1917_v46 = vadd.f32 1.0, %v4033_v40 }
0x24a1   : > { %v2965_v14 = vpop.permute.xlu0 %2964 }
0x24a2   : > { %v2969_v22 = vmul.f32 %v4023_v60, %v2965_v14  ;;  %v4671_v14 = vstv %s4208_s24 }
0x24a3   : > { %v2963_v25 = vpop.permute.xlu1 %2962 }
0x24a4   : > { %v2973_v59 = vrot.slane %v2969_v22, 2  ;;  %v2968_v28 = vmul.f32 %v4025_v2, %v2963_v25  ;;  %v1927_v2 = vrot.slane %v4478_v8, 7  ;;  %v436_v8 = vlaneseq }
0x24a5   : > { %v1937_v39 = vpop.permute.xlu0 %1936 }
0x24a6   : > { %v4619_v30 = vadd.f32 %v2973_v59, %v2832_v45  ;;  %v2972_v32 = vrot.slane %v2968_v28, 2  ;;  %v2978_v34 = vrot.slane %v2968_v28, 1  ;;  %v437_v17 = vshrl.u32 %v436_v8, 7 }
0x24a8   : > { %v4622_v36 = vadd.f32 %v2972_v32, %v4595_v44  ;;  %v2979_v37 = vsel %vm4945_vm11, %v2969_v22, %v2978_v34  ;;  %v1908_v44 = vadd.f32 %v1904_v6, %v4326_v61  ;;  %v438_v3 = vadd.s32 8, %v437_v17 }
0x24a9   : > { %2980 = vrot.lane.b32.xlu1 %v2979_v37, %s4109_s29  ;;  %vm449_vm13 = vcmp.ge.s32.totalorder %v437_v17, %v4657_v18  ;;  %vm455_vm14 = vcmp.lt.s32.totalorder %v437_v17, %v4659_v56  ;;  %vm469_vm15 = vcmp.ge.s32.totalorder %v437_v17, %v4661_v19  ;;  %vm475_vm0 = vcmp.lt.s32.totalorder %v437_v17, %v4663_v4 }
0x24aa   : > { %v3398_v51 = vmul.f32 -1.442695, %v1908_v44  ;;  %vm450_vm1 = vcmp.ge.s32.totalorder %v438_v3, %v4657_v18  ;;  %vm456_vm2 = vcmp.lt.s32.totalorder %v438_v3, %v4659_v56  ;;  %vm4677_vm3 = vmand %vm449_vm13, %vm455_vm14  ;;  %vm470_vm4 = vcmp.ge.s32.totalorder %v438_v3, %v4661_v19 }
0x24ab   : > { %vm476_vm5 = vcmp.lt.s32.totalorder %v438_v3, %v4663_v4  ;;  %vm4685_vm6 = vmand %vm469_vm15, %vm475_vm0  ;;  %vm519_vm7 = vcmp.ge.s32.totalorder %v437_v17, %v4671_v14  ;;  %v4695_v32 = vstv %s537_s19  ;;  %v4697_v34 = vstv %s543_s22  ;;  %s422_s22 = scalar_lea.vmem %s4939_s12, %s5000_s17 }
0x24ac   : > { %vm4691_vm9 = vmand %vm450_vm1, %vm456_vm2  ;;  %vm520_vm15 = vcmp.ge.s32.totalorder %v438_v3, %v4671_v14  ;;  %vm539_vm2 = vcmp.ge.s32.totalorder %v437_v17, %v4695_v32 }
0x24ad   : > { %vm4699_vm13 = vmand %vm470_vm4, %vm476_vm5 }
0x24ae   : > { %vm483_vm14 = vmor %vm4677_vm3, %vm4685_vm6  ;;  %vm540_vm6 = vcmp.ge.s32.totalorder %v438_v3, %v4695_v32 }
0x24af   : > { %vm484_vm4 = vmor %vm4691_vm9, %vm4699_vm13 }
0x251b   : > { %v2981_v38 = vpop.permute.xlu1 %2980 }
0x251c   : > { %3658 = vmatmul.mubr.msk.f32.vlgmr.msra.gmra.mrb[16].mxu1 %vm4943_vm12, %v2981_v38  ;;  %vm545_vm12 = vcmp.lt.s32.totalorder %v437_v17, %v4697_v34  ;;  %v439_v38 = vadd.s32 16, %v437_v17 }
0x251e   : > { %vm451_vm13 = vcmp.ge.s32.totalorder %v439_v38, %v4657_v18 }
0x25ef   : > { %v3050_v7 = vpop.f32.mrb[16].mxu1 }
0x25f0   : > { %v3055_v41 = vrot.slane %v3050_v7, 1  ;;  %v3058_v42 = vadd.f32 %v3050_v7, %v4459_v21  ;;  %v3659_v43 = vpop.f32.mrb[17].mxu1  ;;  %v440_v7 = vadd.s32 24, %v437_v17 }
0x25f2   : > { %v3059_v45 = vadd.f32 %v3055_v41, %v4462_v26  ;;  %4034 = vtanh.f32 %v3058_v42  ;;  %v3421_v21 = vmul.f32 -1.442695, %v3058_v42  ;;  %v3077_v42 = vrot.slane %v4609_v16, 1  ;;  %v430_v41 = vld [vmem:[%s4275_s20 + $0x10] sm:$0xff] }
0x25f4   : > { %4036 = vtanh.f32 %v3059_v45  ;;  %v3422_v26 = vmul.f32 -1.442695, %v3059_v45 }
0x25f5   : > { %4038 = vtanh.f32 %v1908_v44  ;;  %v1926_v44 = vrot.slane %v4476_v5, 7 }
0x25f6   : > { %4040 = vrcp.f32 %v1917_v46  ;;  %v432_v46 = vld [vmem:[%s4214_s27] sm:$0xff] }
0x25f7   : > { %4042 = vpow2.f32 %v3421_v21  ;;  %vm584_vm8 = vcmp.eq.f32.partialorder %v432_v46, 0.0  ;;  %v3151_v21 = vld [vmem:[%s4937_s10] sm:$0xff] }
0x25f8   : > { %4044 = vpow2.f32 %v3422_v26 }
0x25f9   : > { %4046 = vpow2.f32 %v3398_v51  ;;  %v3153_v51 = vld [vmem:[%s4937_s10 + $0x10] sm:$0xff] }
0x25fc   : > { %v4035_v47 = vpop.eup %4034 }
0x25fd   : > { %3084 = vrot.lane.b32.xlu1 %v4035_v47, %s4107_s25  ;;  %v4962_v47 = vmov 0 }
0x25fe   : > { %v4037_v48 = vpop.eup %4036 }
0x25ff   : > { %v4039_v49 = vpop.eup %4038  ;;  %3086 = vrot.lane.b32.xlu0 %v4037_v48, %s4107_s25 }
0x2600   : > { %v4633_v50 = vpop.eup %4040 }
0x2601   : > { %1934 = vrot.lane.b32.xlu1 %v4039_v49, %s4107_s25  ;;  %v1941_v61 = vmul.f32 %v4633_v50, %v1937_v39  ;;  %v4043_v52 = vpop.eup %4042  ;;  %v1931_v12 = vmul.f32 %v4633_v50, %v1927_v2  ;;  %v4964_v39 = vmov 0 }
0x2602   : > { %v4045_v53 = vpop.eup %4044  ;;  %v3066_v54 = vadd.f32 1.0, %v4043_v52 }
0x2603   : > { %1946 = vrot.lane.b32.xlu0 %v1941_v61, %s4108_s26  ;;  %v4047_v55 = vpop.eup %4046  ;;  %v3067_v62 = vadd.f32 1.0, %v4045_v53  ;;  %v4973_v53 = vmov 0 }
0x2604   : > { %v1916_v27 = vadd.f32 1.0, %v4047_v55  ;;  %4048 = vrcp.f32 %v3066_v54  ;;  %v433_v54 = vld [vmem:[%s4214_s27 + $0x8] sm:$0xff] }
0x2605   : > { %4050 = vrcp.f32 %v3067_v62 }
0x2606   : > { %4052 = vrcp.f32 %v1916_v27 }
0x260e   : > { %v4638_v31 = vpop.eup %4048 }
0x260f   : > { %v4641_v60 = vpop.eup %4050  ;;  %v3080_v40 = vmul.f32 %v4638_v31, %v3076_v23  ;;  %v428_v23 = vld [vmem:[%s4275_s20] sm:$0xff] }
0x2610   : > { %v4644_v1 = vpop.eup %4052  ;;  %v3081_v16 = vmul.f32 %v4641_v60, %v3077_v42 }
0x2611   : > { %v1930_v48 = vmul.f32 %v4644_v1, %v1926_v44  ;;  %v431_v44 = vld [vmem:[%s4275_s20 + $0x18] sm:$0xff] }
0x266f   : > { %v3085_v29 = vpop.permute.xlu1 %3084 }
0x2670   : > { %v3090_v58 = vmul.f32 %v4638_v31, %v3085_v29  ;;  %v434_v29 = vld [vmem:[%s4214_s27 + $0x10] sm:$0xff] }
0x2671   : > { %v3087_v63 = vpop.permute.xlu0 %3086 }
0x2672   : > { %3094 = vrot.lane.b32.xlu1 %v3090_v58, %s4108_s26  ;;  %v3091_v9 = vmul.f32 %v4641_v60, %v3087_v63  ;;  %v435_v63 = vld [vmem:[%s4214_s27 + $0x18] sm:$0xff]  ;;  %s427_s27 = scalar_lea.vmem %s4940_s13, %s4206_s23 }
0x2673   : > { %v1935_v10 = vpop.permute.xlu1 %1934 }
0x2674   : > { %v1940_v11 = vmul.f32 %v4644_v1, %v1935_v10  ;;  %3096 = vrot.lane.b32.xlu0 %v3091_v9, %s4108_s26 }
0x2675   : > { %v1947_v13 = vpop.permute.xlu0 %1946 }
0x2676   : > { %1944 = vrot.lane.b32.xlu1 %v1940_v11, %s4108_s26  ;;  %v1951_v57 = vadd.f32 %v1947_v13, %v1931_v12  ;;  %s523_s26 = sadd.s32 8, %s4208_s24 }
0x2677   : > { %v4673_v22 = vstv %s523_s26 }
0x2678   : > { %4054 = vtanh.f32 %v1951_v57  ;;  %vm525_vm10 = vcmp.lt.s32.totalorder %v437_v17, %v4673_v22  ;;  %vm526_vm0 = vcmp.lt.s32.totalorder %v438_v3, %v4673_v22 }
0x2679   : > { %vm529_vm1 = vmand %vm519_vm7, %vm525_vm10  ;;  %vm546_vm7 = vcmp.lt.s32.totalorder %v438_v3, %v4697_v34 }
0x267a   : > { %vm530_vm5 = vmand %vm520_vm15, %vm526_vm0  ;;  %vm477_vm0 = vcmp.lt.s32.totalorder %v439_v38, %v4663_v4 }
0x267b   : > { %vm4716_vm3 = vmor %vm483_vm14, %vm529_vm1  ;;  %vm457_vm14 = vcmp.lt.s32.totalorder %v439_v38, %v4659_v56  ;;  %vm527_vm1 = vcmp.lt.s32.totalorder %v439_v38, %v4673_v22 }
0x267c   : > { %vm4723_vm10 = vmand %vm539_vm2, %vm545_vm12  ;;  %vm471_vm12 = vcmp.ge.s32.totalorder %v439_v38, %v4661_v19  ;;  %vm452_vm2 = vcmp.ge.s32.totalorder %v440_v7, %v4657_v18 }
0x267d   : > { %vm4728_vm9 = vmor %vm484_vm4, %vm530_vm5  ;;  %vm458_vm4 = vcmp.lt.s32.totalorder %v440_v7, %v4659_v56 }
0x267e   : > { %v4961_v20 = vsel %vm4728_vm9, 4294967295, %v4960_v20  ;;  %vm4736_vm15 = vmand %vm540_vm6, %vm546_vm7  ;;  %vm472_vm6 = vcmp.ge.s32.totalorder %v440_v7, %v4661_v19  ;;  %vm478_vm7 = vcmp.lt.s32.totalorder %v440_v7, %v4663_v4  ;;  %vm541_vm9 = vcmp.ge.s32.totalorder %v439_v38, %v4695_v32 }
0x267f   : > { %v4963_v47 = vsel %vm4736_vm15, 4294967295, %v4962_v47  ;;  %vm4752_vm5 = vmand %vm451_vm13, %vm457_vm14  ;;  %vm521_vm14 = vcmp.ge.s32.totalorder %v439_v38, %v4671_v14 }
0x2680   : > { %v4965_v39 = vsel %vm4752_vm5, 4294967295, %v4964_v39  ;;  %vm4766_vm13 = vmand %vm471_vm12, %vm477_vm0 }
0x2681   : > { %vm4776_vm5 = vmand %vm452_vm2, %vm458_vm4  ;;  %vm4975_vm2 = vnez %v4965_v39 }
0x2682   : > { %v4055_v15 = vpop.eup %4054  ;;  %vm4780_vm11 = vmand %vm472_vm6, %vm478_vm7  ;;  %vm522_vm6 = vcmp.ge.s32.totalorder %v440_v7, %v4671_v14  ;;  %vm528_vm7 = vcmp.lt.s32.totalorder %v440_v7, %v4673_v22 }
0x2683   : > { %1958 = vrot.lane.b32.xlu0 %v4055_v15, %s4106_s28  ;;  %vm4972_vm12 = vmor %vm4716_vm3, %vm4723_vm10 }
0x2684   : > { %vm4789_vm0 = vmand %vm4972_vm12, %vm584_vm8  ;;  %vm547_vm8 = vcmp.lt.s32.totalorder %v439_v38, %v4697_v34 }
0x2685   : > { %v4974_v53 = vsel %vm4789_vm0, 4294967295, %v4973_v53  ;;  %vm485_vm4 = vmor %vm4975_vm2, %vm4766_vm13  ;;  %vm542_vm13 = vcmp.ge.s32.totalorder %v440_v7, %v4695_v32  ;;  %vm548_vm2 = vcmp.lt.s32.totalorder %v440_v7, %v4697_v34 }
0x2686   : > { %vm531_vm15 = vmand %vm521_vm14, %vm527_vm1  ;;  %vm585_vm1 = vcmp.eq.f32.partialorder %v433_v54, 0.0 }
0x2687   : > { %vm486_vm3 = vmor %vm4776_vm5, %vm4780_vm11  ;;  %vm4983_vm5 = vnez %v4963_v47 }
0x2688   : > { %vm532_vm10 = vmand %vm522_vm6, %vm528_vm7  ;;  %vm586_vm7 = vcmp.eq.f32.partialorder %v434_v29, 0.0  ;;  %v3156_v29 = vld [vmem:[%s4937_s10 + $0x28] sm:$0xff] }
0x2689   : > { %vm4806_vm12 = vmor %vm485_vm4, %vm531_vm15  ;;  %vm4982_vm15 = vnez %v4961_v20 }
0x268a   : > { %vm4812_vm14 = vmand %vm541_vm9, %vm547_vm8 }
0x268b   : > { %vm4817_vm0 = vmor %vm486_vm3, %vm532_vm10  ;;  %vm587_vm3 = vcmp.eq.f32.partialorder %v435_v63, 0.0  ;;  %vm4985_vm10 = vnez %v4974_v53  ;;  %v3154_v53 = vld [vmem:[%s4937_s10 + $0x18] sm:$0xff] }
0x268c   : > { %vm552_vm11 = vmand %vm542_vm13, %vm548_vm2  ;;  %v592_v10 = vsel %vm4985_vm10, 1, %v4102_v0  ;;  %v3771_v55 = vpack.c.bf16 %v3154_v53, %v3153_v51 }
0x268d   : > { %vm4984_vm4 = vmor %vm4982_vm15, %vm4983_vm5 }
0x268e   : > { %vm589_vm6 = vmand %vm4984_vm4, %vm585_vm1 }
0x268f   : > { %vm555_vm9 = vmor %vm4806_vm12, %vm4812_vm14  ;;  %v593_v11 = vsel %vm589_vm6, 1, %v4102_v0 }
0x2690   : > { %vm556_vm8 = vmor %vm4817_vm0, %vm552_vm11  ;;  %vm4986_vm0 = vcmask 1041409   ;;  %vm4988_vm11 = vcmask 261120  }
0x2691   : > { %vm590_vm13 = vmand %vm555_vm9, %vm586_vm7 }
0x2692   : > { %vm591_vm2 = vmand %vm556_vm8, %vm587_vm3  ;;  %v594_v12 = vsel %vm590_vm13, 1, %v4102_v0  ;;  %vm4996_vm13 = vcmask 130048  }
0x2693   : > { %v595_v13 = vsel %vm591_vm2, 1, %v4102_v0  ;;  %vm4987_vm12 = vmmov %vm4986_vm0  ;;  %vm3164_vm2 = vcmask 785408  }
0x2694   : > { %vm4989_vm15 = vmmov %vm4988_vm11 }
0x2695   : > { %vm4990_vm5 = vmmov %vm4988_vm11 }
0x2696   : > { %vm4991_vm4 = vmmov %vm4990_vm5 }
0x2697   : > { %vm4992_vm7 = vmmov %vm4991_vm4 }
0x2698   : > { %vm4993_vm8 = vmmov %vm4991_vm4 }
0x2699   : > { %vm4994_vm3 = vmmov %vm4991_vm4 }
0x269a   : > { %vm4995_vm10 = vmmov %vm4994_vm3 }
0x26e4   : > { %v3095_v43 = vpop.permute.xlu1 %3094 }
0x26e5   : > { %v3100_v45 = vadd.f32 %v3095_v43, %v3080_v40 }
0x26e6   : > { %v3097_v5 = vpop.permute.xlu0 %3096 }
0x26e7   : > { %4056 = vtanh.f32 %v3100_v45  ;;  %v3101_v49 = vadd.f32 %v3097_v5, %v3081_v16 }
0x26e8   : > { %v1945_v61 = vpop.permute.xlu1 %1944 }
0x26e9   : > { %v1950_v26 = vadd.f32 %v1945_v61, %v1930_v48  ;;  %4058 = vtanh.f32 %v3101_v49 }
0x26eb   : > { %4060 = vtanh.f32 %v1950_v26  ;;  %v3152_v26 = vld [vmem:[%s4937_s10 + $0x8] sm:$0xff] }
0x26ec   : > { %v3768_v52 = vpack.c.bf16 %v3152_v26, %v3151_v21 }
0x26ee   : > { %3769 = vmatpush3.bf16.msra.mxu0 %v3768_v52 }
0x26ef   : > { %3770 = vmatprep.subr.bf16.mxu0 %v4103_v24 }
0x26f1   : > { %v4057_v27 = vpop.eup %4056 }
0x26f2   : > { %3106 = vrot.lane.b32.xlu1 %v4057_v27, %s4106_s28  ;;  %v3155_v27 = vld [vmem:[%s4937_s10 + $0x20] sm:$0xff]  ;;  %3772 = vmatpush3.bf16.msra.mxu0 %v3771_v55 }
0x26f3   : > { %v4059_v2 = vpop.eup %4058  ;;  %v3774_v63 = vpack.c.bf16 %v3156_v29, %v3155_v27  ;;  %3773 = vmatprep.subr.bf16.mxu0 %v4103_v24 }
0x26f4   : > { %3108 = vrot.lane.b32.xlu0 %v4059_v2, %s4106_s28 }
0x26f5   : > { %v4061_v9 = vpop.eup %4060  ;;  %v1959_v57 = vpop.permute.xlu0 %1958 }
0x26f6   : > { %1956 = vrot.lane.b32.xlu1 %v4061_v9, %s4106_s28  ;;  %v1963_v15 = vmul.f32 %v4633_v50, %v1959_v57  ;;  %v3157_v9 = vld [vmem:[%s4937_s10 + $0x30] sm:$0xff]  ;;  %3775 = vmatpush3.bf16.msra.mxu0 %v3774_v63  ;;  %v3159_v57 = vld [vmem:[%s4937_s10 + $0x40] sm:$0xff] }
0x26f7   : > { %3776 = vmatprep.subr.bf16.mxu0 %v4103_v24 }
0x26f8   : > { %597 = vperm.xlu0 %3804, %v592_v10   ;;  %v1967_v8 = vrot.slane %v1963_v15, 7  ;;  %v3158_v10 = vld [vmem:[%s4937_s10 + $0x38] sm:$0xff]  ;;  %v3160_v15 = vld [vmem:[%s4937_s10 + $0x48] sm:$0xff] }
0x26fa   : > { %600 = vperm.xlu1 %3805, %v593_v11   ;;  %v1971_v56 = vadd.f32 %v1967_v8, %v4498_v35  ;;  %v3780_v8 = vpack.c.bf16 %v3160_v15, %v3159_v57 }
0x26fc   : > { %603 = vperm.xlu0 %3804, %v594_v12   ;;  %v1973_v25 = vmul.f32 0.125, %v1971_v56  ;;  %v3777_v12 = vpack.c.bf16 %v3158_v10, %v3157_v9 }
0x26fe   : > { %606 = vperm.xlu1 %3805, %v595_v13   ;;  %v3126_v34 = vrot.slane %v1973_v25, 7  ;;  %3778 = vmatpush3.bf16.msra.mxu0 %v3777_v12 }
0x26ff   : > { %3779 = vmatprep.subr.bf16.mxu0 %v4103_v24 }
0x2702   : > { %3781 = vmatpush3.bf16.msra.mxu0 %v3780_v8 }
0x2703   : > { %3782 = vmatprep.subr.bf16.mxu0 %v4103_v24  ;;  %v3163_v24 = vld [vmem:[%s4938_s11] sm:$0x1] }
0x2764   : > { %v3107_v17 = vpop.permute.xlu1 %3106 }
0x2765   : > { %v3112_v18 = vmul.f32 %v4638_v31, %v3107_v17  ;;  %v3161_v17 = vld [vmem:[%s4937_s10 + $0x50] sm:$0xff] }
0x2766   : > { %v3109_v4 = vpop.permute.xlu0 %3108 }
0x2767   : > { %v3116_v19 = vrot.slane %v3112_v18, 1  ;;  %v3113_v3 = vmul.f32 %v4641_v60, %v3109_v4  ;;  %v3162_v18 = vld [vmem:[%s4937_s10 + $0x58] sm:$0xff] }
0x2768   : > { %v1957_v14 = vpop.permute.xlu1 %1956  ;;  %v3783_v56 = vpack.c.bf16 %v3162_v18, %v3161_v17 }
0x2769   : > { %v3120_v22 = vadd.f32 %v3116_v19, %v4622_v36  ;;  %v1962_v0 = vmul.f32 %v4644_v1, %v1957_v14  ;;  %v3117_v59 = vrot.slane %v3113_v3, 1 }
0x276a   : > { %3784 = vmatpush3.bf16.msra.mxu0 %v3783_v56 }
0x276b   : > { %v1966_v50 = vrot.slane %v1962_v0, 7  ;;  %v3122_v28 = vmul.f32 0.125, %v3120_v22  ;;  %v3121_v31 = vadd.f32 %v3117_v59, %v4619_v30  ;;  %v429_v30 = vld [vmem:[%s4275_s20 + $0x8] sm:$0xff] }
0x276d   : > { %v1970_v35 = vadd.f32 %v1966_v50, %v4493_v33  ;;  %v3123_v32 = vmul.f32 0.125, %v3121_v31  ;;  %v3133_v60 = vrot.slane %v3122_v28, 7 }
0x276f   : > { %v1972_v37 = vmul.f32 0.125, %v1970_v35  ;;  %v3134_v38 = vrot.slane %v3123_v32, 6 }
0x2771   : > { %v3127_v36 = vsel %vm4986_vm0, %v3126_v34, %v1972_v37  ;;  %v3135_v1 = vsel %vm4987_vm12, %v3134_v38, %v3133_v60  ;;  %vm4997_vm0 = vmmov %vm4994_vm3  ;;  %vm4998_vm12 = vcmask 523264  }
0x2772   : > { %3128 = vrot.lane.b32.xlu0 %v3127_v36, %s4109_s29  ;;  %3136 = vrot.lane.b32.xlu1 %v3135_v1, %s4107_s25 }
0x2777   : > { %v598_v33 = vpop.permute.xlu0 %597 }
0x2778   : > { %vm608_vm1 = vcmp.eq.s32.totalorder %v598_v33, 1 }
0x2779   : > { %v601_v6 = vpop.permute.xlu1 %600  ;;  %v612_v7 = vsel %vm608_vm1, 1e-09, %v428_v23  ;;  %vm3238_vm1 = vcmask 8192  }
0x277a   : > { %vm609_vm14 = vcmp.eq.s32.totalorder %v601_v6, 1  ;;  %616 = vst.msk [vmem:[%s427_s27] sm:$0xff] %vm4988_vm11, %v612_v7  ;;  %v620_v42 = vsel %vm4989_vm15, %v612_v7, 0.0 }
0x277b   : > { %v613_v40 = vsel %vm609_vm14, 1e-09, %v429_v30  ;;  %v604_v20 = vpop.permute.xlu0 %603 }
0x277c   : > { %617 = vst.msk [vmem:[%s427_s27 + $0x8] sm:$0xff] %vm4990_vm5, %v613_v40  ;;  %v621_v43 = vsel %vm4991_vm4, %v613_v40, 0.0  ;;  %vm610_vm6 = vcmp.eq.s32.totalorder %v604_v20, 1 }
0x277d   : > { %v622_v45 = vadd.f32 %v621_v43, %v620_v42  ;;  %v607_v46 = vpop.permute.xlu1 %606  ;;  %v614_v47 = vsel %vm610_vm6, 1e-09, %v430_v41 }
0x277e   : > { %vm611_vm9 = vcmp.eq.s32.totalorder %v607_v46, 1  ;;  %618 = vst.msk [vmem:[%s427_s27 + $0x10] sm:$0xff] %vm4992_vm7, %v614_v47  ;;  %v623_v16 = vsel %vm4993_vm8, %v614_v47, 0.0 }
0x277f   : > { %v615_v5 = vsel %vm611_vm9, 1e-09, %v431_v44  ;;  %v624_v48 = vadd.f32 %v623_v16, %v622_v45 }
0x2780   : > { %619 = vst.msk [vmem:[%s427_s27 + $0x18] sm:$0xff] %vm4994_vm3, %v615_v5  ;;  %v625_v39 = vsel %vm4995_vm10, %v615_v5, 0.0 }
0x2781   : > { %v626_v49 = vadd.f32 %v625_v39, %v624_v48 }
0x2783   : > { %v627_v61 = vrot.slane %v626_v49, 4 }
0x2785   : > { %v628_v54 = vadd.f32 %v627_v61, %v626_v49 }
0x2787   : > { %v629_v62 = vrot.slane %v628_v54, 2 }
0x2789   : > { %v630_v58 = vadd.f32 %v629_v62, %v628_v54 }
0x278b   : > { %v631_v2 = vrot.slane %v630_v58, 1 }
0x278d   : > { %v632_v11 = vadd.f32 %v631_v2, %v630_v58 }
0x278f   : > { %v634_v13 = vmul.f32 0.03125, %v632_v11 }
0x2791   : > { %3146 = vrot.lane.b32.xlu1 %v634_v13, %s4110_s16 }
0x27e4   : > { %v3129_v19 = vpop.permute.xlu0 %3128  ;;  %v3137_v4 = vpop.permute.xlu1 %3136 }
0x27e5   : > { %v3139_v3 = vsel %vm4996_vm13, %v3129_v19, %v3137_v4 }
0x27e6   : > { %v3141_v14 = vrot.slane %v3139_v3, 1 }
0x27e8   : > { %3142 = vrot.lane.b32.xlu0 %v3141_v14, %s4106_s28 }
0x2803   : > { %v3147_v0 = vpop.permute.xlu1 %3146 }
0x285a   : > { %v3143_v22 = vpop.permute.xlu0 %3142 }
0x285b   : > { %v3149_v59 = vsel %vm4997_vm0, %v3139_v3, %v3143_v22 }
0x285c   : > { %v3150_v25 = vsel %vm4998_vm12, %v3149_v59, %v3147_v0 }
0x285d   : > { %3685 = vmatmul.mubr.msk.f32.vlgmr.msra.gmra.mrb[18].mxu0 %vm3164_vm2, %v3150_v25 }
0x2930   : > { %v3234_v50 = vpop.f32.mrb[18].mxu0 }
0x2931   : > { %v3235_v28 = vadd.f32 %v3234_v50, %v3163_v24  ;;  %v3686_v31 = vpop.f32.mrb[19].mxu0 }
0x2933   : > { %v3239_v35 = vsel %vm3238_vm1, %v3235_v28, -inf }
0x2934   : > { %3240 = vmax.xlane.f32.xlu0 %v3239_v35 }
0x29c1   : > { %v3241_v32 = vpop.xlane.xlu0 %3240 }
0x29c2   : > { %v3242_v34 = vsub.f32 %v3235_v28, %v3241_v32 }
0x29c4   : > { %v3243_v37 = vmul.f32 1.442695, %v3242_v34 }
0x29c6   : > { %4062 = vpow2.f32 %v3243_v37 }
0x29d0   : > { %v4063_v60 = vpop.eup %4062 }
0x29d1   : > { %v3245_v38 = vsel %vm3238_vm1, %v4063_v60, 0.0 }
0x29d2   : > { %3246 = vadd.xlane.f32.xlu1 %v3245_v38 }
0x2a5f   : > { %v3247_v36 = vpop.xlane.xlu1 %3246 }
0x2a60   : > { %4064 = vrcp.f32 %v3247_v36 }
0x2a6a   : > { %v4065_v1 = vpop.eup %4064 }
0x2a6b   : > { %v3249_v23 = vmul.f32 %v4065_v1, %v4063_v60 }
0x2a6d   : > { %3250 = vst.msk [vmem:[%s422_s22] sm:$0x1] %vm3238_vm1, %v3249_v23 }
0x2a6e PF: > { %s34_s1 = sadd.s32 1, %s4098_s1  }
0x2a6f   : > { %p31_p0 = scmp.ge.s32.totalorder %s34_s1, 4  }
0x2a71   :  { %33 = sbr.rel (!%p31_p0) target bundleno = 26 (0x1a), region = 113 }

</bundles_post_ra>
